<compile_context>
chip_gen: v7x
topology: tpu7x:2x2x1
jax: 0.10.0
libtpu: 0.0.40
codegen_flags: <defaults>
</compile_context>

<pallas_src>
import numpy as np
import jax
import jax.numpy as jnp
from jax import lax
from jax.experimental import pallas as pl
from jax.experimental.pallas import tpu as pltpu

_BN_EPS = 1e-5


def _round_up(x, m):
    return ((x + m - 1) // m) * m


# ---------------------------------------------------------------------------
# The single fused kernel
# ---------------------------------------------------------------------------

def _fused_forward_kernel(x_ref, wc1_ref, bs1_ref, wc2_ref, bs2_ref, wc3_ref, bs3_ref,
                          fcw_ref, fcb_ref, main_ref, aux1_ref, aux2_ref):
    f32, bf16 = jnp.float32, jnp.bfloat16
    tb = main_ref.shape[0]                      # samples in this batch tile
    # x_ref rows: [0:tb] = stream 1 (x[:,0]) of this tile's samples, [tb:2tb] = stream 2.
    h = x_ref[...].astype(bf16)                 # (2*tb, 64)

    def conv_relu_bn_pool(h_bf16, w_ref, bs_ref):
        # Conv layer as a dense matmul against the precomputed conv(+BN scale) matrix.
        # Columns are ordered (window_pos j, pooled_pos p, channel c), so the 2x2
        # max-pool is an elementwise max over 4 contiguous lane-aligned column blocks.
        z = jnp.dot(h_bf16, w_ref[...], preferred_element_type=f32)
        z = jnp.maximum(z + bs_ref[0:1, :], 0.0) + bs_ref[1:2, :]   # ReLU -> BN(eval)
        pc = z.shape[1] // 4
        return jnp.maximum(jnp.maximum(z[:, 0:pc], z[:, pc:2 * pc]),
                           jnp.maximum(z[:, 2 * pc:3 * pc], z[:, 3 * pc:4 * pc]))

    h = conv_relu_bn_pool(h, wc1_ref, bs1_ref).astype(bf16)       # (2tb, 512)  = 4x4x32
    h = conv_relu_bn_pool(h, wc2_ref, bs2_ref).astype(bf16)       # (2tb, 256)  = 2x2x64
    feats = conv_relu_bn_pool(h, wc3_ref, bs3_ref).astype(bf16)   # (2tb, 128)  = 1x1x128
    # Dropout2d(0.4) / Dropout(0) are identity at inference.

    # Resident, packed FC weights: [w1m_a, w1m_b, w2m, w3m, w1a, w2a, w3a], each (128,128).
    w1m_a = fcw_ref[0:128, :]
    w1m_b = fcw_ref[128:256, :]
    w2m = fcw_ref[256:384, :]
    w3m = fcw_ref[384:512, :]
    w1a = fcw_ref[512:640, :]
    w2a = fcw_ref[640:768, :]
    w3a = fcw_ref[768:896, :]
    b1m = fcb_ref[0:1, :]
    b2m = fcb_ref[1:2, :]
    b3m = fcb_ref[2:3, :]
    b1a = fcb_ref[3:4, :]
    b2a = fcb_ref[4:5, :]
    b3a = fcb_ref[5:6, :]

    # --- main head: fc_net(256,1,1,num_classes=1) + Sigmoid on [f1 | f2] ---
    f1 = feats[0:tb, :]
    f2 = feats[tb:2 * tb, :]
    hm = (jnp.dot(f1, w1m_a, preferred_element_type=f32)
          + jnp.dot(f2, w1m_b, preferred_element_type=f32) + b1m)
    hm = jnp.maximum(hm, 0.0)
    hm = jnp.maximum(jnp.dot(hm.astype(bf16), w2m, preferred_element_type=f32) + b2m, 0.0)
    main_ref[...] = jax.nn.sigmoid(
        jnp.dot(hm.astype(bf16), w3m, preferred_element_type=f32) + b3m)

    # --- aux head: fc_net(128,1,1,num_classes=10), run once on row-stacked [f1; f2] ---
    ha = jnp.maximum(jnp.dot(feats, w1a, preferred_element_type=f32) + b1a, 0.0)
    ha = jnp.maximum(jnp.dot(ha.astype(bf16), w2a, preferred_element_type=f32) + b2a, 0.0)
    aux = jnp.dot(ha.astype(bf16), w3a, preferred_element_type=f32) + b3a
    aux1_ref[...] = aux[0:tb, :]
    aux2_ref[...] = aux[tb:2 * tb, :]


# ---------------------------------------------------------------------------
# Wrapper
# ---------------------------------------------------------------------------

def _batch_tile(b):
    tb = min(128, _round_up(b, 8))
    # If the whole batch would fit a single grid step but can be split, use 2 steps so
    # v7x's second TensorCore gets work (one extra ~0.35us step on v5e/v6e is noise).
    if tb >= b and b > 8:
        tb = _round_up((b + 1) // 2, 8)
    return tb


@jax.jit
def final_forward(x, params):
    """x: (B, 2, 8, 8) float32 NCHW. Returns (main (B,1), aux1 (B,10), aux2 (B,10))."""
    b = x.shape[0]
    tb = _batch_tile(b)
    bp = _round_up(b, tb)
    grid_n = bp // tb

    xs = x.reshape(b, 2, 64).transpose(1, 0, 2)              # (2, B, 64), stream-major
    if bp != b:
        xs = jnp.pad(xs, ((0, 0), (0, bp - b), (0, 0)))
    # Per-tile row layout expected by the kernel: [tile g] = [stream1 rows; stream2 rows].
    xs = xs.reshape(2, grid_n, tb, 64).transpose(1, 0, 2, 3).reshape(grid_n * 2 * tb, 64)

    weight_names = ["wc1", "bs1", "wc2", "bs2", "wc3", "bs3", "fcw", "fcb"]
    weights = [params[name] for name in weight_names]
    const2 = lambda i: (0, 0)

    flops_per_sample = (
        2 * 2 * (64 * 2048 + 512 * 1024 + 256 * 512)          # conv tower, both streams
        + 2 * (2 * 128 * 128 + 128 * 128 + 128 * 128)         # main head
        + 2 * 2 * 3 * 128 * 128)                              # aux head on both streams
    weight_bytes = sum(int(w.size) * w.dtype.itemsize for w in weights)
    cost = pl.CostEstimate(
        flops=bp * flops_per_sample,
        transcendentals=bp * 128,
        bytes_accessed=int(2 * bp * 64 * 4 + weight_bytes + 3 * bp * 128 * 4))

    out_spec = pl.BlockSpec((tb, 128), lambda i: (i, 0))
    main_p, aux1_p, aux2_p = pl.pallas_call(
        _fused_forward_kernel,
        out_shape=(jax.ShapeDtypeStruct((bp, 128), jnp.float32),
                   jax.ShapeDtypeStruct((bp, 128), jnp.float32),
                   jax.ShapeDtypeStruct((bp, 128), jnp.float32)),
        grid=(grid_n,),
        in_specs=[pl.BlockSpec((2 * tb, 64), lambda i: (i, 0))]       # activations: tiled
                 + [pl.BlockSpec(w.shape, const2) for w in weights],  # weights: resident
        out_specs=(out_spec, out_spec, out_spec),
        compiler_params=pltpu.CompilerParams(
            dimension_semantics=("parallel",),
            vmem_limit_bytes=32 * 1024 * 1024),
        cost_estimate=cost,
    )(xs, *weights)
    return main_p[:b, :1], aux1_p[:b, :10], aux2_p[:b, :10]


# ---------------------------------------------------------------------------
# Parameter init / preparation (runs once, plain numpy/JAX)
# ---------------------------------------------------------------------------

def init_raw_params(key):
    """Deterministic PyTorch-style init: U(-1/sqrt(fan_in), 1/sqrt(fan_in)); BN
    affine/running stats drawn randomly so the BN path is exercised."""
    def linear(k, fan_in, shape_w, shape_b):
        kw, kb = jax.random.split(k)
        bound = 1.0 / (fan_in ** 0.5)
        return (jax.random.uniform(kw, shape_w, jnp.float32, -bound, bound),
                jax.random.uniform(kb, shape_b, jnp.float32, -bound, bound))

    keys = iter(jax.random.split(key, 12))
    conv = []
    for cin, cout in ((1, 32), (32, 64), (64, 128)):
        w, bias = linear(next(keys), cin * 9, (3, 3, cin, cout), (cout,))
        kg, kb_, km, kv = jax.random.split(next(keys), 4)
        gamma = jax.random.uniform(kg, (cout,), jnp.float32, 0.5, 1.5)
        beta = jax.random.uniform(kb_, (cout,), jnp.float32, -0.5, 0.5)
        mean = jax.random.uniform(km, (cout,), jnp.float32, -0.5, 0.5)
        var = jax.random.uniform(kv, (cout,), jnp.float32, 0.5, 1.5)
        conv.append((w, bias, gamma, beta, mean, var))

    main = [linear(next(keys), fi, (fi, fo), (fo,))
            for fi, fo in ((256, 128), (128, 128), (128, 1))]
    aux = [linear(next(keys), fi, (fi, fo), (fo,))
           for fi, fo in ((128, 64), (64, 64), (64, 10))]
    return {"conv": conv, "main": main, "aux": aux}


def _conv_pool_matrix(w_hwio, hw):
    """Dense (H*W*Cin, 4*P*Cout) matrix for a 3x3 / pad-1 conv on an hw x hw input.
    Output column index = (j*P + p)*Cout + c with j = position inside the 2x2 pool
    window and p = pooled spatial position (row-major), so max-pooling is a max over
    4 contiguous column blocks and the pooled result is already NHWC-flat."""
    H = W = hw
    _, _, cin, cout = w_hwio.shape
    Ho, Wo = H // 2, W // 2
    P = Ho * Wo
    w = np.asarray(w_hwio, np.float32)
    M = np.zeros((H * W * cin, 4 * P * cout), np.float32)
    for ph in range(Ho):
        for pw in range(Wo):
            p = ph * Wo + pw
            for dy in range(2):
                for dx in range(2):
                    oh, ow = 2 * ph + dy, 2 * pw + dx
                    col0 = ((2 * dy + dx) * P + p) * cout
                    for kh in range(3):
                        ih = oh + kh - 1
                        if ih < 0 or ih >= H:
                            continue
                        for kw in range(3):
                            iw = ow + kw - 1
                            if iw < 0 or iw >= W:
                                continue
                            row0 = (ih * W + iw) * cin
                            M[row0:row0 + cin, col0:col0 + cout] = w[kh, kw]
    return M


def prepare_params(raw):
    """One-time kernel-ready params: conv layers as dense (conv + folded BN-scale)
    matrices with pool-ordered columns; FC weights padded to 128 lanes and stacked
    into one resident bf16 slab; all matmul weights bf16, biases/shifts f32."""
    bf16 = jnp.bfloat16
    out = {}
    for li, ((w_hwio, bias, gamma, beta, mean, var), hw) in enumerate(
            zip(raw["conv"], (8, 4, 2)), start=1):
        gamma, beta, mean, var = map(lambda a: np.asarray(a, np.float32),
                                     (gamma, beta, mean, var))
        scale = gamma / np.sqrt(var + _BN_EPS)
        shift = beta - mean * scale
        # ReLU(z) * s == ReLU(z * s) only holds for s > 0 (true here: gamma in [0.5, 1.5]).
        assert (scale > 0).all(), "BN scale fold requires gamma > 0"
        w_scaled = np.asarray(w_hwio, np.float32) * scale[None, None, None, :]
        m = _conv_pool_matrix(w_scaled, hw)
        reps = m.shape[1] // w_hwio.shape[-1]
        bias_col = np.tile(np.asarray(bias, np.float32) * scale, reps)
        shift_col = np.tile(shift, reps)
        out[f"wc{li}"] = jnp.asarray(m, bf16)
        out[f"bs{li}"] = jnp.asarray(np.stack([bias_col, shift_col]), jnp.float32)

    def pad_block(w):
        w = np.asarray(w, np.float32)
        blk = np.zeros((128, 128), np.float32)
        blk[:w.shape[0], :w.shape[1]] = w
        return blk

    def pad_bias(bv):
        bv = np.asarray(bv, np.float32)
        row = np.zeros((128,), np.float32)
        row[:bv.shape[0]] = bv
        return row

    (w1m, b1m), (w2m, b2m), (w3m, b3m) = raw["main"]
    (w1a, b1a), (w2a, b2a), (w3a, b3a) = raw["aux"]
    w1m = np.asarray(w1m, np.float32)
    fcw = np.concatenate([pad_block(w1m[:128]), pad_block(w1m[128:]),
                          pad_block(w2m), pad_block(w3m),
                          pad_block(w1a), pad_block(w2a), pad_block(w3a)], axis=0)
    fcb = np.stack([pad_bias(b1m), pad_bias(b2m), pad_bias(b3m),
                    pad_bias(b1a), pad_bias(b2a), pad_bias(b3a)], axis=0)
    out["fcw"] = jnp.asarray(fcw, bf16)
    out["fcb"] = jnp.asarray(fcb, jnp.float32)
    return out


# ---------------------------------------------------------------------------
# Pure-JAX reference (mirrors the kernel's bf16-at-matmul-input numerics)
# ---------------------------------------------------------------------------

def _reference_forward(x, raw):
    bf16, f32 = jnp.bfloat16, jnp.float32

    def conv_block(h, p):
        w_hwio, bias, gamma, beta, mean, var = p
        scale = gamma / jnp.sqrt(var + _BN_EPS)
        shift = beta - mean * scale
        w_s = (w_hwio * scale[None, None, None, :]).astype(bf16)
        y = lax.conv_general_dilated(
            h.astype(bf16), w_s, window_strides=(1, 1), padding=((1, 1), (1, 1)),
            dimension_numbers=("NHWC", "HWIO", "NHWC"), preferred_element_type=f32)
        y = jnp.maximum(y + bias * scale, 0.0) + shift
        return lax.reduce_window(y, -jnp.inf, lax.max,
                                 (1, 2, 2, 1), (1, 2, 2, 1), "VALID")

    def mlp(z, layers, sigmoid):
        for idx, (w, bv) in enumerate(layers):
            z = jnp.dot(z.astype(bf16), w.astype(bf16),
                        preferred_element_type=f32) + bv
            if idx < len(layers) - 1:
                z = jnp.maximum(z, 0.0)
        return jax.nn.sigmoid(z) if sigmoid else z

    b = x.shape[0]
    h = jnp.concatenate([x[:, 0][..., None], x[:, 1][..., None]], axis=0)
    for p in raw["conv"]:
        h = conv_block(h, p)
    feats = h.reshape(2 * b, -1)
    f1, f2 = feats[:b], feats[b:]
    main = mlp(jnp.concatenate([f1, f2], axis=-1), raw["main"], sigmoid=True)
    aux1 = mlp(f1, raw["aux"], sigmoid=False)
    aux2 = mlp(f2, raw["aux"], sigmoid=False)
    return main, aux1, aux2


if __name__ == "__main__":
    B = 2
    key = jax.random.PRNGKey(0)
    key, kx = jax.random.split(key)
    # `final` needs 8x8 inputs: three 2x2 max-pools bring 8 -> 1, so the main fc head
    # sees 2*128 = 256 features and each aux head sees 128.
    x = jax.random.normal(kx, (B, 2, 8, 8), jnp.float32)

    raw = init_raw_params(key)
    params = prepare_params(raw)

    main_out, aux1_out, aux2_out = jax.block_until_ready(final_forward(x, params))

    ref_main, ref_aux1, ref_aux2 = _reference_forward(x, raw)

    assert main_out.shape == (B, 1), main_out.shape
    assert aux1_out.shape == (B, 10), aux1_out.shape
    assert aux2_out.shape == (B, 10), aux2_out.shape
    assert jnp.allclose(main_out, ref_main, atol=2e-3, rtol=2e-3), "main head mismatch"
    assert jnp.allclose(aux1_out, ref_aux1, atol=2e-3, rtol=2e-3), "aux1 head mismatch"
    assert jnp.allclose(aux2_out, ref_aux2, atol=2e-3, rtol=2e-3), "aux2 head mismatch"

    print("KERNEL_OK")
</pallas_src>

<mosaic_0001>
module attributes {stable_mosaic.version = 11 : i64} {
  func.func @_fused_forward_kernel(%arg0: i32, %arg1: memref<16x64xf32, #tpu.memory_space<vmem>>, %arg2: memref<64x2048xbf16, #tpu.memory_space<vmem>>, %arg3: memref<2x2048xf32, #tpu.memory_space<vmem>>, %arg4: memref<512x1024xbf16, #tpu.memory_space<vmem>>, %arg5: memref<2x1024xf32, #tpu.memory_space<vmem>>, %arg6: memref<256x512xbf16, #tpu.memory_space<vmem>>, %arg7: memref<2x512xf32, #tpu.memory_space<vmem>>, %arg8: memref<896x128xbf16, #tpu.memory_space<vmem>>, %arg9: memref<6x128xf32, #tpu.memory_space<vmem>>, %arg10: memref<8x128xf32, #tpu.memory_space<vmem>>, %arg11: memref<8x128xf32, #tpu.memory_space<vmem>>, %arg12: memref<8x128xf32, #tpu.memory_space<vmem>>) attributes {dimension_semantics = [#tpu.dimension_semantics<parallel>], iteration_bounds = array<i64: 1>, scalar_prefetch = 0 : i64, scratch_operands = 0 : i64, tpu.core_type = #tpu.core_type<tc>, window_params = [{transform_indices = @transform_0, window_bounds = array<i64: 16, 64>}, {pipeline_mode = #tpu.pipeline_mode<synchronous>, transform_indices = @transform_1, window_bounds = array<i64: 64, 2048>}, {pipeline_mode = #tpu.pipeline_mode<synchronous>, transform_indices = @transform_2, window_bounds = array<i64: 2, 2048>}, {pipeline_mode = #tpu.pipeline_mode<synchronous>, transform_indices = @transform_3, window_bounds = array<i64: 512, 1024>}, {pipeline_mode = #tpu.pipeline_mode<synchronous>, transform_indices = @transform_4, window_bounds = array<i64: 2, 1024>}, {pipeline_mode = #tpu.pipeline_mode<synchronous>, transform_indices = @transform_5, window_bounds = array<i64: 256, 512>}, {pipeline_mode = #tpu.pipeline_mode<synchronous>, transform_indices = @transform_6, window_bounds = array<i64: 2, 512>}, {pipeline_mode = #tpu.pipeline_mode<synchronous>, transform_indices = @transform_7, window_bounds = array<i64: 896, 128>}, {pipeline_mode = #tpu.pipeline_mode<synchronous>, transform_indices = @transform_8, window_bounds = array<i64: 6, 128>}, {transform_indices = @transform_9, window_bounds = array<i64: 8, 128>}, {transform_indices = @transform_10, window_bounds = array<i64: 8, 128>}, {transform_indices = @transform_11, window_bounds = array<i64: 8, 128>}]} {
    %c0 = arith.constant 0 : index
    %c0_0 = arith.constant 0 : index
    %0 = vector.load %arg1[%c0, %c0_0] : memref<16x64xf32, #tpu.memory_space<vmem>>, vector<16x64xf32>
    %1 = arith.truncf %0 : vector<16x64xf32> to vector<16x64xbf16>
    %c0_1 = arith.constant 0 : index
    %c0_2 = arith.constant 0 : index
    %2 = vector.load %arg2[%c0_1, %c0_2] : memref<64x2048xbf16, #tpu.memory_space<vmem>>, vector<64x2048xbf16>
    %cst = arith.constant dense<0.000000e+00> : vector<16x2048xf32>
    %3 = tpu.matmul %1, %2, %cst {dimension_numbers = #tpu.dot_dimension_numbers<[1], [0], [0], [1], [0, 0, 1, 1], [], []>} : vector<16x64xbf16>, vector<64x2048xbf16>, vector<16x2048xf32> -> vector<16x2048xf32>
    %c0_3 = arith.constant 0 : index
    %c0_4 = arith.constant 0 : index
    %4 = vector.load %arg3[%c0_3, %c0_4] : memref<2x2048xf32, #tpu.memory_space<vmem>>, vector<1x2048xf32>
    %5 = vector.broadcast %4 : vector<1x2048xf32> to vector<16x2048xf32>
    %6 = arith.addf %3, %5 : vector<16x2048xf32>
    %cst_5 = arith.constant 0.000000e+00 : f32
    %7 = vector.broadcast %cst_5 : f32 to vector<16x2048xf32>
    %8 = arith.maximumf %6, %7 : vector<16x2048xf32>
    %c1 = arith.constant 1 : index
    %c0_6 = arith.constant 0 : index
    %9 = vector.load %arg3[%c1, %c0_6] : memref<2x2048xf32, #tpu.memory_space<vmem>>, vector<1x2048xf32>
    %10 = vector.broadcast %9 : vector<1x2048xf32> to vector<16x2048xf32>
    %11 = arith.addf %8, %10 : vector<16x2048xf32>
    %12 = vector.extract_strided_slice %11 {offsets = [0, 0], sizes = [16, 512], strides = [1, 1]} : vector<16x2048xf32> to vector<16x512xf32>
    %13 = vector.extract_strided_slice %11 {offsets = [0, 512], sizes = [16, 512], strides = [1, 1]} : vector<16x2048xf32> to vector<16x512xf32>
    %14 = arith.maximumf %12, %13 : vector<16x512xf32>
    %15 = vector.extract_strided_slice %11 {offsets = [0, 1024], sizes = [16, 512], strides = [1, 1]} : vector<16x2048xf32> to vector<16x512xf32>
    %16 = vector.extract_strided_slice %11 {offsets = [0, 1536], sizes = [16, 512], strides = [1, 1]} : vector<16x2048xf32> to vector<16x512xf32>
    %17 = arith.maximumf %15, %16 : vector<16x512xf32>
    %18 = arith.maximumf %14, %17 : vector<16x512xf32>
    %19 = arith.truncf %18 : vector<16x512xf32> to vector<16x512xbf16>
    %c0_7 = arith.constant 0 : index
    %c0_8 = arith.constant 0 : index
    %20 = vector.load %arg4[%c0_7, %c0_8] : memref<512x1024xbf16, #tpu.memory_space<vmem>>, vector<512x1024xbf16>
    %cst_9 = arith.constant dense<0.000000e+00> : vector<16x1024xf32>
    %21 = tpu.matmul %19, %20, %cst_9 {dimension_numbers = #tpu.dot_dimension_numbers<[1], [0], [0], [1], [0, 0, 1, 1], [], []>} : vector<16x512xbf16>, vector<512x1024xbf16>, vector<16x1024xf32> -> vector<16x1024xf32>
    %c0_10 = arith.constant 0 : index
    %c0_11 = arith.constant 0 : index
    %22 = vector.load %arg5[%c0_10, %c0_11] : memref<2x1024xf32, #tpu.memory_space<vmem>>, vector<1x1024xf32>
    %23 = vector.broadcast %22 : vector<1x1024xf32> to vector<16x1024xf32>
    %24 = arith.addf %21, %23 : vector<16x1024xf32>
    %cst_12 = arith.constant 0.000000e+00 : f32
    %25 = vector.broadcast %cst_12 : f32 to vector<16x1024xf32>
    %26 = arith.maximumf %24, %25 : vector<16x1024xf32>
    %c1_13 = arith.constant 1 : index
    %c0_14 = arith.constant 0 : index
    %27 = vector.load %arg5[%c1_13, %c0_14] : memref<2x1024xf32, #tpu.memory_space<vmem>>, vector<1x1024xf32>
    %28 = vector.broadcast %27 : vector<1x1024xf32> to vector<16x1024xf32>
    %29 = arith.addf %26, %28 : vector<16x1024xf32>
    %30 = vector.extract_strided_slice %29 {offsets = [0, 0], sizes = [16, 256], strides = [1, 1]} : vector<16x1024xf32> to vector<16x256xf32>
    %31 = vector.extract_strided_slice %29 {offsets = [0, 256], sizes = [16, 256], strides = [1, 1]} : vector<16x1024xf32> to vector<16x256xf32>
    %32 = arith.maximumf %30, %31 : vector<16x256xf32>
    %33 = vector.extract_strided_slice %29 {offsets = [0, 512], sizes = [16, 256], strides = [1, 1]} : vector<16x1024xf32> to vector<16x256xf32>
    %34 = vector.extract_strided_slice %29 {offsets = [0, 768], sizes = [16, 256], strides = [1, 1]} : vector<16x1024xf32> to vector<16x256xf32>
    %35 = arith.maximumf %33, %34 : vector<16x256xf32>
    %36 = arith.maximumf %32, %35 : vector<16x256xf32>
    %37 = arith.truncf %36 : vector<16x256xf32> to vector<16x256xbf16>
    %c0_15 = arith.constant 0 : index
    %c0_16 = arith.constant 0 : index
    %38 = vector.load %arg6[%c0_15, %c0_16] : memref<256x512xbf16, #tpu.memory_space<vmem>>, vector<256x512xbf16>
    %cst_17 = arith.constant dense<0.000000e+00> : vector<16x512xf32>
    %39 = tpu.matmul %37, %38, %cst_17 {dimension_numbers = #tpu.dot_dimension_numbers<[1], [0], [0], [1], [0, 0, 1, 1], [], []>} : vector<16x256xbf16>, vector<256x512xbf16>, vector<16x512xf32> -> vector<16x512xf32>
    %c0_18 = arith.constant 0 : index
    %c0_19 = arith.constant 0 : index
    %40 = vector.load %arg7[%c0_18, %c0_19] : memref<2x512xf32, #tpu.memory_space<vmem>>, vector<1x512xf32>
    %41 = vector.broadcast %40 : vector<1x512xf32> to vector<16x512xf32>
    %42 = arith.addf %39, %41 : vector<16x512xf32>
    %cst_20 = arith.constant 0.000000e+00 : f32
    %43 = vector.broadcast %cst_20 : f32 to vector<16x512xf32>
    %44 = arith.maximumf %42, %43 : vector<16x512xf32>
    %c1_21 = arith.constant 1 : index
    %c0_22 = arith.constant 0 : index
    %45 = vector.load %arg7[%c1_21, %c0_22] : memref<2x512xf32, #tpu.memory_space<vmem>>, vector<1x512xf32>
    %46 = vector.broadcast %45 : vector<1x512xf32> to vector<16x512xf32>
    %47 = arith.addf %44, %46 : vector<16x512xf32>
    %48 = vector.extract_strided_slice %47 {offsets = [0, 0], sizes = [16, 128], strides = [1, 1]} : vector<16x512xf32> to vector<16x128xf32>
    %49 = vector.extract_strided_slice %47 {offsets = [0, 128], sizes = [16, 128], strides = [1, 1]} : vector<16x512xf32> to vector<16x128xf32>
    %50 = arith.maximumf %48, %49 : vector<16x128xf32>
    %51 = vector.extract_strided_slice %47 {offsets = [0, 256], sizes = [16, 128], strides = [1, 1]} : vector<16x512xf32> to vector<16x128xf32>
    %52 = vector.extract_strided_slice %47 {offsets = [0, 384], sizes = [16, 128], strides = [1, 1]} : vector<16x512xf32> to vector<16x128xf32>
    %53 = arith.maximumf %51, %52 : vector<16x128xf32>
    %54 = arith.maximumf %50, %53 : vector<16x128xf32>
    %55 = arith.truncf %54 : vector<16x128xf32> to vector<16x128xbf16>
    %c0_23 = arith.constant 0 : index
    %c0_24 = arith.constant 0 : index
    %56 = vector.load %arg8[%c0_23, %c0_24] : memref<896x128xbf16, #tpu.memory_space<vmem>>, vector<128x128xbf16>
    %c128 = arith.constant 128 : index
    %c0_25 = arith.constant 0 : index
    %57 = vector.load %arg8[%c128, %c0_25] : memref<896x128xbf16, #tpu.memory_space<vmem>>, vector<128x128xbf16>
    %c256 = arith.constant 256 : index
    %c0_26 = arith.constant 0 : index
    %58 = vector.load %arg8[%c256, %c0_26] : memref<896x128xbf16, #tpu.memory_space<vmem>>, vector<128x128xbf16>
    %c384 = arith.constant 384 : index
    %c0_27 = arith.constant 0 : index
    %59 = vector.load %arg8[%c384, %c0_27] : memref<896x128xbf16, #tpu.memory_space<vmem>>, vector<128x128xbf16>
    %c512 = arith.constant 512 : index
    %c0_28 = arith.constant 0 : index
    %60 = vector.load %arg8[%c512, %c0_28] : memref<896x128xbf16, #tpu.memory_space<vmem>>, vector<128x128xbf16>
    %c640 = arith.constant 640 : index
    %c0_29 = arith.constant 0 : index
    %61 = vector.load %arg8[%c640, %c0_29] : memref<896x128xbf16, #tpu.memory_space<vmem>>, vector<128x128xbf16>
    %c768 = arith.constant 768 : index
    %c0_30 = arith.constant 0 : index
    %62 = vector.load %arg8[%c768, %c0_30] : memref<896x128xbf16, #tpu.memory_space<vmem>>, vector<128x128xbf16>
    %c0_31 = arith.constant 0 : index
    %c0_32 = arith.constant 0 : index
    %63 = vector.load %arg9[%c0_31, %c0_32] : memref<6x128xf32, #tpu.memory_space<vmem>>, vector<1x128xf32>
    %c1_33 = arith.constant 1 : index
    %c0_34 = arith.constant 0 : index
    %64 = vector.load %arg9[%c1_33, %c0_34] : memref<6x128xf32, #tpu.memory_space<vmem>>, vector<1x128xf32>
    %c2 = arith.constant 2 : index
    %c0_35 = arith.constant 0 : index
    %65 = vector.load %arg9[%c2, %c0_35] : memref<6x128xf32, #tpu.memory_space<vmem>>, vector<1x128xf32>
    %c3 = arith.constant 3 : index
    %c0_36 = arith.constant 0 : index
    %66 = vector.load %arg9[%c3, %c0_36] : memref<6x128xf32, #tpu.memory_space<vmem>>, vector<1x128xf32>
    %c4 = arith.constant 4 : index
    %c0_37 = arith.constant 0 : index
    %67 = vector.load %arg9[%c4, %c0_37] : memref<6x128xf32, #tpu.memory_space<vmem>>, vector<1x128xf32>
    %c5 = arith.constant 5 : index
    %c0_38 = arith.constant 0 : index
    %68 = vector.load %arg9[%c5, %c0_38] : memref<6x128xf32, #tpu.memory_space<vmem>>, vector<1x128xf32>
    %69 = vector.extract_strided_slice %55 {offsets = [0, 0], sizes = [8, 128], strides = [1, 1]} : vector<16x128xbf16> to vector<8x128xbf16>
    %70 = vector.extract_strided_slice %55 {offsets = [8, 0], sizes = [8, 128], strides = [1, 1]} : vector<16x128xbf16> to vector<8x128xbf16>
    %cst_39 = arith.constant dense<0.000000e+00> : vector<8x128xf32>
    %71 = tpu.matmul %69, %56, %cst_39 {dimension_numbers = #tpu.dot_dimension_numbers<[1], [0], [0], [1], [0, 0, 1, 1], [], []>} : vector<8x128xbf16>, vector<128x128xbf16>, vector<8x128xf32> -> vector<8x128xf32>
    %cst_40 = arith.constant dense<0.000000e+00> : vector<8x128xf32>
    %72 = tpu.matmul %70, %57, %cst_40 {dimension_numbers = #tpu.dot_dimension_numbers<[1], [0], [0], [1], [0, 0, 1, 1], [], []>} : vector<8x128xbf16>, vector<128x128xbf16>, vector<8x128xf32> -> vector<8x128xf32>
    %73 = arith.addf %71, %72 : vector<8x128xf32>
    %74 = vector.broadcast %63 : vector<1x128xf32> to vector<8x128xf32>
    %75 = arith.addf %73, %74 : vector<8x128xf32>
    %cst_41 = arith.constant 0.000000e+00 : f32
    %76 = vector.broadcast %cst_41 : f32 to vector<8x128xf32>
    %77 = arith.maximumf %75, %76 : vector<8x128xf32>
    %78 = arith.truncf %77 : vector<8x128xf32> to vector<8x128xbf16>
    %cst_42 = arith.constant dense<0.000000e+00> : vector<8x128xf32>
    %79 = tpu.matmul %78, %58, %cst_42 {dimension_numbers = #tpu.dot_dimension_numbers<[1], [0], [0], [1], [0, 0, 1, 1], [], []>} : vector<8x128xbf16>, vector<128x128xbf16>, vector<8x128xf32> -> vector<8x128xf32>
    %80 = vector.broadcast %64 : vector<1x128xf32> to vector<8x128xf32>
    %81 = arith.addf %79, %80 : vector<8x128xf32>
    %cst_43 = arith.constant 0.000000e+00 : f32
    %82 = vector.broadcast %cst_43 : f32 to vector<8x128xf32>
    %83 = arith.maximumf %81, %82 : vector<8x128xf32>
    %84 = arith.truncf %83 : vector<8x128xf32> to vector<8x128xbf16>
    %cst_44 = arith.constant dense<0.000000e+00> : vector<8x128xf32>
    %85 = tpu.matmul %84, %59, %cst_44 {dimension_numbers = #tpu.dot_dimension_numbers<[1], [0], [0], [1], [0, 0, 1, 1], [], []>} : vector<8x128xbf16>, vector<128x128xbf16>, vector<8x128xf32> -> vector<8x128xf32>
    %86 = vector.broadcast %65 : vector<1x128xf32> to vector<8x128xf32>
    %87 = arith.addf %85, %86 : vector<8x128xf32>
    %88 = arith.negf %87 : vector<8x128xf32>
    %89 = math.exp %88 : vector<8x128xf32>
    %cst_45 = arith.constant 1.000000e+00 : f32
    %90 = vector.broadcast %cst_45 : f32 to vector<8x128xf32>
    %91 = arith.addf %90, %89 : vector<8x128xf32>
    %92 = arith.divf %90, %91 : vector<8x128xf32>
    %c0_46 = arith.constant 0 : index
    %c0_47 = arith.constant 0 : index
    %93 = vector.load %arg10[%c0_46, %c0_47] : memref<8x128xf32, #tpu.memory_space<vmem>>, vector<8x128xf32>
    tpu.vector_store %arg10[%c0_46, %c0_47], %92 {strides = array<i32>} : memref<8x128xf32, #tpu.memory_space<vmem>>, vector<8x128xf32>,
    %cst_48 = arith.constant dense<0.000000e+00> : vector<16x128xf32>
    %94 = tpu.matmul %55, %60, %cst_48 {dimension_numbers = #tpu.dot_dimension_numbers<[1], [0], [0], [1], [0, 0, 1, 1], [], []>} : vector<16x128xbf16>, vector<128x128xbf16>, vector<16x128xf32> -> vector<16x128xf32>
    %95 = vector.broadcast %66 : vector<1x128xf32> to vector<16x128xf32>
    %96 = arith.addf %94, %95 : vector<16x128xf32>
    %cst_49 = arith.constant 0.000000e+00 : f32
    %97 = vector.broadcast %cst_49 : f32 to vector<16x128xf32>
    %98 = arith.maximumf %96, %97 : vector<16x128xf32>
    %99 = arith.truncf %98 : vector<16x128xf32> to vector<16x128xbf16>
    %cst_50 = arith.constant dense<0.000000e+00> : vector<16x128xf32>
    %100 = tpu.matmul %99, %61, %cst_50 {dimension_numbers = #tpu.dot_dimension_numbers<[1], [0], [0], [1], [0, 0, 1, 1], [], []>} : vector<16x128xbf16>, vector<128x128xbf16>, vector<16x128xf32> -> vector<16x128xf32>
    %101 = vector.broadcast %67 : vector<1x128xf32> to vector<16x128xf32>
    %102 = arith.addf %100, %101 : vector<16x128xf32>
    %cst_51 = arith.constant 0.000000e+00 : f32
    %103 = vector.broadcast %cst_51 : f32 to vector<16x128xf32>
    %104 = arith.maximumf %102, %103 : vector<16x128xf32>
    %105 = arith.truncf %104 : vector<16x128xf32> to vector<16x128xbf16>
    %cst_52 = arith.constant dense<0.000000e+00> : vector<16x128xf32>
    %106 = tpu.matmul %105, %62, %cst_52 {dimension_numbers = #tpu.dot_dimension_numbers<[1], [0], [0], [1], [0, 0, 1, 1], [], []>} : vector<16x128xbf16>, vector<128x128xbf16>, vector<16x128xf32> -> vector<16x128xf32>
    %107 = vector.broadcast %68 : vector<1x128xf32> to vector<16x128xf32>
    %108 = arith.addf %106, %107 : vector<16x128xf32>
    %109 = vector.extract_strided_slice %108 {offsets = [0, 0], sizes = [8, 128], strides = [1, 1]} : vector<16x128xf32> to vector<8x128xf32>
    %c0_53 = arith.constant 0 : index
    %c0_54 = arith.constant 0 : index
    %110 = vector.load %arg11[%c0_53, %c0_54] : memref<8x128xf32, #tpu.memory_space<vmem>>, vector<8x128xf32>
    tpu.vector_store %arg11[%c0_53, %c0_54], %109 {strides = array<i32>} : memref<8x128xf32, #tpu.memory_space<vmem>>, vector<8x128xf32>,
    %111 = vector.extract_strided_slice %108 {offsets = [8, 0], sizes = [8, 128], strides = [1, 1]} : vector<16x128xf32> to vector<8x128xf32>
    %c0_55 = arith.constant 0 : index
    %c0_56 = arith.constant 0 : index
    %112 = vector.load %arg12[%c0_55, %c0_56] : memref<8x128xf32, #tpu.memory_space<vmem>>, vector<8x128xf32>
    tpu.vector_store %arg12[%c0_55, %c0_56], %111 {strides = array<i32>} : memref<8x128xf32, #tpu.memory_space<vmem>>, vector<8x128xf32>,
    return
  }
  func.func @transform_0(%arg0: i32) -> (i32, i32) {
    %c0_i32 = arith.constant 0 : i32
    %c0_i32_0 = arith.constant 0 : i32
    return %arg0, %c0_i32 : i32, i32
  }
  func.func @transform_1(%arg0: i32) -> (i32, i32) {
    %c0_i32 = arith.constant 0 : i32
    %c0_i32_0 = arith.constant 0 : i32
    %c0_i32_1 = arith.constant 0 : i32
    return %c0_i32, %c0_i32_0 : i32, i32
  }
  func.func @transform_2(%arg0: i32) -> (i32, i32) {
    %c0_i32 = arith.constant 0 : i32
    %c0_i32_0 = arith.constant 0 : i32
    %c0_i32_1 = arith.constant 0 : i32
    return %c0_i32, %c0_i32_0 : i32, i32
  }
  func.func @transform_3(%arg0: i32) -> (i32, i32) {
    %c0_i32 = arith.constant 0 : i32
    %c0_i32_0 = arith.constant 0 : i32
    %c0_i32_1 = arith.constant 0 : i32
    return %c0_i32, %c0_i32_0 : i32, i32
  }
  func.func @transform_4(%arg0: i32) -> (i32, i32) {
    %c0_i32 = arith.constant 0 : i32
    %c0_i32_0 = arith.constant 0 : i32
    %c0_i32_1 = arith.constant 0 : i32
    return %c0_i32, %c0_i32_0 : i32, i32
  }
  func.func @transform_5(%arg0: i32) -> (i32, i32) {
    %c0_i32 = arith.constant 0 : i32
    %c0_i32_0 = arith.constant 0 : i32
    %c0_i32_1 = arith.constant 0 : i32
    return %c0_i32, %c0_i32_0 : i32, i32
  }
  func.func @transform_6(%arg0: i32) -> (i32, i32) {
    %c0_i32 = arith.constant 0 : i32
    %c0_i32_0 = arith.constant 0 : i32
    %c0_i32_1 = arith.constant 0 : i32
    return %c0_i32, %c0_i32_0 : i32, i32
  }
  func.func @transform_7(%arg0: i32) -> (i32, i32) {
    %c0_i32 = arith.constant 0 : i32
    %c0_i32_0 = arith.constant 0 : i32
    %c0_i32_1 = arith.constant 0 : i32
    return %c0_i32, %c0_i32_0 : i32, i32
  }
  func.func @transform_8(%arg0: i32) -> (i32, i32) {
    %c0_i32 = arith.constant 0 : i32
    %c0_i32_0 = arith.constant 0 : i32
    %c0_i32_1 = arith.constant 0 : i32
    return %c0_i32, %c0_i32_0 : i32, i32
  }
  func.func @transform_9(%arg0: i32) -> (i32, i32) {
    %c0_i32 = arith.constant 0 : i32
    %c0_i32_0 = arith.constant 0 : i32
    return %arg0, %c0_i32 : i32, i32
  }
  func.func @transform_10(%arg0: i32) -> (i32, i32) {
    %c0_i32 = arith.constant 0 : i32
    %c0_i32_0 = arith.constant 0 : i32
    return %arg0, %c0_i32 : i32, i32
  }
  func.func @transform_11(%arg0: i32) -> (i32, i32) {
    %c0_i32 = arith.constant 0 : i32
    %c0_i32_0 = arith.constant 0 : i32
    return %arg0, %c0_i32 : i32, i32
  }
}

</mosaic_0001>

<bundles_post_ra>
// kernel: final_forward.1
= control target key start
LH: loop header
LB: loop body
LE: loop exit
PB: predicated region body
PF: predicated region fallthrough
CT: control target
= control target key end

     0   :  { %17 = vsyncpa [#allocation3], 0  ;;  %s5981_s0 = inlined_call_operand.vmem [shape: f32[16,64], index: 0, kind: input, shape index: {}]   ;;  %s5982_s1 = inlined_call_operand.hbm [shape: bf16[64,2048], index: 1, kind: input, shape index: {}]   ;;  %s5983_s2 = inlined_call_operand.vmem [shape: f32[2,2048], index: 2, kind: input, shape index: {}]   ;;  %s5984_s3 = inlined_call_operand.hbm [shape: bf16[512,1024], index: 3, kind: input, shape index: {}]   ;;  %s5985_s4 = inlined_call_operand.vmem [shape: f32[2,1024], index: 4, kind: input, shape index: {}]   ;;  %s5986_s5 = inlined_call_operand.hbm [shape: bf16[256,512], index: 5, kind: input, shape index: {}]   ;;  %s5987_s6 = inlined_call_operand.vmem [shape: f32[2,512], index: 6, kind: input, shape index: {}]   ;;  %s5988_s7 = inlined_call_operand.hbm [shape: bf16[896,128], index: 7, kind: input, shape index: {}]   ;;  %s5989_s8 = inlined_call_operand.vmem [shape: f32[6,128], index: 8, kind: input, shape index: {}]   ;;  %s5990_s9 = inlined_call_operand.vmem [shape: f32[8,128], index: 9, kind: output, shape index: {0}]   ;;  %s5991_s10 = inlined_call_operand.vmem [shape: f32[8,128], index: 10, kind: output, shape index: {1}]   ;;  %s5992_s11 = inlined_call_operand.vmem [shape: f32[8,128], index: 11, kind: output, shape index: {2}]  }
   0x1   :  { %18 = vsyncpa [#allocation5], 0 }
   0x2   :  { %19 = vsyncpa [#allocation8], 0  ;;  %s5396_s17 = smov [#allocation4]   ;;  %s5302_s21 = scalar_lea.hbm %s5984_s3, 32768 }
   0x3   :  { %s41_s18 = sshll.u32 %s5396_s17, 4  ;;  %p5303_p0 = scmp.ne.s32.totalorder %s5984_s3, %s5302_s21  ;;  %s42_s18 = int_to_ptr.vmem [resolvable:$true] %s41_s18 }
   0x4   :  { %p5306_p1 = scmp.lt.u32.totalorder %s5302_s21, %s5984_s3 }
   0x6   :  { %p5308_p2 = pnand %p5306_p1, %p5303_p0 }
   0x8   :  { %5311 = shalt.err (!%p5308_p2)
}
   0x9   :  { %s5312_s26 = scalar_lea.vmem %s42_s18, 32768  ;;  %p5317_p4 = scmp.lt.s32.totalorder %s42_s18, %s42_s18 }
   0xa   :  { %p5313_p3 = scmp.ne.s32.totalorder %s42_s18, %s5312_s26  ;;  %p5318_p5 = scmp.lt.s32.totalorder %s5312_s26, %s5312_s26 }
   0xc   :  { %p5319_p6 = por %p5318_p5, %p5317_p4 }
   0xe   :  { %p5320_p7 = pnand %p5319_p6, %p5313_p3 }
  0x10   :  { %5323 = shalt.err (!%p5320_p7)
}
  0x11   :  { %s5397_s27 = smov 512   ;;  %s5398_s28 = smov 32  }
  0x12   :  { %47 = dma.hbm_to_vmem [thread:$0]  %s5984_s3, 32768, %s42_s18, [#allocation5], %s5397_s27, %s5397_s27, %s5398_s28  }
  0x13   :  { %s5399_s12 = smov [#allocation2]   ;;  %s5324_s16 = scalar_lea.hbm %s5982_s1, 8192 }
  0x14   :  { %s27_s13 = sshll.u32 %s5399_s12, 4  ;;  %p5325_p8 = scmp.ne.s32.totalorder %s5982_s1, %s5324_s16  ;;  %s28_s13 = int_to_ptr.vmem [resolvable:$true] %s27_s13 }
  0x15   :  { %p5328_p9 = scmp.lt.u32.totalorder %s5324_s16, %s5982_s1 }
  0x17   :  { %p5330_p10 = pnand %p5328_p9, %p5325_p8 }
  0x19   :  { %5333 = shalt.err (!%p5330_p10)
}
  0x1a   :  { %s5334_s22 = scalar_lea.vmem %s28_s13, 8192  ;;  %p5339_p12 = scmp.lt.s32.totalorder %s28_s13, %s28_s13 }
  0x1b   :  { %p5335_p11 = scmp.ne.s32.totalorder %s28_s13, %s5334_s22  ;;  %p5340_p13 = scmp.lt.s32.totalorder %s5334_s22, %s5334_s22 }
  0x1d   :  { %p5341_p0 = por %p5340_p13, %p5339_p12 }
  0x1f   :  { %p5342_p1 = pnand %p5341_p0, %p5335_p11 }
  0x21   :  { %5345 = shalt.err (!%p5342_p1)
}
  0x22   :  { %s5400_s3 = smov 1024   ;;  %s5401_s18 = smov 64  }
  0x23   :  { %33 = dma.hbm_to_vmem [thread:$0]  %s5982_s1, 8192, %s28_s13, [#allocation3], %s5400_s3, %s5400_s3, %s5401_s18  }
  0x24   :  { %s5402_s25 = smov [#allocation6]   ;;  %s5346_s29 = scalar_lea.hbm %s5986_s5, 8192 }
  0x25   :  { %s55_s26 = sshll.u32 %s5402_s25, 4  ;;  %p5347_p2 = scmp.ne.s32.totalorder %s5986_s5, %s5346_s29  ;;  %s56_s26 = int_to_ptr.vmem [resolvable:$true] %s55_s26 }
  0x26   :  { %p5350_p3 = scmp.lt.u32.totalorder %s5346_s29, %s5986_s5 }
  0x28   :  { %p5352_p4 = pnand %p5350_p3, %p5347_p2 }
  0x2a   :  { %5355 = shalt.err (!%p5352_p4)
}
  0x2b   :  { %s5356_s16 = scalar_lea.vmem %s56_s26, 8192  ;;  %p5361_p6 = scmp.lt.s32.totalorder %s56_s26, %s56_s26 }
  0x2c   :  { %p5357_p5 = scmp.ne.s32.totalorder %s56_s26, %s5356_s16  ;;  %p5362_p7 = scmp.lt.s32.totalorder %s5356_s16, %s5356_s16 }
  0x2e   :  { %p5363_p8 = por %p5362_p7, %p5361_p6 }
  0x30   :  { %p5364_p9 = pnand %p5363_p8, %p5357_p5 }
  0x32   :  { %5367 = shalt.err (!%p5364_p9)
}
  0x33   :  { %s5403_s1 = smov 256   ;;  %s5404_s13 = smov 16  }
  0x34   :  { %61 = dma.hbm_to_vmem [thread:$0]  %s5986_s5, 8192, %s56_s26, [#allocation5], %s5403_s1, %s5403_s1, %s5404_s13  }
  0x35   :  { %s5405_s20 = smov [#allocation7]   ;;  %s5368_s23 = scalar_lea.hbm %s5988_s7, 7168 }
  0x36   :  { %s69_s21 = sshll.u32 %s5405_s20, 4  ;;  %p5369_p10 = scmp.ne.s32.totalorder %s5988_s7, %s5368_s23  ;;  %s70_s21 = int_to_ptr.vmem [resolvable:$true] %s69_s21 }
  0x37   :  { %p5372_p11 = scmp.lt.u32.totalorder %s5368_s23, %s5988_s7 }
  0x39   :  { %p5374_p12 = pnand %p5372_p11, %p5369_p10 }
  0x3b   :  { %5377 = shalt.err (!%p5374_p12)
}
  0x3c   :  { %s5378_s29 = scalar_lea.vmem %s70_s21, 7168  ;;  %p5383_p0 = scmp.lt.s32.totalorder %s70_s21, %s70_s21 }
  0x3d   :  { %p5379_p13 = scmp.ne.s32.totalorder %s70_s21, %s5378_s29  ;;  %p5384_p1 = scmp.lt.s32.totalorder %s5378_s29, %s5378_s29 }
  0x3f   :  { %p5385_p2 = por %p5384_p1, %p5383_p0 }
  0x41   :  { %p5386_p3 = pnand %p5385_p2, %p5379_p13 }
  0x43   :  { %5389 = shalt.err (!%p5386_p3)
}
  0x44   :  { %s5406_s5 = smov 4  }
  0x45   :  { %75 = dma.hbm_to_vmem [thread:$0]  %s5988_s7, 7168, %s70_s21, [#allocation8], %s5401_s18, %s5401_s18, %s5406_s5  }
  0x46   :  { %5390 = dma.done.wait [#allocation3], 8192  }
  0x47   :  { %5391 = vsyncadd [#allocation3], 4294959104 }
  0x48   :  { %5392 = dma.done.wait [#allocation5], 40960  }
  0x49   :  { %5393 = vsyncadd [#allocation5], 4294926336 }
  0x4a   :  { %5394 = dma.done.wait [#allocation8], 7168  }
  0x4b   :  { %5395 = vsyncadd [#allocation8], 4294960128  ;;  %v5407_v0 = vmov 0   ;;  %v94_v1 = vld [vmem:[#allocation2] sm:$0xff]  ;;  %v96_v3 = vld [vmem:[#allocation2 + $0x10] sm:$0xff]  ;;  %vm563_vm0 = vcmask 523264  }
  0x4c   :  { %599 = vmatprep.mubr.bf16.mxu1 %v5407_v0  ;;  %685 = vmatprep.mubr.bf16.mxu0 %v5407_v0  ;;  %v102_v2 = vld [vmem:[#allocation2 + $0x40] sm:$0xff]  ;;  %v104_v5 = vld [vmem:[#allocation2 + $0x50] sm:$0xff]  ;;  %v95_v31 = vld [vmem:[#allocation2 + $0x8] sm:$0xff]  ;;  %vm5409_vm1 = vmmov 0  }
  0x4d   :  { %v4439_v4 = vcombine.high %v94_v1, %v102_v2  ;;  %v4438_v6 = vcombine.low %v94_v1, %v102_v2  ;;  %v110_v7 = vld [vmem:[#allocation2 + $0x80] sm:$0xff]  ;;  %v4443_v9 = vcombine.high %v96_v3, %v104_v5  ;;  %v4442_v10 = vcombine.low %v96_v3, %v104_v5  ;;  %v112_v12 = vld [vmem:[#allocation2 + $0x90] sm:$0xff]  ;;  %v103_v32 = vld [vmem:[#allocation2 + $0x48] sm:$0xff] }
  0x4e   :  { %v118_v8 = vld [vmem:[#allocation2 + $0xc0] sm:$0xff]  ;;  %v120_v13 = vld [vmem:[#allocation2 + $0xd0] sm:$0xff]  ;;  %v92_v37 = vld [vmem:[%s5981_s0 + $0x8] sm:$0xff]  ;;  %v4441_v39 = vcombine.high %v95_v31, %v103_v32  ;;  %v4440_v46 = vcombine.low %v95_v31, %v103_v32 }
  0x4f   :  { %v4455_v11 = vcombine.high %v110_v7, %v118_v8  ;;  %v126_v14 = vld [vmem:[#allocation2 + $0x100] sm:$0xff]  ;;  %567 = vmatprep.subr.bf16.mxu1 %v4439_v4  ;;  %v4459_v15 = vcombine.high %v112_v12, %v120_v13  ;;  %v128_v17 = vld [vmem:[#allocation2 + $0x110] sm:$0xff]  ;;  %653 = vmatprep.subr.bf16.mxu0 %v4443_v9  ;;  %v4454_v19 = vcombine.low %v110_v7, %v118_v8  ;;  %v111_v41 = vld [vmem:[#allocation2 + $0x88] sm:$0xff] }
  0x50   :  { %v134_v16 = vld [vmem:[#allocation2 + $0x140] sm:$0xff]  ;;  %v136_v18 = vld [vmem:[#allocation2 + $0x150] sm:$0xff]  ;;  %568 = vmatpush1.bf16.msra.mxu1 %v4438_v6  ;;  %654 = vmatpush1.bf16.msra.mxu0 %v4442_v10  ;;  %v4458_v20 = vcombine.low %v112_v12, %v120_v13  ;;  %v119_v42 = vld [vmem:[#allocation2 + $0xc8] sm:$0xff] }
  0x51   :  { %569 = vmatprep.subr.bf16.mxu1 %v4455_v11  ;;  %v4471_v21 = vcombine.high %v126_v14, %v134_v16  ;;  %655 = vmatprep.subr.bf16.mxu0 %v4459_v15  ;;  %v4475_v22 = vcombine.high %v128_v17, %v136_v18  ;;  %v142_v23 = vld [vmem:[#allocation2 + $0x180] sm:$0xff]  ;;  %v144_v25 = vld [vmem:[#allocation2 + $0x190] sm:$0xff]  ;;  %v4470_v27 = vcombine.low %v126_v14, %v134_v16  ;;  %v127_v50 = vld [vmem:[#allocation2 + $0x108] sm:$0xff] }
  0x52   :  { %v150_v24 = vld [vmem:[#allocation2 + $0x1c0] sm:$0xff]  ;;  %v152_v26 = vld [vmem:[#allocation2 + $0x1d0] sm:$0xff]  ;;  %v4474_v28 = vcombine.low %v128_v17, %v136_v18  ;;  %v4457_v48 = vcombine.high %v111_v41, %v119_v42  ;;  %v135_v51 = vld [vmem:[#allocation2 + $0x148] sm:$0xff]  ;;  %v4456_v54 = vcombine.low %v111_v41, %v119_v42 }
  0x53   :  { %v4487_v29 = vcombine.high %v142_v23, %v150_v24  ;;  %v4491_v30 = vcombine.high %v144_v25, %v152_v26  ;;  %v98_v33 = vld [vmem:[#allocation2 + $0x20] sm:$0xff]  ;;  %v4486_v35 = vcombine.low %v142_v23, %v150_v24  ;;  %v4490_v38 = vcombine.low %v144_v25, %v152_v26  ;;  %v143_v58 = vld [vmem:[#allocation2 + $0x188] sm:$0xff]  ;;  %v97_v3 = vld [vmem:[#allocation2 + $0x18] sm:$0xff] }
  0x54   :  { %570 = vmatpush1.bf16.msra.mxu1 %v4454_v19  ;;  %656 = vmatpush1.bf16.msra.mxu0 %v4458_v20  ;;  %v106_v34 = vld [vmem:[#allocation2 + $0x60] sm:$0xff]  ;;  %v4473_v56 = vcombine.high %v127_v50, %v135_v51  ;;  %v151_v59 = vld [vmem:[#allocation2 + $0x1c8] sm:$0xff]  ;;  %v4472_v62 = vcombine.low %v127_v50, %v135_v51  ;;  %v105_v4 = vld [vmem:[#allocation2 + $0x58] sm:$0xff] }
  0x55   :  { %571 = vmatprep.subr.bf16.mxu1 %v4471_v21  ;;  %657 = vmatprep.subr.bf16.mxu0 %v4475_v22  ;;  %v91_v36 = vld [vmem:[%s5981_s0] sm:$0xff]  ;;  %v4447_v40 = vcombine.high %v98_v33, %v106_v34  ;;  %v4446_v47 = vcombine.low %v98_v33, %v106_v34  ;;  %v4489_v1 = vcombine.high %v143_v58, %v151_v59  ;;  %v100_v5 = vld [vmem:[#allocation2 + $0x30] sm:$0xff]  ;;  %v113_v8 = vld [vmem:[#allocation2 + $0x98] sm:$0xff] }
  0x56   :  { %v5529_v43 = vpack.c.bf16 %v92_v37, %v91_v36  ;;  %v114_v44 = vld [vmem:[#allocation2 + $0xa0] sm:$0xff]  ;;  %v108_v6 = vld [vmem:[#allocation2 + $0x70] sm:$0xff]  ;;  %v4488_v7 = vcombine.low %v143_v58, %v151_v59  ;;  %v121_v9 = vld [vmem:[#allocation2 + $0xd8] sm:$0xff]  ;;  %v4445_v11 = vcombine.high %v97_v3, %v105_v4  ;;  %v4444_v15 = vcombine.low %v97_v3, %v105_v4 }
  0x57   :  { %v122_v45 = vld [vmem:[#allocation2 + $0xe0] sm:$0xff]  ;;  %v116_v12 = vld [vmem:[#allocation2 + $0xb0] sm:$0xff]  ;;  %v4451_v14 = vcombine.high %v100_v5, %v108_v6  ;;  %v129_v16 = vld [vmem:[#allocation2 + $0x118] sm:$0xff]  ;;  %v4450_v18 = vcombine.low %v100_v5, %v108_v6  ;;  %v4461_v19 = vcombine.high %v113_v8, %v121_v9  ;;  %v4460_v23 = vcombine.low %v113_v8, %v121_v9 }
  0x58   :  { %572 = vmatpush1.bf16.msra.mxu1 %v4470_v27  ;;  %658 = vmatpush1.bf16.msra.mxu0 %v4474_v28  ;;  %v4463_v49 = vcombine.high %v114_v44, %v122_v45  ;;  %v130_v52 = vld [vmem:[#allocation2 + $0x120] sm:$0xff]  ;;  %v4462_v55 = vcombine.low %v114_v44, %v122_v45  ;;  %v124_v13 = vld [vmem:[#allocation2 + $0xf0] sm:$0xff]  ;;  %v137_v17 = vld [vmem:[#allocation2 + $0x158] sm:$0xff] }
  0x59   :  { %573 = vmatprep.subr.bf16.mxu1 %v4487_v29  ;;  %659 = vmatprep.subr.bf16.mxu0 %v4491_v30  ;;  %v138_v53 = vld [vmem:[#allocation2 + $0x160] sm:$0xff]  ;;  %v132_v20 = vld [vmem:[#allocation2 + $0x130] sm:$0xff]  ;;  %v4467_v22 = vcombine.high %v116_v12, %v124_v13  ;;  %v145_v24 = vld [vmem:[#allocation2 + $0x198] sm:$0xff]  ;;  %v4466_v26 = vcombine.low %v116_v12, %v124_v13  ;;  %v4477_v27 = vcombine.high %v129_v16, %v137_v17 }
  0x5a   :  { %v4479_v57 = vcombine.high %v130_v52, %v138_v53  ;;  %v146_v60 = vld [vmem:[#allocation2 + $0x1a0] sm:$0xff]  ;;  %v4478_v63 = vcombine.low %v130_v52, %v138_v53  ;;  %v140_v21 = vld [vmem:[#allocation2 + $0x170] sm:$0xff]  ;;  %v153_v25 = vld [vmem:[#allocation2 + $0x1d8] sm:$0xff]  ;;  %v4476_v31 = vcombine.low %v129_v16, %v137_v17 }
  0x5b   :  { %v154_v61 = vld [vmem:[#allocation2 + $0x1e0] sm:$0xff]  ;;  %v148_v28 = vld [vmem:[#allocation2 + $0x1b0] sm:$0xff]  ;;  %v4483_v30 = vcombine.high %v132_v20, %v140_v21  ;;  %v99_v32 = vld [vmem:[#allocation2 + $0x28] sm:$0xff]  ;;  %v4482_v34 = vcombine.low %v132_v20, %v140_v21 }
  0x5c   :  { %574 = vmatpush1.bf16.msra.mxu1 %v4486_v35  ;;  %660 = vmatpush1.bf16.msra.mxu0 %v4490_v38  ;;  %v4495_v2 = vcombine.high %v146_v60, %v154_v61  ;;  %v4494_v10 = vcombine.low %v146_v60, %v154_v61  ;;  %v156_v29 = vld [vmem:[#allocation2 + $0x1f0] sm:$0xff]  ;;  %v107_v33 = vld [vmem:[#allocation2 + $0x68] sm:$0xff]  ;;  %v4493_v35 = vcombine.high %v145_v24, %v153_v25  ;;  %v1089_v36 = vld [vmem:[#allocation4] sm:$0xff] }
  0x5d   :  { %610 = vmatprep.subr.bf16.mxu1 %v4441_v39  ;;  %739 = vmatprep.subr.bf16.mxu0 %v4447_v40  ;;  %v1093_v37 = vld [vmem:[#allocation4 + $0x20] sm:$0xff]  ;;  %v4499_v38 = vcombine.high %v148_v28, %v156_v29  ;;  %v4492_v39 = vcombine.low %v145_v24, %v153_v25  ;;  %v115_v40 = vld [vmem:[#allocation2 + $0xa8] sm:$0xff]  ;;  %v4498_v42 = vcombine.low %v148_v28, %v156_v29  ;;  %v109_v3 = vld [vmem:[#allocation2 + $0x78] sm:$0xff] }
  0x5e   :  { %v123_v41 = vld [vmem:[#allocation2 + $0xe8] sm:$0xff]  ;;  %v4449_v44 = vcombine.high %v99_v32, %v107_v33  ;;  %v4513_v45 = vcombine.high %v1089_v36, %v1093_v37  ;;  %v4512_v52 = vcombine.low %v1089_v36, %v1093_v37  ;;  %v1105_v53 = vld [vmem:[#allocation4 + $0x80] sm:$0xff]  ;;  %v117_v8 = vld [vmem:[#allocation2 + $0xb8] sm:$0xff] }
  0x5f   :  { %4502 = vmatmul.mubr.msk.bf16.vlgmr.msra.gmra.mrb[0].mxu1 %vm563_vm0, %v5529_v43  ;;  %4504 = vmatmul.mubr.msk.bf16.vlgmr.msra.gmra.mrb[0].mxu0 %vm563_vm0, %v5529_v43  ;;  %v139_v50 = vld [vmem:[#allocation2 + $0x168] sm:$0xff]  ;;  %v4465_v51 = vcombine.high %v115_v40, %v123_v41  ;;  %v1113_v61 = vld [vmem:[#allocation4 + $0xc0] sm:$0xff]  ;;  %v125_v9 = vld [vmem:[#allocation2 + $0xf8] sm:$0xff] }
  0x60   :  { %611 = vmatpush1.bf16.msra.mxu1 %v4440_v46  ;;  %740 = vmatpush1.bf16.msra.mxu0 %v4446_v47  ;;  %v1097_v46 = vld [vmem:[#allocation4 + $0x40] sm:$0xff]  ;;  %v155_v58 = vld [vmem:[#allocation2 + $0x1e8] sm:$0xff]  ;;  %v133_v13 = vld [vmem:[#allocation2 + $0x138] sm:$0xff]  ;;  %v4468_v16 = vcombine.low %v117_v8, %v125_v9 }
  0x61   :  { %612 = vmatprep.subr.bf16.mxu1 %v4457_v48  ;;  %741 = vmatprep.subr.bf16.mxu0 %v4463_v49  ;;  %v1101_v47 = vld [vmem:[#allocation4 + $0x60] sm:$0xff]  ;;  %v4448_v48 = vcombine.low %v99_v32, %v107_v33  ;;  %v131_v49 = vld [vmem:[#allocation2 + $0x128] sm:$0xff]  ;;  %v149_v17 = vld [vmem:[#allocation2 + $0x1b8] sm:$0xff] }
  0x62   :  { %771 = vmatprep.mubr.bf16.mxu0 %v5407_v0  ;;  %642 = vmatprep.mubr.bf16.mxu1 %v5407_v0  ;;  %v4481_v59 = vcombine.high %v131_v49, %v139_v50  ;;  %v4520_v60 = vcombine.low %v1097_v46, %v1101_v47  ;;  %v1090_v21 = vld [vmem:[#allocation4 + $0x8] sm:$0xff] }
  0x63   :  { %v1098_v25 = vld [vmem:[#allocation4 + $0x48] sm:$0xff] }
  0x64   :  { %613 = vmatpush1.bf16.msra.mxu1 %v4456_v54  ;;  %742 = vmatpush1.bf16.msra.mxu0 %v4462_v55  ;;  %v1109_v54 = vld [vmem:[#allocation4 + $0xa0] sm:$0xff]  ;;  %v4521_v55 = vcombine.high %v1097_v46, %v1101_v47  ;;  %v1106_v29 = vld [vmem:[#allocation4 + $0x88] sm:$0xff] }
  0x65   :  { %614 = vmatprep.subr.bf16.mxu1 %v4473_v56  ;;  %743 = vmatprep.subr.bf16.mxu0 %v4479_v57  ;;  %v4464_v56 = vcombine.low %v115_v40, %v123_v41  ;;  %v147_v57 = vld [vmem:[#allocation2 + $0x1a8] sm:$0xff]  ;;  %v4528_v5 = vcombine.low %v1105_v53, %v1109_v54  ;;  %v1129_v46 = vld [vmem:[#allocation4 + $0x140] sm:$0xff] }
  0x66   :  { %v4497_v4 = vcombine.high %v147_v57, %v155_v58  ;;  %v1114_v33 = vld [vmem:[#allocation4 + $0xc8] sm:$0xff]  ;;  %v1133_v47 = vld [vmem:[#allocation4 + $0x160] sm:$0xff] }
  0x67   :  { %v1122_v40 = vld [vmem:[#allocation4 + $0x108] sm:$0xff] }
  0x68   :  { %615 = vmatpush1.bf16.msra.mxu1 %v4472_v62  ;;  %744 = vmatpush1.bf16.msra.mxu0 %v4478_v63  ;;  %v1117_v62 = vld [vmem:[#allocation4 + $0xe0] sm:$0xff]  ;;  %v4529_v63 = vcombine.high %v1105_v53, %v1109_v54 }
  0x69   :  { %616 = vmatprep.subr.bf16.mxu1 %v4489_v1  ;;  %745 = vmatprep.subr.bf16.mxu0 %v4495_v2  ;;  %v4480_v1 = vcombine.low %v131_v49, %v139_v50  ;;  %v101_v2 = vld [vmem:[#allocation2 + $0x38] sm:$0xff]  ;;  %v4537_v6 = vcombine.high %v1113_v61, %v1117_v62  ;;  %v4553_v49 = vcombine.high %v1129_v46, %v1133_v47  ;;  %v1134_v50 = vld [vmem:[#allocation4 + $0x168] sm:$0xff]  ;;  %v1137_v54 = vld [vmem:[#allocation4 + $0x180] sm:$0xff] }
  0x6a   :  { %v4452_v12 = vcombine.low %v101_v2, %v109_v3 }
  0x6c   :  { %617 = vmatpush1.bf16.msra.mxu1 %v4488_v7  ;;  %746 = vmatpush1.bf16.msra.mxu0 %v4494_v10  ;;  %v4496_v7 = vcombine.low %v147_v57, %v155_v58  ;;  %v4453_v10 = vcombine.high %v101_v2, %v109_v3  ;;  %v1142_v58 = vld [vmem:[#allocation4 + $0x1a8] sm:$0xff] }
  0x6d   :  { %696 = vmatprep.subr.bf16.mxu1 %v4445_v11  ;;  %825 = vmatprep.subr.bf16.mxu0 %v4451_v14  ;;  %v4536_v11 = vcombine.low %v1113_v61, %v1117_v62  ;;  %v141_v14 = vld [vmem:[#allocation2 + $0x178] sm:$0xff]  ;;  %v1145_v62 = vld [vmem:[#allocation4 + $0x1c0] sm:$0xff] }
  0x6e   :  { %v4484_v20 = vcombine.low %v133_v13, %v141_v14 }
  0x6f   :  { %4503 = vmatmul.mubr.msk.bf16.vlgmr.msra.gmra.mrb[4].mxu1 %vm563_vm0, %v5529_v43  ;;  %4506 = vmatmul.mubr.msk.bf16.vlgmr.msra.gmra.mrb[4].mxu0 %vm563_vm0, %v5529_v43 }
  0x70   :  { %697 = vmatpush1.bf16.msra.mxu1 %v4444_v15  ;;  %826 = vmatpush1.bf16.msra.mxu0 %v4450_v18  ;;  %v4469_v15 = vcombine.high %v117_v8, %v125_v9  ;;  %v157_v18 = vld [vmem:[#allocation2 + $0x1f8] sm:$0xff]  ;;  %v1157_v8 = vld [vmem:[#allocation4 + $0x220] sm:$0xff]  ;;  %v1154_v9 = vld [vmem:[#allocation4 + $0x208] sm:$0xff] }
  0x71   :  { %698 = vmatprep.subr.bf16.mxu1 %v4461_v19  ;;  %827 = vmatprep.subr.bf16.mxu0 %v4467_v22  ;;  %v4485_v19 = vcombine.high %v133_v13, %v141_v14  ;;  %v1094_v22 = vld [vmem:[#allocation4 + $0x28] sm:$0xff]  ;;  %v4500_v24 = vcombine.low %v149_v17, %v157_v18 }
  0x72   :  { %857 = vmatprep.mubr.bf16.mxu0 %v5407_v0  ;;  %728 = vmatprep.mubr.bf16.mxu1 %v5407_v0  ;;  %v4514_v28 = vcombine.low %v1090_v21, %v1094_v22 }
  0x74   :  { %699 = vmatpush1.bf16.msra.mxu1 %v4460_v23  ;;  %828 = vmatpush1.bf16.msra.mxu0 %v4466_v26  ;;  %v4501_v23 = vcombine.high %v149_v17, %v157_v18  ;;  %v1102_v26 = vld [vmem:[#allocation4 + $0x68] sm:$0xff] }
  0x75   :  { %700 = vmatprep.subr.bf16.mxu1 %v4477_v27  ;;  %829 = vmatprep.subr.bf16.mxu0 %v4483_v30  ;;  %v4515_v27 = vcombine.high %v1090_v21, %v1094_v22  ;;  %v1110_v30 = vld [vmem:[#allocation4 + $0xa8] sm:$0xff] }
  0x76   :  { %v4531_v32 = vcombine.high %v1106_v29, %v1110_v30  ;;  %v1162_v17 = vld [vmem:[#allocation4 + $0x248] sm:$0xff] }
  0x78   :  { %701 = vmatpush1.bf16.msra.mxu1 %v4476_v31  ;;  %830 = vmatpush1.bf16.msra.mxu0 %v4482_v34  ;;  %v4522_v31 = vcombine.low %v1098_v25, %v1102_v26  ;;  %v1118_v34 = vld [vmem:[#allocation4 + $0xe8] sm:$0xff] }
  0x79   :  { %702 = vmatprep.subr.bf16.mxu1 %v4493_v35  ;;  %831 = vmatprep.subr.bf16.mxu0 %v4499_v38  ;;  %v4530_v35 = vcombine.low %v1106_v29, %v1110_v30  ;;  %v4539_v36 = vcombine.high %v1114_v33, %v1118_v34  ;;  %v4538_v37 = vcombine.low %v1114_v33, %v1118_v34  ;;  %v1121_v38 = vld [vmem:[#allocation4 + $0x100] sm:$0xff] }
  0x7c   :  { %703 = vmatpush1.bf16.msra.mxu1 %v4492_v39  ;;  %832 = vmatpush1.bf16.msra.mxu0 %v4498_v42  ;;  %v1125_v39 = vld [vmem:[#allocation4 + $0x120] sm:$0xff]  ;;  %v1126_v42 = vld [vmem:[#allocation4 + $0x128] sm:$0xff] }
  0x7d   :  { %782 = vmatprep.subr.bf16.mxu1 %v4449_v44  ;;  %2667 = vmatprep.subr.bf16.mxu0 %v4513_v45  ;;  %v4545_v41 = vcombine.high %v1121_v38, %v1125_v39  ;;  %v4546_v44 = vcombine.low %v1122_v40, %v1126_v42  ;;  %v4547_v45 = vcombine.high %v1122_v40, %v1126_v42  ;;  %v1186_v40 = vld [vmem:[#allocation4 + $0x308] sm:$0xff] }
  0x7e   :  { %v1190_v42 = vld [vmem:[#allocation4 + $0x328] sm:$0xff] }
  0x7f   :  { %4505 = vmatmul.mubr.msk.bf16.vlgmr.msra.gmra.mrb[8].mxu1 %vm563_vm0, %v5529_v43  ;;  %4508 = vmatmul.mubr.msk.bf16.vlgmr.msra.gmra.mrb[8].mxu0 %vm563_vm0, %v5529_v43 }
  0x80   :  { %783 = vmatpush1.bf16.msra.mxu1 %v4448_v48  ;;  %814 = vmatprep.mubr.bf16.mxu1 %v5407_v0  ;;  %v1130_v48 = vld [vmem:[#allocation4 + $0x148] sm:$0xff] }
  0x81   :  { %784 = vmatprep.subr.bf16.mxu1 %v4465_v51  ;;  %2668 = vmatpush1.bf16.msra.mxu0 %v4512_v52  ;;  %v4552_v51 = vcombine.low %v1129_v46, %v1133_v47  ;;  %v4554_v52 = vcombine.low %v1130_v48, %v1134_v50  ;;  %v4555_v53 = vcombine.high %v1130_v48, %v1134_v50  ;;  %v1193_v46 = vld [vmem:[#allocation4 + $0x340] sm:$0xff]  ;;  %v1194_v48 = vld [vmem:[#allocation4 + $0x348] sm:$0xff] }
  0x82   :  { %2669 = vmatprep.subr.bf16.mxu0 %v4521_v55  ;;  %v1141_v55 = vld [vmem:[#allocation4 + $0x1a0] sm:$0xff]  ;;  %v1198_v50 = vld [vmem:[#allocation4 + $0x368] sm:$0xff] }
  0x83   :  { %v4561_v57 = vcombine.high %v1137_v54, %v1141_v55  ;;  %v1197_v47 = vld [vmem:[#allocation4 + $0x360] sm:$0xff] }
  0x84   :  { %785 = vmatpush1.bf16.msra.mxu1 %v4464_v56  ;;  %v1138_v56 = vld [vmem:[#allocation4 + $0x188] sm:$0xff] }
  0x85   :  { %786 = vmatprep.subr.bf16.mxu1 %v4481_v59  ;;  %2670 = vmatpush1.bf16.msra.mxu0 %v4520_v60  ;;  %v4560_v59 = vcombine.low %v1137_v54, %v1141_v55  ;;  %v4562_v60 = vcombine.low %v1138_v56, %v1142_v58  ;;  %v4563_v61 = vcombine.high %v1138_v56, %v1142_v58  ;;  %v1201_v54 = vld [vmem:[#allocation4 + $0x380] sm:$0xff]  ;;  %v1202_v56 = vld [vmem:[#allocation4 + $0x388] sm:$0xff] }
  0x86   :  { %2671 = vmatprep.subr.bf16.mxu0 %v4529_v63  ;;  %v1149_v63 = vld [vmem:[#allocation4 + $0x1e0] sm:$0xff]  ;;  %v1206_v58 = vld [vmem:[#allocation4 + $0x3a8] sm:$0xff] }
  0x87   :  { %v4568_v2 = vcombine.low %v1145_v62, %v1149_v63  ;;  %v4569_v3 = vcombine.high %v1145_v62, %v1149_v63  ;;  %v1205_v55 = vld [vmem:[#allocation4 + $0x3a0] sm:$0xff] }
  0x88   :  { %787 = vmatpush1.bf16.msra.mxu1 %v4480_v1  ;;  %v1146_v1 = vld [vmem:[#allocation4 + $0x1c8] sm:$0xff]  ;;  %v1209_v62 = vld [vmem:[#allocation4 + $0x3c0] sm:$0xff] }
  0x89   :  { %788 = vmatprep.subr.bf16.mxu1 %v4497_v4  ;;  %2672 = vmatpush1.bf16.msra.mxu0 %v4528_v5  ;;  %v1150_v4 = vld [vmem:[#allocation4 + $0x1e8] sm:$0xff]  ;;  %v1213_v63 = vld [vmem:[#allocation4 + $0x3e0] sm:$0xff] }
  0x8a   :  { %2673 = vmatprep.subr.bf16.mxu0 %v4537_v6  ;;  %v4570_v5 = vcombine.low %v1146_v1, %v1150_v4  ;;  %v4571_v6 = vcombine.high %v1146_v1, %v1150_v4  ;;  %v1210_v1 = vld [vmem:[#allocation4 + $0x3c8] sm:$0xff]  ;;  %v4632_v4 = vcombine.low %v1209_v62, %v1213_v63 }
  0x8c   :  { %789 = vmatpush1.bf16.msra.mxu1 %v4496_v7  ;;  %v1153_v7 = vld [vmem:[#allocation4 + $0x200] sm:$0xff] }
  0x8d   :  { %868 = vmatprep.subr.bf16.mxu1 %v4453_v10  ;;  %2674 = vmatpush1.bf16.msra.mxu0 %v4536_v11  ;;  %v4577_v10 = vcombine.high %v1153_v7, %v1157_v8  ;;  %v1158_v11 = vld [vmem:[#allocation4 + $0x228] sm:$0xff] }
  0x8e   :  { %2675 = vmatprep.subr.bf16.mxu0 %v4545_v41  ;;  %v4578_v13 = vcombine.low %v1154_v9, %v1158_v11  ;;  %v4579_v14 = vcombine.high %v1154_v9, %v1158_v11  ;;  %v5557_v9 = vld [vmem:[#allocation4 + $0x408] sm:$0xff] }
  0x8f   :  { %4507 = vmatmul.mubr.msk.bf16.vlgmr.msra.gmra.mrb[12].mxu1 %vm563_vm0, %v5529_v43 }
  0x90   :  { %869 = vmatpush1.bf16.msra.mxu1 %v4452_v12  ;;  %900 = vmatprep.mubr.bf16.mxu1 %v5407_v0  ;;  %v4523_v0 = vcombine.high %v1098_v25, %v1102_v26  ;;  %v4576_v12 = vcombine.low %v1153_v7, %v1157_v8  ;;  %v1170_v25 = vld [vmem:[#allocation4 + $0x288] sm:$0xff]  ;;  %v5553_v7 = vld [vmem:[#allocation4 + $0x400] sm:$0xff] }
  0x91   :  { %870 = vmatprep.subr.bf16.mxu1 %v4469_v15  ;;  %v1161_v15 = vld [vmem:[#allocation4 + $0x240] sm:$0xff] }
  0x92   :  { %v5555_v8 = vld [vmem:[#allocation4 + $0x420] sm:$0xff] }
  0x94   :  { %871 = vmatpush1.bf16.msra.mxu1 %v4468_v16  ;;  %v1165_v16 = vld [vmem:[#allocation4 + $0x260] sm:$0xff] }
  0x95   :  { %872 = vmatprep.subr.bf16.mxu1 %v4485_v19  ;;  %v4585_v18 = vcombine.high %v1161_v15, %v1165_v16  ;;  %v1166_v19 = vld [vmem:[#allocation4 + $0x268] sm:$0xff] }
  0x96   :  { %v4586_v21 = vcombine.low %v1162_v17, %v1166_v19  ;;  %v4587_v22 = vcombine.high %v1162_v17, %v1166_v19 }
  0x98   :  { %873 = vmatpush1.bf16.msra.mxu1 %v4484_v20  ;;  %v4584_v20 = vcombine.low %v1161_v15, %v1165_v16  ;;  %v163_v15 = vlaneseq }
  0x99   :  { %874 = vmatprep.subr.bf16.mxu1 %v4501_v23  ;;  %v1169_v23 = vld [vmem:[#allocation4 + $0x280] sm:$0xff] }
  0x9a   :  { %v5569_v16 = vshrl.u32 %v163_v15, 7 }
  0x9c   :  { %875 = vmatpush1.bf16.msra.mxu1 %v4500_v24  ;;  %v1173_v24 = vld [vmem:[#allocation4 + $0x2a0] sm:$0xff]  ;;  %v5572_v17 = vsub.s32 0, %v5569_v16  ;;  %v5580_v19 = vsub.s32 4, %v5569_v16 }
  0x9d   :  { %2753 = vmatprep.subr.bf16.mxu1 %v4515_v27  ;;  %v4593_v26 = vcombine.high %v1169_v23, %v1173_v24  ;;  %v1174_v27 = vld [vmem:[#allocation4 + $0x2a8] sm:$0xff] }
  0x9e   :  { %v4594_v29 = vcombine.low %v1170_v25, %v1174_v27  ;;  %v4595_v30 = vcombine.high %v1170_v25, %v1174_v27 }
  0x9f   :  { %4509 = vmatmul.mubr.msk.bf16.vlgmr.msra.gmra.mrb[16].mxu1 %vm563_vm0, %v5529_v43  ;;  %v4544_v43 = vcombine.low %v1121_v38, %v1125_v39  ;;  %v1185_v38 = vld [vmem:[#allocation4 + $0x300] sm:$0xff] }
  0xa0   :  { %2754 = vmatpush1.bf16.msra.mxu1 %v4514_v28  ;;  %v4592_v28 = vcombine.low %v1169_v23, %v1173_v24  ;;  %v1189_v39 = vld [vmem:[#allocation4 + $0x320] sm:$0xff] }
  0xa1   :  { %2755 = vmatprep.subr.bf16.mxu1 %v4523_v0  ;;  %2676 = vmatpush1.bf16.msra.mxu0 %v4544_v43  ;;  %v1177_v0 = vld [vmem:[#allocation4 + $0x2c0] sm:$0xff]  ;;  %v4609_v41 = vcombine.high %v1185_v38, %v1189_v39  ;;  %v4608_v43 = vcombine.low %v1185_v38, %v1189_v39 }
  0xa2   :  { %2677 = vmatprep.subr.bf16.mxu0 %v4553_v49  ;;  %v4617_v49 = vcombine.high %v1193_v46, %v1197_v47  ;;  %v5593_v23 = vld [vmem:[%s5983_s2 + $0x1] ss:$2 sm:$0xff] }
  0xa4   :  { %2756 = vmatpush1.bf16.msra.mxu1 %v4522_v31  ;;  %v1181_v31 = vld [vmem:[#allocation4 + $0x2e0] sm:$0xff] }
  0xa5   :  { %2757 = vmatprep.subr.bf16.mxu1 %v4531_v32  ;;  %2678 = vmatpush1.bf16.msra.mxu0 %v4552_v51  ;;  %v1178_v32 = vld [vmem:[#allocation4 + $0x2c8] sm:$0xff]  ;;  %v4600_v33 = vcombine.low %v1177_v0, %v1181_v31  ;;  %v4601_v34 = vcombine.high %v1177_v0, %v1181_v31  ;;  %v4616_v51 = vcombine.low %v1193_v46, %v1197_v47 }
  0xa6   :  { %2679 = vmatprep.subr.bf16.mxu0 %v4561_v57  ;;  %v4625_v57 = vcombine.high %v1201_v54, %v1205_v55 }
  0xa8   :  { %2758 = vmatpush1.bf16.msra.mxu1 %v4530_v35  ;;  %v1182_v35 = vld [vmem:[#allocation4 + $0x2e8] sm:$0xff] }
  0xa9   :  { %2759 = vmatprep.subr.bf16.mxu1 %v4539_v36  ;;  %2680 = vmatpush1.bf16.msra.mxu0 %v4560_v59  ;;  %v4602_v36 = vcombine.low %v1178_v32, %v1182_v35  ;;  %v4624_v59 = vcombine.low %v1201_v54, %v1205_v55 }
  0xaa   :  { %2681 = vmatprep.subr.bf16.mxu0 %v4569_v3  ;;  %v1214_v3 = vld [vmem:[#allocation4 + $0x3e8] sm:$0xff] }
  0xac   :  { %2760 = vmatpush1.bf16.msra.mxu1 %v4538_v37  ;;  %v4603_v37 = vcombine.high %v1178_v32, %v1182_v35  ;;  %v968_v32 = vrot.slane %v5593_v23, %v5580_v19 }
  0xad   :  { %2761 = vmatprep.subr.bf16.mxu1 %v4547_v45  ;;  %2682 = vmatpush1.bf16.msra.mxu0 %v4568_v2  ;;  %v4611_v45 = vcombine.high %v1186_v40, %v1190_v42  ;;  %v4633_v2 = vcombine.high %v1209_v62, %v1213_v63 }
  0xae   :  { %2683 = vmatprep.subr.bf16.mxu0 %v4577_v10  ;;  %v5559_v10 = vld [vmem:[#allocation4 + $0x428] sm:$0xff] }
  0xb0   :  { %2762 = vmatpush1.bf16.msra.mxu1 %v4546_v44  ;;  %v4610_v44 = vcombine.low %v1186_v40, %v1190_v42 }
  0xb1   :  { %2763 = vmatprep.subr.bf16.mxu1 %v4555_v53  ;;  %2684 = vmatpush1.bf16.msra.mxu0 %v4576_v12  ;;  %v4619_v53 = vcombine.high %v1194_v48, %v1198_v50  ;;  %v4641_v12 = vcombine.high %v5553_v7, %v5555_v8 }
  0xb2   :  { %2685 = vmatprep.subr.bf16.mxu0 %v4585_v18  ;;  %v5577_v18 = vld [vmem:[%s5983_s2] ss:$2 sm:$0xff] }
  0xb3   :  { %v182_v24 = vrot.slane %v5577_v18, %v5580_v19 }
  0xb4   :  { %2764 = vmatpush1.bf16.msra.mxu1 %v4554_v52  ;;  %v4618_v52 = vcombine.low %v1194_v48, %v1198_v50 }
  0xb5   :  { %2765 = vmatprep.subr.bf16.mxu1 %v4563_v61  ;;  %2686 = vmatpush1.bf16.msra.mxu0 %v4584_v20  ;;  %v4627_v61 = vcombine.high %v1202_v56, %v1206_v58  ;;  %v5583_v20 = vsub.s32 1, %v5569_v16 }
  0xb6   :  { %2687 = vmatprep.subr.bf16.mxu0 %v4593_v26 }
  0xb7   :  { %v170_v25 = vrot.slane %v5577_v18, %v5583_v20 }
  0xb8   :  { %2766 = vmatpush1.bf16.msra.mxu1 %v4562_v60  ;;  %v4626_v60 = vcombine.low %v1202_v56, %v1206_v58 }
  0xb9   :  { %2767 = vmatprep.subr.bf16.mxu1 %v4571_v6  ;;  %2688 = vmatpush1.bf16.msra.mxu0 %v4592_v28  ;;  %v4635_v6 = vcombine.high %v1210_v1, %v1214_v3 }
  0xba   :  { %2689 = vmatprep.subr.bf16.mxu0 %v4601_v34  ;;  %v956_v34 = vrot.slane %v5593_v23, %v5583_v20 }
  0xbc   :  { %2768 = vmatpush1.bf16.msra.mxu1 %v4570_v5  ;;  %v4634_v5 = vcombine.low %v1210_v1, %v1214_v3  ;;  %v5630_v1 = vsub.s32 2, %v5569_v16 }
  0xbd   :  { %2769 = vmatprep.subr.bf16.mxu1 %v4579_v14  ;;  %2690 = vmatpush1.bf16.msra.mxu0 %v4600_v33  ;;  %v4643_v14 = vcombine.high %v5557_v9, %v5559_v10 }
  0xbe   :  { %2691 = vmatprep.subr.bf16.mxu0 %v4609_v41  ;;  %v960_v15 = vrot.slane %v5593_v23, %v5630_v1 }
  0xc0   :  { %2770 = vmatpush1.bf16.msra.mxu1 %v4578_v13 }
  0xc1   :  { %2771 = vmatprep.subr.bf16.mxu1 %v4587_v22  ;;  %2692 = vmatpush1.bf16.msra.mxu0 %v4608_v43  ;;  %v166_v22 = vrot.slane %v5577_v18, %v5572_v17 }
  0xc2   :  { %2693 = vmatprep.subr.bf16.mxu0 %v4617_v49 }
  0xc4   :  { %2772 = vmatpush1.bf16.msra.mxu1 %v4586_v21  ;;  %v5586_v21 = vsub.s32 5, %v5569_v16 }
  0xc5   :  { %2773 = vmatprep.subr.bf16.mxu1 %v4595_v30  ;;  %2694 = vmatpush1.bf16.msra.mxu0 %v4616_v51 }
  0xc6   :  { %2695 = vmatprep.subr.bf16.mxu0 %v4625_v57  ;;  %v186_v26 = vrot.slane %v5577_v18, %v5586_v21  ;;  %v972_v39 = vrot.slane %v5593_v23, %v5586_v21 }
  0xc8   :  { %2774 = vmatpush1.bf16.msra.mxu1 %v4594_v29  ;;  %v952_v29 = vrot.slane %v5593_v23, %v5572_v17 }
  0xc9   :  { %2775 = vmatprep.subr.bf16.mxu1 %v4603_v37  ;;  %2696 = vmatpush1.bf16.msra.mxu0 %v4624_v59 }
  0xca   :  { %2697 = vmatprep.subr.bf16.mxu0 %v4633_v2 }
  0xcc   :  { %2776 = vmatpush1.bf16.msra.mxu1 %v4602_v36 }
  0xcd   :  { %2777 = vmatprep.subr.bf16.mxu1 %v4611_v45  ;;  %2698 = vmatpush1.bf16.msra.mxu0 %v4632_v4  ;;  %v174_v4 = vrot.slane %v5577_v18, %v5630_v1 }
  0xce   :  { %2710 = vmatprep.subr.bf16.mxu0 %v4641_v12 }
  0xd0   :  { %2778 = vmatpush1.bf16.msra.mxu1 %v4610_v44 }
  0xd1   :  { %2779 = vmatprep.subr.bf16.mxu1 %v4619_v53 }
  0xd4   :  { %2780 = vmatpush1.bf16.msra.mxu1 %v4618_v52 }
  0xd5   :  { %2781 = vmatprep.subr.bf16.mxu1 %v4627_v61 }
  0xd8   :  { %2782 = vmatpush1.bf16.msra.mxu1 %v4626_v60 }
  0xd9   :  { %2783 = vmatprep.subr.bf16.mxu1 %v4635_v6  ;;  %v5641_v6 = vld [vmem:[%s5983_s2 + $0x10] ss:$2 sm:$0xff] }
  0xdc   :  { %2784 = vmatpush1.bf16.msra.mxu1 %v4634_v5 }
  0xdd   :  { %2796 = vmatprep.subr.bf16.mxu1 %v4643_v14 }
 0x132   :  { %v601_v27 = vpop.f32.mrb[0].mxu1  ;;  %v687_v30 = vpop.f32.mrb[0].mxu0 }
 0x133   :  { %v602_v28 = vadd.f32 %v601_v27, %v166_v22  ;;  %v603_v0 = vpop.f32.mrb[1].mxu1  ;;  %v688_v31 = vadd.f32 %v687_v30, %v182_v24  ;;  %v689_v35 = vpop.f32.mrb[1].mxu0 }
 0x134   :  { %v604_v33 = vadd.f32 %v603_v0, %v170_v25  ;;  %v605_v36 = vpop.f32.mrb[2].mxu1  ;;  %v690_v38 = vadd.f32 %v689_v35, %v186_v26  ;;  %v691_v41 = vpop.f32.mrb[2].mxu0  ;;  %v198_v0 = vrot.slane %v5641_v6, %v5572_v17 }
 0x135   :  { %v911_v37 = vmax.f32 %v602_v28, 0.0  ;;  %v606_v40 = vadd.f32 %v605_v36, %v166_v22  ;;  %v607_v42 = vpop.f32.mrb[3].mxu1  ;;  %v915_v43 = vmax.f32 %v688_v31, 0.0  ;;  %v692_v45 = vadd.f32 %v691_v41, %v182_v24  ;;  %v693_v47 = vpop.f32.mrb[3].mxu0 }
 0x136   :  { %v912_v44 = vmax.f32 %v604_v33, 0.0  ;;  %v608_v46 = vadd.f32 %v607_v42, %v170_v25  ;;  %v916_v49 = vmax.f32 %v690_v38, 0.0  ;;  %v694_v51 = vadd.f32 %v693_v47, %v186_v26  ;;  %v5661_v38 = vld [vmem:[%s5983_s2 + $0x11] ss:$2 sm:$0xff] }
 0x137   :  { %v5609_v48 = vadd.f32 %v952_v29, %v911_v37  ;;  %v927_v50 = vmax.f32 %v606_v40, 0.0  ;;  %v5611_v52 = vadd.f32 %v968_v32, %v915_v43  ;;  %v931_v54 = vmax.f32 %v692_v45, 0.0 }
 0x138   :  { %v5613_v53 = vadd.f32 %v956_v34, %v912_v44  ;;  %v928_v55 = vmax.f32 %v608_v46, 0.0  ;;  %v5615_v56 = vadd.f32 %v972_v39, %v916_v49  ;;  %v932_v58 = vmax.f32 %v694_v51, 0.0 }
 0x139   :  { %v5617_v57 = vadd.f32 %v952_v29, %v927_v50  ;;  %v1061_v59 = vmax.f32 %v5609_v48, %v5611_v52  ;;  %v5621_v60 = vadd.f32 %v968_v32, %v931_v54  ;;  %v5646_v22 = vsub.s32 3, %v5569_v16  ;;  %v1229_v48 = vld [vmem:[#allocation4 + $0x460] sm:$0xff]  ;;  %v1226_v52 = vld [vmem:[#allocation4 + $0x448] sm:$0xff] }
 0x13a   :  { %v5623_v61 = vadd.f32 %v956_v34, %v928_v55  ;;  %v5627_v63 = vadd.f32 %v972_v39, %v932_v58  ;;  %v202_v32 = vrot.slane %v5641_v6, %v5583_v20  ;;  %v5664_v41 = vsub.s32 6, %v5569_v16 }
 0x13b   :  { %v178_v34 = vrot.slane %v5577_v18, %v5646_v22  ;;  %v5667_v43 = vsub.s32 7, %v5569_v16  ;;  %v984_v45 = vrot.slane %v5661_v38, %v5572_v17  ;;  %v988_v46 = vrot.slane %v5661_v38, %v5583_v20 }
 0x13c   :  { %v964_v47 = vrot.slane %v5593_v23, %v5646_v22  ;;  %v190_v54 = vrot.slane %v5577_v18, %v5664_v41  ;;  %v214_v16 = vrot.slane %v5641_v6, %v5580_v19 }
 0x142   :  { %v644_v5 = vpop.f32.mrb[4].mxu1  ;;  %v773_v12 = vpop.f32.mrb[4].mxu0 }
 0x143   :  { %v645_v14 = vadd.f32 %v644_v5, %v174_v4  ;;  %v646_v24 = vpop.f32.mrb[5].mxu1  ;;  %v775_v25 = vpop.f32.mrb[5].mxu0  ;;  %v774_v37 = vadd.f32 %v773_v12, %v198_v0  ;;  %v218_v5 = vrot.slane %v5641_v6, %v5586_v21 }
 0x144   :  { %v648_v26 = vpop.f32.mrb[6].mxu1  ;;  %v777_v27 = vpop.f32.mrb[6].mxu0  ;;  %v776_v39 = vadd.f32 %v775_v25, %v202_v32  ;;  %v647_v40 = vadd.f32 %v646_v24, %v178_v34  ;;  %v976_v25 = vrot.slane %v5593_v23, %v5664_v41 }
 0x145   :  { %v913_v28 = vmax.f32 %v645_v14, 0.0  ;;  %v649_v29 = vadd.f32 %v648_v26, %v174_v4  ;;  %v650_v30 = vpop.f32.mrb[7].mxu1  ;;  %v779_v31 = vpop.f32.mrb[7].mxu0  ;;  %v778_v42 = vadd.f32 %v777_v27, %v198_v0  ;;  %v919_v49 = vmax.f32 %v774_v37, 0.0 }
 0x146   :  { %v651_v44 = vadd.f32 %v650_v30, %v178_v34  ;;  %v920_v50 = vmax.f32 %v776_v39, 0.0  ;;  %v914_v51 = vmax.f32 %v647_v40, 0.0  ;;  %v780_v58 = vadd.f32 %v779_v31, %v202_v32 }
 0x147   :  { %v5652_v33 = vadd.f32 %v960_v15, %v913_v28  ;;  %v929_v35 = vmax.f32 %v649_v29, 0.0  ;;  %v935_v55 = vmax.f32 %v778_v42, 0.0  ;;  %v194_v4 = vrot.slane %v5577_v18, %v5667_v43 }
 0x148   :  { %v930_v12 = vmax.f32 %v651_v44, 0.0  ;;  %v1000_v14 = vrot.slane %v5661_v38, %v5580_v19  ;;  %v980_v26 = vrot.slane %v5593_v23, %v5667_v43  ;;  %v1037_v27 = vadd.f32 %v984_v45, %v919_v49 }
 0x149   :  { %v5656_v36 = vadd.f32 %v960_v15, %v929_v35  ;;  %v1004_v15 = vrot.slane %v5661_v38, %v5586_v21  ;;  %v1038_v28 = vadd.f32 %v988_v46, %v920_v50  ;;  %v5691_v29 = vadd.f32 %v964_v47, %v914_v51 }
 0x14a   :  { %v1053_v31 = vadd.f32 %v984_v45, %v935_v55  ;;  %v936_v32 = vmax.f32 %v780_v58, 0.0  ;;  %v5693_v44 = vadd.f32 %v964_v47, %v930_v12 }
 0x152   :  { %v730_v24 = vpop.f32.mrb[8].mxu1  ;;  %v859_v18 = vpop.f32.mrb[8].mxu0 }
 0x153   :  { %v731_v30 = vadd.f32 %v730_v24, %v190_v54  ;;  %v732_v0 = vpop.f32.mrb[9].mxu1  ;;  %v860_v34 = vadd.f32 %v859_v18, %v214_v16  ;;  %v861_v35 = vpop.f32.mrb[9].mxu0 }
 0x154   :  { %v733_v37 = vadd.f32 %v732_v0, %v194_v4  ;;  %v734_v39 = vpop.f32.mrb[10].mxu1  ;;  %v862_v40 = vadd.f32 %v861_v35, %v218_v5  ;;  %v863_v42 = vpop.f32.mrb[10].mxu0 }
 0x155   :  { %v917_v13 = vmax.f32 %v731_v30, 0.0  ;;  %v735_v11 = vadd.f32 %v734_v39, %v190_v54  ;;  %v736_v23 = vpop.f32.mrb[11].mxu1  ;;  %v923_v49 = vmax.f32 %v860_v34, 0.0  ;;  %v864_v50 = vadd.f32 %v863_v42, %v214_v16  ;;  %v865_v3 = vpop.f32.mrb[11].mxu0 }
 0x156   :  { %v918_v51 = vmax.f32 %v733_v37, 0.0  ;;  %v737_v2 = vadd.f32 %v736_v23, %v194_v4  ;;  %v924_v24 = vmax.f32 %v862_v40, 0.0  ;;  %v866_v62 = vadd.f32 %v865_v3, %v218_v5  ;;  %v1233_v23 = vld [vmem:[#allocation4 + $0x480] sm:$0xff] }
 0x157   :  { %v5695_v45 = vadd.f32 %v976_v25, %v917_v13  ;;  %v933_v55 = vmax.f32 %v735_v11, 0.0  ;;  %v1041_v58 = vadd.f32 %v1000_v14, %v923_v49  ;;  %v939_v18 = vmax.f32 %v864_v50, 0.0 }
 0x158   :  { %v5697_v0 = vadd.f32 %v980_v26, %v918_v51  ;;  %v934_v35 = vmax.f32 %v737_v2, 0.0  ;;  %v1042_v47 = vadd.f32 %v1004_v15, %v924_v24  ;;  %v940_v12 = vmax.f32 %v866_v62, 0.0 }
 0x159   :  { %v1063_v54 = vmax.f32 %v5652_v33, %v5695_v45  ;;  %v5701_v30 = vadd.f32 %v976_v25, %v933_v55  ;;  %v1069_v16 = vmax.f32 %v1037_v27, %v1041_v58  ;;  %v1057_v34 = vadd.f32 %v1000_v14, %v939_v18 }
 0x15a   :  { %v1064_v3 = vmax.f32 %v5691_v29, %v5697_v0  ;;  %v5705_v13 = vadd.f32 %v980_v26, %v934_v35  ;;  %v1054_v11 = vadd.f32 %v988_v46, %v936_v32  ;;  %v1070_v4 = vmax.f32 %v1038_v28, %v1042_v47  ;;  %v1225_v28 = vld [vmem:[#allocation4 + $0x440] sm:$0xff] }
 0x15b   :  { %v1058_v5 = vadd.f32 %v1004_v15, %v940_v12  ;;  %v1067_v2 = vmax.f32 %v5656_v36, %v5701_v30  ;;  %v1077_v62 = vmax.f32 %v1061_v59, %v1069_v16  ;;  %v1073_v37 = vmax.f32 %v1053_v31, %v1057_v34  ;;  %v1230_v59 = vld [vmem:[#allocation4 + $0x468] sm:$0xff]  ;;  %v1289_v29 = vld [vmem:[#allocation4 + $0x640] sm:$0xff] }
 0x15c   :  { %v1068_v25 = vmax.f32 %v5693_v44, %v5705_v13  ;;  %v5993_v14 = vmax.f32 %v5613_v53, %v5615_v56  ;;  %v5994_v46 = vmax.f32 %v5617_v57, %v5621_v60  ;;  %v5995_v32 = vmax.f32 %v5623_v61, %v5627_v63  ;;  %v1237_v60 = vld [vmem:[#allocation4 + $0x4a0] sm:$0xff]  ;;  %v1234_v61 = vld [vmem:[#allocation4 + $0x488] sm:$0xff] }
 0x15d   :  { %v1074_v26 = vmax.f32 %v1054_v11, %v1058_v5  ;;  %v206_v31 = vrot.slane %v5641_v6, %v5630_v1  ;;  %v4649_v56 = vcombine.high %v1225_v28, %v1229_v48  ;;  %v4651_v42 = vcombine.high %v1226_v52, %v1230_v59  ;;  %v1238_v63 = vld [vmem:[#allocation4 + $0x4a8] sm:$0xff] }
 0x15e   :  { %v1078_v27 = vmax.f32 %v5993_v14, %v1070_v4  ;;  %v1081_v15 = vmax.f32 %v5994_v46, %v1073_v37  ;;  %v992_v50 = vrot.slane %v5661_v38, %v5630_v1  ;;  %v5996_v55 = vcombine.low %v5553_v7, %v5555_v8  ;;  %v1241_v4 = vld [vmem:[#allocation4 + $0x4c0] sm:$0xff]  ;;  %v1242_v37 = vld [vmem:[#allocation4 + $0x4c8] sm:$0xff] }
 0x15f   :  { %v1082_v39 = vmax.f32 %v5995_v32, %v1074_v26  ;;  %v5997_v58 = vcombine.low %v5557_v9, %v5559_v10  ;;  %v4648_v18 = vcombine.low %v1225_v28, %v1229_v48  ;;  %v4650_v35 = vcombine.low %v1226_v52, %v1230_v59  ;;  %v1246_v7 = vld [vmem:[#allocation4 + $0x4e8] sm:$0xff]  ;;  %v1253_v28 = vld [vmem:[#allocation4 + $0x520] sm:$0xff] }
 0x160   :  { %v5725_v40 = vpack.c.bf16 %v1081_v15, %v1077_v62  ;;  %v4657_v34 = vcombine.high %v1233_v23, %v1237_v60  ;;  %v4659_v11 = vcombine.high %v1234_v61, %v1238_v63  ;;  %v1245_v62 = vld [vmem:[#allocation4 + $0x4e0] sm:$0xff]  ;;  %v4656_v9 = vcombine.low %v1233_v23, %v1237_v60  ;;  %v1250_v32 = vld [vmem:[#allocation4 + $0x508] sm:$0xff] }
 0x161   :  { %v5727_v53 = vpack.c.bf16 %v1082_v39, %v1078_v27  ;;  %v4658_v10 = vcombine.low %v1234_v61, %v1238_v63  ;;  %v4665_v27 = vcombine.high %v1241_v4, %v1245_v62  ;;  %v4667_v26 = vcombine.high %v1242_v37, %v1246_v7  ;;  %v1249_v15 = vld [vmem:[#allocation4 + $0x500] sm:$0xff]  ;;  %v1254_v39 = vld [vmem:[#allocation4 + $0x528] sm:$0xff] }
 0x162   :  { %v816_v57 = vpop.f32.mrb[12].mxu1  ;;  %v210_v46 = vrot.slane %v5641_v6, %v5646_v22  ;;  %v4664_v48 = vcombine.low %v1241_v4, %v1245_v62  ;;  %v4666_v52 = vcombine.low %v1242_v37, %v1246_v7  ;;  %v222_v23 = vrot.slane %v5641_v6, %v5664_v41  ;;  %v1258_v60 = vld [vmem:[#allocation4 + $0x548] sm:$0xff] }
 0x163   :  { %2699 = vmatprep.mubr.bf16.mxu0 %v5727_v53  ;;  %2785 = vmatprep.mubr.bf16.mxu1 %v5727_v53  ;;  %v817_v49 = vadd.f32 %v816_v57, %v206_v31  ;;  %v818_v51 = vpop.f32.mrb[13].mxu1  ;;  %v1261_v57 = vld [vmem:[#allocation4 + $0x560] sm:$0xff]  ;;  %v1262_v61 = vld [vmem:[#allocation4 + $0x568] sm:$0xff]  ;;  %v1012_v7 = vrot.slane %v5661_v38, %v5667_v43 }
 0x164   :  { %2700 = vmatmul.mubr.bf16.vlgmr.msra.gmra.mrb[12].mxu0 %v5725_v40  ;;  %2786 = vmatmul.mubr.bf16.vlgmr.msra.gmra.mrb[20].mxu1 %v5725_v40  ;;  %v820_v24 = vpop.f32.mrb[14].mxu1  ;;  %v819_v59 = vadd.f32 %v818_v51, %v210_v46  ;;  %v996_v51 = vrot.slane %v5661_v38, %v5646_v22  ;;  %v1270_v4 = vld [vmem:[#allocation4 + $0x5a8] sm:$0xff] }
 0x165   :  { %2711 = vmatpush1.bf16.msra.mxu0 %v5996_v55  ;;  %2797 = vmatpush1.bf16.msra.mxu1 %v5997_v58  ;;  %v921_v47 = vmax.f32 %v817_v49, 0.0  ;;  %v821_v12 = vadd.f32 %v820_v24, %v206_v31  ;;  %v822_v16 = vpop.f32.mrb[15].mxu1  ;;  %v4673_v31 = vcombine.high %v1249_v15, %v1253_v28  ;;  %v226_v49 = vrot.slane %v5641_v6, %v5667_v43 }
 0x166   :  { %2712 = vmatprep.subr.bf16.mxu0 %v4649_v56  ;;  %2798 = vmatprep.subr.bf16.mxu1 %v4651_v42  ;;  %v4675_v56 = vcombine.high %v1250_v32, %v1254_v39  ;;  %v1257_v42 = vld [vmem:[#allocation4 + $0x540] sm:$0xff]  ;;  %v823_v63 = vadd.f32 %v822_v16, %v210_v46  ;;  %v4674_v24 = vcombine.low %v1250_v32, %v1254_v39  ;;  %v922_v55 = vmax.f32 %v819_v59, 0.0 }
 0x167   :  { %v5741_v5 = vadd.f32 %v992_v50, %v921_v47  ;;  %v937_v8 = vmax.f32 %v821_v12, 0.0  ;;  %v1265_v47 = vld [vmem:[#allocation4 + $0x580] sm:$0xff]  ;;  %v1008_v16 = vrot.slane %v5661_v38, %v5664_v41  ;;  %v4682_v46 = vcombine.low %v1258_v60, %v1262_v61 }
 0x168   :  { %v1269_v12 = vld [vmem:[#allocation4 + $0x5a0] sm:$0xff]  ;;  %v938_v62 = vmax.f32 %v823_v63, 0.0  ;;  %v1274_v63 = vld [vmem:[#allocation4 + $0x5c8] sm:$0xff] }
 0x169   :  { %2713 = vmatpush1.bf16.msra.mxu0 %v4648_v18  ;;  %2799 = vmatpush1.bf16.msra.mxu1 %v4650_v35  ;;  %v5743_v14 = vadd.f32 %v992_v50, %v937_v8  ;;  %v4672_v50 = vcombine.low %v1249_v15, %v1253_v28  ;;  %v4681_v18 = vcombine.high %v1257_v42, %v1261_v57  ;;  %v1277_v59 = vld [vmem:[#allocation4 + $0x5e0] sm:$0xff] }
 0x16a   :  { %2714 = vmatprep.subr.bf16.mxu0 %v4657_v34  ;;  %2800 = vmatprep.subr.bf16.mxu1 %v4659_v11  ;;  %v4683_v35 = vcombine.high %v1258_v60, %v1262_v61  ;;  %v1266_v11 = vld [vmem:[#allocation4 + $0x588] sm:$0xff]  ;;  %v4689_v15 = vcombine.high %v1265_v47, %v1269_v12  ;;  %v1040_v28 = vadd.f32 %v996_v51, %v922_v55 }
 0x16b   :  { %v4688_v38 = vcombine.low %v1265_v47, %v1269_v12  ;;  %v1281_v47 = vld [vmem:[#allocation4 + $0x600] sm:$0xff] }
 0x16c   :  { %v1285_v12 = vld [vmem:[#allocation4 + $0x620] sm:$0xff] }
 0x16d   :  { %2715 = vmatpush1.bf16.msra.mxu0 %v4656_v9  ;;  %2801 = vmatpush1.bf16.msra.mxu1 %v4658_v10  ;;  %v4680_v9 = vcombine.low %v1257_v42, %v1261_v57  ;;  %v1278_v42 = vld [vmem:[#allocation4 + $0x5e8] sm:$0xff]  ;;  %v1056_v57 = vadd.f32 %v996_v51, %v938_v62  ;;  %v4704_v30 = vcombine.low %v1281_v47, %v1285_v12 }
 0x16e   :  { %2716 = vmatprep.subr.bf16.mxu0 %v4665_v27  ;;  %2802 = vmatprep.subr.bf16.mxu1 %v4667_v26  ;;  %v4698_v33 = vcombine.low %v1274_v63, %v1278_v42  ;;  %v1294_v62 = vld [vmem:[#allocation4 + $0x668] sm:$0xff] }
 0x171   :  { %2717 = vmatpush1.bf16.msra.mxu0 %v4664_v48  ;;  %2803 = vmatpush1.bf16.msra.mxu1 %v4666_v52  ;;  %v4691_v48 = vcombine.high %v1266_v11, %v1270_v4  ;;  %v1273_v52 = vld [vmem:[#allocation4 + $0x5c0] sm:$0xff] }
 0x172   :  { %v902_v58 = vpop.f32.mrb[16].mxu1  ;;  %2718 = vmatprep.subr.bf16.mxu0 %v4673_v31  ;;  %2804 = vmatprep.subr.bf16.mxu1 %v4675_v56 }
 0x173   :  { %v903_v34 = vadd.f32 %v902_v58, %v222_v23  ;;  %v904_v6 = vpop.f32.mrb[17].mxu1 }
 0x174   :  { %v905_v37 = vadd.f32 %v904_v6, %v226_v49  ;;  %v906_v8 = vpop.f32.mrb[18].mxu1  ;;  %v1286_v6 = vld [vmem:[#allocation4 + $0x628] sm:$0xff] }
 0x175   :  { %v925_v10 = vmax.f32 %v903_v34, 0.0  ;;  %2719 = vmatpush1.bf16.msra.mxu0 %v4672_v50  ;;  %2805 = vmatpush1.bf16.msra.mxu1 %v4674_v24  ;;  %v907_v27 = vadd.f32 %v906_v8, %v222_v23  ;;  %v908_v26 = vpop.f32.mrb[19].mxu1  ;;  %v4690_v23 = vcombine.low %v1266_v11, %v1270_v4  ;;  %v4696_v4 = vcombine.low %v1273_v52, %v1277_v59  ;;  %v1298_v8 = vld [vmem:[#allocation4 + $0x688] sm:$0xff] }
 0x176   :  { %v926_v32 = vmax.f32 %v905_v37, 0.0  ;;  %v909_v39 = vadd.f32 %v908_v26, %v226_v49  ;;  %2720 = vmatprep.subr.bf16.mxu0 %v4681_v18  ;;  %2806 = vmatprep.subr.bf16.mxu1 %v4683_v35  ;;  %v4697_v49 = vcombine.high %v1273_v52, %v1277_v59  ;;  %v4699_v18 = vcombine.high %v1274_v63, %v1278_v42  ;;  %v1314_v63 = vld [vmem:[#allocation4 + $0x708] sm:$0xff] }
 0x177   :  { %v1043_v31 = vadd.f32 %v1008_v16, %v925_v10  ;;  %v941_v56 = vmax.f32 %v907_v27, 0.0  ;;  %v1318_v42 = vld [vmem:[#allocation4 + $0x728] sm:$0xff] }
 0x178   :  { %v1044_v50 = vadd.f32 %v1012_v7, %v926_v32  ;;  %v942_v24 = vmax.f32 %v909_v39, 0.0  ;;  %v1306_v32 = vld [vmem:[#allocation4 + $0x6c8] sm:$0xff] }
 0x179   :  { %v1071_v60 = vmax.f32 %v5741_v5, %v1043_v31  ;;  %v1059_v61 = vadd.f32 %v1008_v16, %v941_v56  ;;  %2721 = vmatpush1.bf16.msra.mxu0 %v4680_v9  ;;  %2807 = vmatpush1.bf16.msra.mxu1 %v4682_v46  ;;  %v1282_v16 = vld [vmem:[#allocation4 + $0x608] sm:$0xff]  ;;  %v1313_v56 = vld [vmem:[#allocation4 + $0x700] sm:$0xff] }
 0x17a   :  { %v1072_v55 = vmax.f32 %v1040_v28, %v1044_v50  ;;  %v1060_v58 = vadd.f32 %v1012_v7, %v942_v24  ;;  %2722 = vmatprep.subr.bf16.mxu0 %v4689_v15  ;;  %2808 = vmatprep.subr.bf16.mxu1 %v4691_v48  ;;  %v4707_v0 = vcombine.high %v1282_v16, %v1286_v6  ;;  %v1301_v7 = vld [vmem:[#allocation4 + $0x6a0] sm:$0xff]  ;;  %v1302_v9 = vld [vmem:[#allocation4 + $0x6a8] sm:$0xff] }
 0x17b   :  { %v1079_v35 = vmax.f32 %v1063_v54, %v1071_v60  ;;  %v1075_v51 = vmax.f32 %v5743_v14, %v1059_v61  ;;  %v4705_v54 = vcombine.high %v1281_v47, %v1285_v12  ;;  %v1290_v14 = vld [vmem:[#allocation4 + $0x648] sm:$0xff]  ;;  %v4723_v46 = vcombine.high %v1298_v8, %v1302_v9  ;;  %v1305_v15 = vld [vmem:[#allocation4 + $0x6c0] sm:$0xff] }
 0x17c   :  { %v1080_v5 = vmax.f32 %v1064_v3, %v1072_v55  ;;  %v1076_v34 = vmax.f32 %v1056_v57, %v1060_v58  ;;  %v1293_v3 = vld [vmem:[#allocation4 + $0x660] sm:$0xff]  ;;  %v4715_v13 = vcombine.high %v1290_v14, %v1294_v62  ;;  %v4714_v27 = vcombine.low %v1290_v14, %v1294_v62  ;;  %v1310_v39 = vld [vmem:[#allocation4 + $0x6e8] sm:$0xff] }
 0x17d   :  { %v1083_v11 = vmax.f32 %v1067_v2, %v1075_v51  ;;  %2723 = vmatpush1.bf16.msra.mxu0 %v4688_v38  ;;  %2809 = vmatpush1.bf16.msra.mxu1 %v4690_v23  ;;  %v4706_v2 = vcombine.low %v1282_v16, %v1286_v6  ;;  %v4713_v44 = vcombine.high %v1289_v29, %v1293_v3  ;;  %v1309_v28 = vld [vmem:[#allocation4 + $0x6e0] sm:$0xff]  ;;  %v1326_v55 = vld [vmem:[#allocation4 + $0x768] sm:$0xff] }
 0x17e   :  { %v1084_v45 = vmax.f32 %v1068_v25, %v1076_v34  ;;  %2724 = vmatprep.subr.bf16.mxu0 %v4697_v49  ;;  %2810 = vmatprep.subr.bf16.mxu1 %v4699_v18  ;;  %v1297_v25 = vld [vmem:[#allocation4 + $0x680] sm:$0xff]  ;;  %v4712_v10 = vcombine.low %v1289_v29, %v1293_v3  ;;  %v4722_v52 = vcombine.low %v1298_v8, %v1302_v9  ;;  %v1322_v49 = vld [vmem:[#allocation4 + $0x748] sm:$0xff] }
 0x17f   :  { %v5771_v37 = vpack.c.bf16 %v1083_v11, %v1079_v35  ;;  %v4721_v26 = vcombine.high %v1297_v25, %v1301_v7  ;;  %v4720_v48 = vcombine.low %v1297_v25, %v1301_v7  ;;  %v4729_v59 = vcombine.high %v1305_v15, %v1309_v28  ;;  %v1317_v38 = vld [vmem:[#allocation4 + $0x720] sm:$0xff]  ;;  %v1334_v34 = vld [vmem:[#allocation4 + $0x7a8] sm:$0xff] }
 0x180   :  { %v5773_v36 = vpack.c.bf16 %v1084_v45, %v1080_v5  ;;  %v4731_v31 = vcombine.high %v1306_v32, %v1310_v39  ;;  %v4728_v57 = vcombine.low %v1305_v15, %v1309_v28  ;;  %v4730_v50 = vcombine.low %v1306_v32, %v1310_v39  ;;  %v1321_v60 = vld [vmem:[#allocation4 + $0x740] sm:$0xff]  ;;  %v1330_v5 = vld [vmem:[#allocation4 + $0x788] sm:$0xff] }
 0x181   :  { %2725 = vmatpush1.bf16.msra.mxu0 %v4696_v4  ;;  %2811 = vmatpush1.bf16.msra.mxu1 %v4698_v33  ;;  %v4737_v24 = vcombine.high %v1313_v56, %v1317_v38  ;;  %v4739_v23 = vcombine.high %v1314_v63, %v1318_v42  ;;  %v1325_v61 = vld [vmem:[#allocation4 + $0x760] sm:$0xff]  ;;  %v4736_v58 = vcombine.low %v1313_v56, %v1317_v38  ;;  %v1342_v29 = vld [vmem:[#allocation4 + $0x7e8] sm:$0xff] }
 0x182   :  { %2726 = vmatprep.subr.bf16.mxu0 %v4705_v54  ;;  %2742 = vmatprep.mubr.bf16.mxu0 %v5773_v36  ;;  %v4738_v18 = vcombine.low %v1314_v63, %v1318_v42  ;;  %v4745_v35 = vcombine.high %v1321_v60, %v1325_v61  ;;  %v4747_v51 = vcombine.high %v1322_v49, %v1326_v55  ;;  %v1329_v47 = vld [vmem:[#allocation4 + $0x780] sm:$0xff]  ;;  %v1338_v54 = vld [vmem:[#allocation4 + $0x7c8] sm:$0xff] }
 0x183   :  { %2812 = vmatprep.subr.bf16.mxu1 %v4707_v0  ;;  %2828 = vmatprep.mubr.bf16.mxu1 %v5773_v36  ;;  %v1333_v12 = vld [vmem:[#allocation4 + $0x7a0] sm:$0xff]  ;;  %v4744_v16 = vcombine.low %v1321_v60, %v1325_v61  ;;  %v4746_v6 = vcombine.low %v1322_v49, %v1326_v55  ;;  %v4755_v4 = vcombine.high %v1330_v5, %v1334_v34 }
 0x184   :  { %v4753_v11 = vcombine.high %v1329_v47, %v1333_v12  ;;  %v1337_v33 = vld [vmem:[#allocation4 + $0x7c0] sm:$0xff]  ;;  %v4752_v0 = vcombine.low %v1329_v47, %v1333_v12  ;;  %v4754_v3 = vcombine.low %v1330_v5, %v1334_v34  ;;  %v4763_v62 = vcombine.high %v1338_v54, %v1342_v29  ;;  %v1131_v34 = vld [vmem:[#allocation4 + $0x150] sm:$0xff] }
 0x185   :  { %2727 = vmatpush1.bf16.msra.mxu0 %v4704_v30  ;;  %2813 = vmatpush1.bf16.msra.mxu1 %v4706_v2  ;;  %v1341_v45 = vld [vmem:[#allocation4 + $0x7e0] sm:$0xff]  ;;  %v1091_v30 = vld [vmem:[#allocation4 + $0x10] sm:$0xff]  ;;  %v4762_v7 = vcombine.low %v1338_v54, %v1342_v29 }
 0x186   :  { %2728 = vmatprep.subr.bf16.mxu0 %v4713_v44  ;;  %2814 = vmatprep.subr.bf16.mxu1 %v4715_v13  ;;  %v4761_v14 = vcombine.high %v1337_v33, %v1341_v45  ;;  %v1095_v2 = vld [vmem:[#allocation4 + $0x30] sm:$0xff]  ;;  %v1092_v44 = vld [vmem:[#allocation4 + $0x18] sm:$0xff]  ;;  %v4760_v25 = vcombine.low %v1337_v33, %v1341_v45 }
 0x187   :  { %v1096_v13 = vld [vmem:[#allocation4 + $0x38] sm:$0xff]  ;;  %v4517_v8 = vcombine.high %v1091_v30, %v1095_v2  ;;  %v4516_v15 = vcombine.low %v1091_v30, %v1095_v2  ;;  %v1139_v29 = vld [vmem:[#allocation4 + $0x190] sm:$0xff] }
 0x188   :  { %v4519_v9 = vcombine.high %v1092_v44, %v1096_v13  ;;  %v4518_v28 = vcombine.low %v1092_v44, %v1096_v13  ;;  %v1147_v13 = vld [vmem:[#allocation4 + $0x1d0] sm:$0xff] }
 0x189   :  { %2729 = vmatpush1.bf16.msra.mxu0 %v4712_v10  ;;  %2815 = vmatpush1.bf16.msra.mxu1 %v4714_v27  ;;  %v1099_v10 = vld [vmem:[#allocation4 + $0x50] sm:$0xff] }
 0x18a   :  { %2730 = vmatprep.subr.bf16.mxu0 %v4721_v26  ;;  %2816 = vmatprep.subr.bf16.mxu1 %v4723_v46  ;;  %v1103_v27 = vld [vmem:[#allocation4 + $0x70] sm:$0xff]  ;;  %v1100_v26 = vld [vmem:[#allocation4 + $0x58] sm:$0xff] }
 0x18b   :  { %v1104_v46 = vld [vmem:[#allocation4 + $0x78] sm:$0xff]  ;;  %v4525_v32 = vcombine.high %v1099_v10, %v1103_v27  ;;  %v4524_v56 = vcombine.low %v1099_v10, %v1103_v27 }
 0x18c   :  { %v4527_v39 = vcombine.high %v1100_v26, %v1104_v46  ;;  %v4526_v38 = vcombine.low %v1100_v26, %v1104_v46  ;;  %v1155_v46 = vld [vmem:[#allocation4 + $0x210] sm:$0xff] }
 0x18d   :  { %2731 = vmatpush1.bf16.msra.mxu0 %v4720_v48  ;;  %2817 = vmatpush1.bf16.msra.mxu1 %v4722_v52  ;;  %v1107_v48 = vld [vmem:[#allocation4 + $0x90] sm:$0xff] }
 0x18e   :  { %2732 = vmatprep.subr.bf16.mxu0 %v4729_v59  ;;  %2818 = vmatprep.subr.bf16.mxu1 %v4731_v31  ;;  %v1111_v52 = vld [vmem:[#allocation4 + $0xb0] sm:$0xff]  ;;  %v1108_v59 = vld [vmem:[#allocation4 + $0x98] sm:$0xff] }
 0x18f   :  { %v1112_v31 = vld [vmem:[#allocation4 + $0xb8] sm:$0xff]  ;;  %v4533_v63 = vcombine.high %v1107_v48, %v1111_v52  ;;  %v4532_v60 = vcombine.low %v1107_v48, %v1111_v52 }
 0x190   :  { %v4535_v42 = vcombine.high %v1108_v59, %v1112_v31  ;;  %v4534_v61 = vcombine.low %v1108_v59, %v1112_v31  ;;  %v1163_v31 = vld [vmem:[#allocation4 + $0x250] sm:$0xff] }
 0x191   :  { %2733 = vmatpush1.bf16.msra.mxu0 %v4728_v57  ;;  %2819 = vmatpush1.bf16.msra.mxu1 %v4730_v50  ;;  %v1115_v57 = vld [vmem:[#allocation4 + $0xd0] sm:$0xff] }
 0x192   :  { %2734 = vmatprep.subr.bf16.mxu0 %v4737_v24  ;;  %2820 = vmatprep.subr.bf16.mxu1 %v4739_v23  ;;  %v1119_v50 = vld [vmem:[#allocation4 + $0xf0] sm:$0xff]  ;;  %v1116_v24 = vld [vmem:[#allocation4 + $0xd8] sm:$0xff] }
 0x193   :  { %v1120_v23 = vld [vmem:[#allocation4 + $0xf8] sm:$0xff]  ;;  %v4541_v49 = vcombine.high %v1115_v57, %v1119_v50 }
 0x194   :  { %v4543_v55 = vcombine.high %v1116_v24, %v1120_v23  ;;  %v4542_v47 = vcombine.low %v1116_v24, %v1120_v23  ;;  %v1171_v23 = vld [vmem:[#allocation4 + $0x290] sm:$0xff] }
 0x195   :  { %2735 = vmatpush1.bf16.msra.mxu0 %v4736_v58  ;;  %2821 = vmatpush1.bf16.msra.mxu1 %v4738_v18  ;;  %v1123_v58 = vld [vmem:[#allocation4 + $0x110] sm:$0xff] }
 0x196   :  { %2736 = vmatprep.subr.bf16.mxu0 %v4745_v35  ;;  %2822 = vmatprep.subr.bf16.mxu1 %v4747_v51  ;;  %v1127_v18 = vld [vmem:[#allocation4 + $0x130] sm:$0xff]  ;;  %v1128_v35 = vld [vmem:[#allocation4 + $0x138] sm:$0xff]  ;;  %v4540_v51 = vcombine.low %v1115_v57, %v1119_v50 }
 0x197   :  { %v4549_v12 = vcombine.high %v1123_v58, %v1127_v18 }
 0x199   :  { %2737 = vmatpush1.bf16.msra.mxu0 %v4744_v16  ;;  %2823 = vmatpush1.bf16.msra.mxu1 %v4746_v6  ;;  %v1135_v16 = vld [vmem:[#allocation4 + $0x170] sm:$0xff]  ;;  %v1132_v6 = vld [vmem:[#allocation4 + $0x158] sm:$0xff] }
 0x19a   :  { %2738 = vmatprep.subr.bf16.mxu0 %v4753_v11  ;;  %2824 = vmatprep.subr.bf16.mxu1 %v4755_v4  ;;  %v1136_v11 = vld [vmem:[#allocation4 + $0x178] sm:$0xff]  ;;  %v4548_v4 = vcombine.low %v1123_v58, %v1127_v18  ;;  %v4557_v45 = vcombine.high %v1131_v34, %v1135_v16 }
 0x19b   :  { %v4559_v54 = vcombine.high %v1132_v6, %v1136_v11  ;;  %v4558_v30 = vcombine.low %v1132_v6, %v1136_v11  ;;  %v1187_v11 = vld [vmem:[#allocation4 + $0x310] sm:$0xff] }
 0x19d   :  { %2739 = vmatpush1.bf16.msra.mxu0 %v4752_v0  ;;  %2825 = vmatpush1.bf16.msra.mxu1 %v4754_v3  ;;  %v1143_v0 = vld [vmem:[#allocation4 + $0x1b0] sm:$0xff]  ;;  %v1140_v3 = vld [vmem:[#allocation4 + $0x198] sm:$0xff] }
 0x19e   :  { %2740 = vmatprep.subr.bf16.mxu0 %v4761_v14  ;;  %2826 = vmatprep.subr.bf16.mxu1 %v4763_v62  ;;  %v1144_v14 = vld [vmem:[#allocation4 + $0x1b8] sm:$0xff]  ;;  %v4556_v62 = vcombine.low %v1131_v34, %v1135_v16  ;;  %v4565_v2 = vcombine.high %v1139_v29, %v1143_v0 }
 0x19f   :  { %v4567_v44 = vcombine.high %v1140_v3, %v1144_v14  ;;  %v4566_v10 = vcombine.low %v1140_v3, %v1144_v14  ;;  %v1195_v14 = vld [vmem:[#allocation4 + $0x350] sm:$0xff] }
 0x1a1   :  { %2741 = vmatpush1.bf16.msra.mxu0 %v4760_v25  ;;  %2827 = vmatpush1.bf16.msra.mxu1 %v4762_v7  ;;  %v1151_v25 = vld [vmem:[#allocation4 + $0x1f0] sm:$0xff]  ;;  %v1148_v7 = vld [vmem:[#allocation4 + $0x1d8] sm:$0xff] }
 0x1a2   :  { %2839 = vmatprep.subr.bf16.mxu0 %v4517_v8  ;;  %2925 = vmatprep.subr.bf16.mxu1 %v4519_v9  ;;  %v1152_v8 = vld [vmem:[#allocation4 + $0x1f8] sm:$0xff]  ;;  %v4564_v9 = vcombine.low %v1139_v29, %v1143_v0  ;;  %v4573_v27 = vcombine.high %v1147_v13, %v1151_v25 }
 0x1a3   :  { %v4575_v26 = vcombine.high %v1148_v7, %v1152_v8  ;;  %v4574_v48 = vcombine.low %v1148_v7, %v1152_v8  ;;  %v1203_v8 = vld [vmem:[#allocation4 + $0x390] sm:$0xff] }
 0x1a4   :  { %2743 = vmatmul.mubr.bf16.vlgmr.msra.gmra.mrb[12].mxu0 %v5771_v37  ;;  %2829 = vmatmul.mubr.bf16.vlgmr.msra.gmra.mrb[20].mxu1 %v5771_v37 }
 0x1a5   :  { %2840 = vmatpush1.bf16.msra.mxu0 %v4516_v15  ;;  %2871 = vmatprep.mubr.bf16.mxu0 %v5727_v53  ;;  %v1159_v15 = vld [vmem:[#allocation4 + $0x230] sm:$0xff] }
 0x1a6   :  { %2926 = vmatpush1.bf16.msra.mxu1 %v4518_v28  ;;  %2957 = vmatprep.mubr.bf16.mxu1 %v5727_v53  ;;  %v1124_v53 = vld [vmem:[#allocation4 + $0x118] sm:$0xff]  ;;  %v4581_v52 = vcombine.high %v1155_v46, %v1159_v15 }
 0x1a7   :  { %2841 = vmatprep.subr.bf16.mxu0 %v4525_v32  ;;  %2927 = vmatprep.subr.bf16.mxu1 %v4527_v39  ;;  %v4551_v5 = vcombine.high %v1124_v53, %v1128_v35  ;;  %v4550_v33 = vcombine.low %v1124_v53, %v1128_v35  ;;  %v1156_v28 = vld [vmem:[#allocation4 + $0x218] sm:$0xff]  ;;  %v4572_v39 = vcombine.low %v1147_v13, %v1151_v25  ;;  %v1179_v35 = vld [vmem:[#allocation4 + $0x2d0] sm:$0xff] }
 0x1a8   :  { %v1160_v32 = vld [vmem:[#allocation4 + $0x238] sm:$0xff] }
 0x1a9   :  { %2842 = vmatpush1.bf16.msra.mxu0 %v4524_v56  ;;  %v4583_v59 = vcombine.high %v1156_v28, %v1160_v32  ;;  %v1167_v56 = vld [vmem:[#allocation4 + $0x270] sm:$0xff]  ;;  %v4582_v57 = vcombine.low %v1156_v28, %v1160_v32 }
 0x1aa   :  { %2928 = vmatpush1.bf16.msra.mxu1 %v4526_v38  ;;  %2843 = vmatprep.subr.bf16.mxu0 %v4533_v63  ;;  %v1164_v38 = vld [vmem:[#allocation4 + $0x258] sm:$0xff]  ;;  %v4589_v50 = vcombine.high %v1163_v31, %v1167_v56  ;;  %v1211_v32 = vld [vmem:[#allocation4 + $0x3d0] sm:$0xff] }
 0x1ab   :  { %2929 = vmatprep.subr.bf16.mxu1 %v4535_v42  ;;  %v1168_v63 = vld [vmem:[#allocation4 + $0x278] sm:$0xff]  ;;  %v4580_v42 = vcombine.low %v1155_v46, %v1159_v15 }
 0x1ac   :  { %v4591_v24 = vcombine.high %v1164_v38, %v1168_v63  ;;  %v4590_v58 = vcombine.low %v1164_v38, %v1168_v63  ;;  %v1219_v63 = vld [vmem:[#allocation4 + $0x410] sm:$0xff] }
 0x1ad   :  { %2844 = vmatpush1.bf16.msra.mxu0 %v4532_v60  ;;  %v1175_v60 = vld [vmem:[#allocation4 + $0x2b0] sm:$0xff] }
 0x1ae   :  { %2930 = vmatpush1.bf16.msra.mxu1 %v4534_v61  ;;  %2845 = vmatprep.subr.bf16.mxu0 %v4541_v49  ;;  %v1172_v61 = vld [vmem:[#allocation4 + $0x298] sm:$0xff]  ;;  %v4597_v18 = vcombine.high %v1171_v23, %v1175_v60 }
 0x1af   :  { %2931 = vmatprep.subr.bf16.mxu1 %v4543_v55  ;;  %v1176_v49 = vld [vmem:[#allocation4 + $0x2b8] sm:$0xff]  ;;  %v4588_v55 = vcombine.low %v1163_v31, %v1167_v56 }
 0x1b0   :  { %v4599_v53 = vcombine.high %v1172_v61, %v1176_v49  ;;  %v4598_v34 = vcombine.low %v1172_v61, %v1176_v49  ;;  %v1227_v49 = vld [vmem:[#allocation4 + $0x450] sm:$0xff] }
 0x1b1   :  { %2846 = vmatpush1.bf16.msra.mxu0 %v4540_v51  ;;  %v1183_v51 = vld [vmem:[#allocation4 + $0x2f0] sm:$0xff] }
 0x1b2   :  { %2932 = vmatpush1.bf16.msra.mxu1 %v4542_v47  ;;  %2847 = vmatprep.subr.bf16.mxu0 %v4549_v12  ;;  %v1180_v47 = vld [vmem:[#allocation4 + $0x2d8] sm:$0xff]  ;;  %v4605_v16 = vcombine.high %v1179_v35, %v1183_v51 }
 0x1b3   :  { %2933 = vmatprep.subr.bf16.mxu1 %v4551_v5  ;;  %v1184_v12 = vld [vmem:[#allocation4 + $0x2f8] sm:$0xff]  ;;  %v4596_v5 = vcombine.low %v1171_v23, %v1175_v60 }
 0x1b4   :  { %v4607_v6 = vcombine.high %v1180_v47, %v1184_v12  ;;  %v4606_v29 = vcombine.low %v1180_v47, %v1184_v12  ;;  %v1235_v47 = vld [vmem:[#allocation4 + $0x490] sm:$0xff] }
 0x1b5   :  { %2848 = vmatpush1.bf16.msra.mxu0 %v4548_v4  ;;  %v1191_v4 = vld [vmem:[#allocation4 + $0x330] sm:$0xff] }
 0x1b6   :  { %2934 = vmatpush1.bf16.msra.mxu1 %v4550_v33  ;;  %2849 = vmatprep.subr.bf16.mxu0 %v4557_v45  ;;  %v1188_v33 = vld [vmem:[#allocation4 + $0x318] sm:$0xff]  ;;  %v4613_v0 = vcombine.high %v1187_v11, %v1191_v4  ;;  %v1239_v12 = vld [vmem:[#allocation4 + $0x4b0] sm:$0xff] }
 0x1b7   :  { %2935 = vmatprep.subr.bf16.mxu1 %v4559_v54  ;;  %v1192_v45 = vld [vmem:[#allocation4 + $0x338] sm:$0xff]  ;;  %v4604_v54 = vcombine.low %v1179_v35, %v1183_v51 }
 0x1b8   :  { %v4615_v3 = vcombine.high %v1188_v33, %v1192_v45  ;;  %v4614_v13 = vcombine.low %v1188_v33, %v1192_v45  ;;  %v1243_v45 = vld [vmem:[#allocation4 + $0x4d0] sm:$0xff] }
 0x1b9   :  { %2850 = vmatpush1.bf16.msra.mxu0 %v4556_v62  ;;  %v1199_v62 = vld [vmem:[#allocation4 + $0x370] sm:$0xff] }
 0x1ba   :  { %2936 = vmatpush1.bf16.msra.mxu1 %v4558_v30  ;;  %2851 = vmatprep.subr.bf16.mxu0 %v4565_v2  ;;  %v1196_v30 = vld [vmem:[#allocation4 + $0x358] sm:$0xff]  ;;  %v4621_v25 = vcombine.high %v1195_v14, %v1199_v62 }
 0x1bb   :  { %2937 = vmatprep.subr.bf16.mxu1 %v4567_v44  ;;  %v1200_v2 = vld [vmem:[#allocation4 + $0x378] sm:$0xff]  ;;  %v4612_v44 = vcombine.low %v1187_v11, %v1191_v4  ;;  %v4661_v4 = vcombine.high %v1235_v47, %v1239_v12 }
 0x1bc   :  { %v4623_v7 = vcombine.high %v1196_v30, %v1200_v2  ;;  %v4622_v46 = vcombine.low %v1196_v30, %v1200_v2  ;;  %v1251_v30 = vld [vmem:[#allocation4 + $0x510] sm:$0xff] }
 0x1bd   :  { %2852 = vmatpush1.bf16.msra.mxu0 %v4564_v9  ;;  %v1207_v9 = vld [vmem:[#allocation4 + $0x3b0] sm:$0xff] }
 0x1be   :  { %2938 = vmatpush1.bf16.msra.mxu1 %v4566_v10  ;;  %2853 = vmatprep.subr.bf16.mxu0 %v4573_v27  ;;  %v1204_v10 = vld [vmem:[#allocation4 + $0x398] sm:$0xff]  ;;  %v4629_v15 = vcombine.high %v1203_v8, %v1207_v9  ;;  %v1255_v2 = vld [vmem:[#allocation4 + $0x530] sm:$0xff] }
 0x1bf   :  { %2939 = vmatprep.subr.bf16.mxu1 %v4575_v26  ;;  %v1208_v27 = vld [vmem:[#allocation4 + $0x3b8] sm:$0xff]  ;;  %v4620_v26 = vcombine.low %v1195_v14, %v1199_v62 }
 0x1c0   :  { %v4631_v28 = vcombine.high %v1204_v10, %v1208_v27  ;;  %v4630_v31 = vcombine.low %v1204_v10, %v1208_v27  ;;  %v1263_v10 = vld [vmem:[#allocation4 + $0x570] sm:$0xff]  ;;  %v1260_v27 = vld [vmem:[#allocation4 + $0x558] sm:$0xff] }
 0x1c1   :  { %2854 = vmatpush1.bf16.msra.mxu0 %v4572_v39  ;;  %v1215_v39 = vld [vmem:[#allocation4 + $0x3f0] sm:$0xff] }
 0x1c2   :  { %2940 = vmatpush1.bf16.msra.mxu1 %v4574_v48  ;;  %2855 = vmatprep.subr.bf16.mxu0 %v4581_v52  ;;  %v1212_v48 = vld [vmem:[#allocation4 + $0x3d8] sm:$0xff]  ;;  %v4637_v56 = vcombine.high %v1211_v32, %v1215_v39 }
 0x1c3   :  { %2941 = vmatprep.subr.bf16.mxu1 %v4583_v59  ;;  %v1216_v52 = vld [vmem:[#allocation4 + $0x3f8] sm:$0xff]  ;;  %v4628_v59 = vcombine.low %v1203_v8, %v1207_v9  ;;  %v1259_v9 = vld [vmem:[#allocation4 + $0x550] sm:$0xff] }
 0x1c4   :  { %v4639_v38 = vcombine.high %v1212_v48, %v1216_v52  ;;  %v4638_v23 = vcombine.low %v1212_v48, %v1216_v52  ;;  %v1271_v48 = vld [vmem:[#allocation4 + $0x5b0] sm:$0xff]  ;;  %v1268_v52 = vld [vmem:[#allocation4 + $0x598] sm:$0xff] }
 0x1c5   :  { %2856 = vmatpush1.bf16.msra.mxu0 %v4580_v42  ;;  %v1223_v42 = vld [vmem:[#allocation4 + $0x430] sm:$0xff] }
 0x1c6   :  { %2942 = vmatpush1.bf16.msra.mxu1 %v4582_v57  ;;  %2857 = vmatprep.subr.bf16.mxu0 %v4589_v50  ;;  %v1220_v57 = vld [vmem:[#allocation4 + $0x418] sm:$0xff]  ;;  %v4645_v60 = vcombine.high %v1219_v63, %v1223_v42 }
 0x1c7   :  { %2943 = vmatprep.subr.bf16.mxu1 %v4591_v24  ;;  %v1224_v50 = vld [vmem:[#allocation4 + $0x438] sm:$0xff]  ;;  %v4636_v24 = vcombine.low %v1211_v32, %v1215_v39  ;;  %v1267_v39 = vld [vmem:[#allocation4 + $0x590] sm:$0xff] }
 0x1c8   :  { %v4647_v61 = vcombine.high %v1220_v57, %v1224_v50  ;;  %v4646_v35 = vcombine.low %v1220_v57, %v1224_v50  ;;  %v1279_v57 = vld [vmem:[#allocation4 + $0x5f0] sm:$0xff]  ;;  %v1276_v50 = vld [vmem:[#allocation4 + $0x5d8] sm:$0xff] }
 0x1c9   :  { %2858 = vmatpush1.bf16.msra.mxu0 %v4588_v55  ;;  %v1231_v55 = vld [vmem:[#allocation4 + $0x470] sm:$0xff] }
 0x1ca   :  { %2944 = vmatpush1.bf16.msra.mxu1 %v4590_v58  ;;  %2859 = vmatprep.subr.bf16.mxu0 %v4597_v18  ;;  %v4644_v58 = vcombine.low %v1219_v63, %v1223_v42  ;;  %v1228_v18 = vld [vmem:[#allocation4 + $0x458] sm:$0xff]  ;;  %v4653_v51 = vcombine.high %v1227_v49, %v1231_v55  ;;  %v1275_v42 = vld [vmem:[#allocation4 + $0x5d0] sm:$0xff] }
 0x1cb   :  { %2945 = vmatprep.subr.bf16.mxu1 %v4599_v53  ;;  %v1232_v53 = vld [vmem:[#allocation4 + $0x478] sm:$0xff] }
 0x1cc   :  { %v4654_v11 = vcombine.low %v1228_v18, %v1232_v53 }
 0x1cd   :  { %2860 = vmatpush1.bf16.msra.mxu0 %v4596_v5  ;;  %v4655_v5 = vcombine.high %v1228_v18, %v1232_v53  ;;  %v1284_v18 = vld [vmem:[#allocation4 + $0x618] sm:$0xff] }
 0x1ce   :  { %2946 = vmatpush1.bf16.msra.mxu1 %v4598_v34  ;;  %2861 = vmatprep.subr.bf16.mxu0 %v4605_v16  ;;  %v1236_v34 = vld [vmem:[#allocation4 + $0x498] sm:$0xff] }
 0x1cf   :  { %2947 = vmatprep.subr.bf16.mxu1 %v4607_v6  ;;  %v1240_v16 = vld [vmem:[#allocation4 + $0x4b8] sm:$0xff]  ;;  %v4652_v6 = vcombine.low %v1227_v49, %v1231_v55  ;;  %v1283_v55 = vld [vmem:[#allocation4 + $0x610] sm:$0xff] }
 0x1d0   :  { %v4663_v33 = vcombine.high %v1236_v34, %v1240_v16  ;;  %v1288_v53 = vld [vmem:[#allocation4 + $0x638] sm:$0xff] }
 0x1d1   :  { %2862 = vmatpush1.bf16.msra.mxu0 %v4604_v54  ;;  %v1247_v54 = vld [vmem:[#allocation4 + $0x4f0] sm:$0xff] }
 0x1d2   :  { %2948 = vmatpush1.bf16.msra.mxu1 %v4606_v29  ;;  %2863 = vmatprep.subr.bf16.mxu0 %v4613_v0  ;;  %v1244_v29 = vld [vmem:[#allocation4 + $0x4d8] sm:$0xff]  ;;  %v4669_v14 = vcombine.high %v1243_v45, %v1247_v54 }
 0x1d3   :  { %2949 = vmatprep.subr.bf16.mxu1 %v4615_v3  ;;  %v1248_v0 = vld [vmem:[#allocation4 + $0x4f8] sm:$0xff]  ;;  %v4660_v3 = vcombine.low %v1235_v47, %v1239_v12  ;;  %v4711_v12 = vcombine.high %v1284_v18, %v1288_v53 }
 0x1d4   :  { %v4671_v62 = vcombine.high %v1244_v29, %v1248_v0 }
 0x1d5   :  { %2864 = vmatpush1.bf16.msra.mxu0 %v4612_v44  ;;  %v1252_v44 = vld [vmem:[#allocation4 + $0x518] sm:$0xff] }
 0x1d6   :  { %2950 = vmatpush1.bf16.msra.mxu1 %v4614_v13  ;;  %2865 = vmatprep.subr.bf16.mxu0 %v4621_v25  ;;  %v1256_v13 = vld [vmem:[#allocation4 + $0x538] sm:$0xff]  ;;  %v4670_v25 = vcombine.low %v1244_v29, %v1248_v0  ;;  %v1303_v29 = vld [vmem:[#allocation4 + $0x6b0] sm:$0xff] }
 0x1d7   :  { %2951 = vmatprep.subr.bf16.mxu1 %v4623_v7  ;;  %v4677_v7 = vcombine.high %v1251_v30, %v1255_v2  ;;  %v4679_v8 = vcombine.high %v1252_v44, %v1256_v13  ;;  %v1300_v0 = vld [vmem:[#allocation4 + $0x698] sm:$0xff] }
 0x1d9   :  { %2866 = vmatpush1.bf16.msra.mxu0 %v4620_v26  ;;  %v1264_v26 = vld [vmem:[#allocation4 + $0x578] sm:$0xff] }
 0x1da   :  { %2952 = vmatpush1.bf16.msra.mxu1 %v4622_v46  ;;  %2867 = vmatprep.subr.bf16.mxu0 %v4629_v15  ;;  %v4676_v46 = vcombine.low %v1251_v30, %v1255_v2  ;;  %v4678_v15 = vcombine.low %v1252_v44, %v1256_v13  ;;  %v4687_v32 = vcombine.high %v1260_v27, %v1264_v26  ;;  %v1307_v2 = vld [vmem:[#allocation4 + $0x6d0] sm:$0xff]  ;;  %v1308_v13 = vld [vmem:[#allocation4 + $0x6d8] sm:$0xff] }
 0x1db   :  { %2953 = vmatprep.subr.bf16.mxu1 %v4631_v28  ;;  %v4685_v28 = vcombine.high %v1259_v9, %v1263_v10  ;;  %v1311_v44 = vld [vmem:[#allocation4 + $0x6f0] sm:$0xff] }
 0x1dd   :  { %2868 = vmatpush1.bf16.msra.mxu0 %v4628_v59  ;;  %v1272_v59 = vld [vmem:[#allocation4 + $0x5b8] sm:$0xff] }
 0x1de   :  { %2954 = vmatpush1.bf16.msra.mxu1 %v4630_v31  ;;  %2869 = vmatprep.subr.bf16.mxu0 %v4637_v56  ;;  %v4684_v31 = vcombine.low %v1259_v9, %v1263_v10  ;;  %v4686_v56 = vcombine.low %v1260_v27, %v1264_v26  ;;  %v4695_v63 = vcombine.high %v1268_v52, %v1272_v59  ;;  %v1315_v10 = vld [vmem:[#allocation4 + $0x710] sm:$0xff]  ;;  %v1316_v26 = vld [vmem:[#allocation4 + $0x718] sm:$0xff] }
 0x1df   :  { %2955 = vmatprep.subr.bf16.mxu1 %v4639_v38  ;;  %v4693_v38 = vcombine.high %v1267_v39, %v1271_v48  ;;  %v1319_v27 = vld [vmem:[#allocation4 + $0x730] sm:$0xff] }
 0x1e1   :  { %2870 = vmatpush1.bf16.msra.mxu0 %v4636_v24  ;;  %v1280_v24 = vld [vmem:[#allocation4 + $0x5f8] sm:$0xff] }
 0x1e2   :  { %2956 = vmatpush1.bf16.msra.mxu1 %v4638_v23  ;;  %2882 = vmatprep.subr.bf16.mxu0 %v4645_v60  ;;  %v4692_v23 = vcombine.low %v1267_v39, %v1271_v48  ;;  %v4694_v60 = vcombine.low %v1268_v52, %v1272_v59  ;;  %v4703_v49 = vcombine.high %v1276_v50, %v1280_v24  ;;  %v1323_v48 = vld [vmem:[#allocation4 + $0x750] sm:$0xff]  ;;  %v1324_v59 = vld [vmem:[#allocation4 + $0x758] sm:$0xff] }
 0x1e3   :  { %2968 = vmatprep.subr.bf16.mxu1 %v4647_v61  ;;  %v4701_v61 = vcombine.high %v1275_v42, %v1279_v57  ;;  %v1327_v52 = vld [vmem:[#allocation4 + $0x770] sm:$0xff] }
 0x1e4   :  { %2872 = vmatmul.mubr.bf16.vlgmr.msra.gmra.mrb[16].mxu0 %v5725_v40 }
 0x1e5   :  { %2958 = vmatmul.mubr.bf16.vlgmr.msra.gmra.mrb[24].mxu1 %v5725_v40  ;;  %2883 = vmatpush1.bf16.msra.mxu0 %v4644_v58  ;;  %v4662_v40 = vcombine.low %v1236_v34, %v1240_v16  ;;  %v1287_v58 = vld [vmem:[#allocation4 + $0x630] sm:$0xff]  ;;  %v1292_v16 = vld [vmem:[#allocation4 + $0x658] sm:$0xff] }
 0x1e6   :  { %2914 = vmatprep.mubr.bf16.mxu0 %v5773_v36  ;;  %2969 = vmatpush1.bf16.msra.mxu1 %v4646_v35  ;;  %v4700_v35 = vcombine.low %v1275_v42, %v1279_v57  ;;  %v4709_v47 = vcombine.high %v1283_v55, %v1287_v58  ;;  %v1295_v34 = vld [vmem:[#allocation4 + $0x670] sm:$0xff] }
 0x1e7   :  { %3000 = vmatprep.mubr.bf16.mxu1 %v5773_v36  ;;  %2884 = vmatprep.subr.bf16.mxu0 %v4653_v51  ;;  %v4668_v36 = vcombine.low %v1243_v45, %v1247_v54  ;;  %v4702_v51 = vcombine.low %v1276_v50, %v1280_v24  ;;  %v1299_v54 = vld [vmem:[#allocation4 + $0x690] sm:$0xff]  ;;  %v1332_v24 = vld [vmem:[#allocation4 + $0x798] sm:$0xff] }
 0x1e8   :  { %2970 = vmatprep.subr.bf16.mxu1 %v4655_v5  ;;  %v1291_v5 = vld [vmem:[#allocation4 + $0x650] sm:$0xff] }
 0x1e9   :  { %2885 = vmatpush1.bf16.msra.mxu0 %v4652_v6  ;;  %v1296_v6 = vld [vmem:[#allocation4 + $0x678] sm:$0xff]  ;;  %v1331_v57 = vld [vmem:[#allocation4 + $0x790] sm:$0xff] }
 0x1ea   :  { %2971 = vmatpush1.bf16.msra.mxu1 %v4654_v11  ;;  %2886 = vmatprep.subr.bf16.mxu0 %v4661_v4  ;;  %v4708_v11 = vcombine.low %v1283_v55, %v1287_v58  ;;  %v4710_v4 = vcombine.low %v1284_v18, %v1288_v53  ;;  %v4719_v45 = vcombine.high %v1292_v16, %v1296_v6  ;;  %v1335_v50 = vld [vmem:[#allocation4 + $0x7b0] sm:$0xff]  ;;  %v1340_v53 = vld [vmem:[#allocation4 + $0x7d8] sm:$0xff] }
 0x1eb   :  { %2972 = vmatprep.subr.bf16.mxu1 %v4663_v33  ;;  %v4717_v33 = vcombine.high %v1291_v5, %v1295_v34  ;;  %v1339_v58 = vld [vmem:[#allocation4 + $0x7d0] sm:$0xff] }
 0x1ec   :  { %v1343_v18 = vld [vmem:[#allocation4 + $0x7f0] sm:$0xff] }
 0x1ed   :  { %2887 = vmatpush1.bf16.msra.mxu0 %v4660_v3  ;;  %v1304_v3 = vld [vmem:[#allocation4 + $0x6b8] sm:$0xff] }
 0x1ee   :  { %2973 = vmatpush1.bf16.msra.mxu1 %v4662_v40  ;;  %2888 = vmatprep.subr.bf16.mxu0 %v4669_v14  ;;  %v4716_v40 = vcombine.low %v1291_v5, %v1295_v34  ;;  %v4718_v14 = vcombine.low %v1292_v16, %v1296_v6  ;;  %v4727_v30 = vcombine.high %v1300_v0, %v1304_v3  ;;  %v5148_v6 = vld [vmem:[#allocation6 + $0x4] ss:$16 sps:$4 sm:$0xff]  }
 0x1ef   :  { %2974 = vmatprep.subr.bf16.mxu1 %v4671_v62  ;;  %v4725_v62 = vcombine.high %v1299_v54, %v1303_v29  ;;  %v4764_v34 = vcombine.low %v1339_v58, %v1343_v18 }
 0x1f1   :  { %2889 = vmatpush1.bf16.msra.mxu0 %v4668_v36  ;;  %v1312_v36 = vld [vmem:[#allocation4 + $0x6f8] sm:$0xff] }
 0x1f2   :  { %2975 = vmatpush1.bf16.msra.mxu1 %v4670_v25  ;;  %2890 = vmatprep.subr.bf16.mxu0 %v4677_v7  ;;  %v4724_v25 = vcombine.low %v1299_v54, %v1303_v29  ;;  %v4726_v7 = vcombine.low %v1300_v0, %v1304_v3  ;;  %v4735_v9 = vcombine.high %v1308_v13, %v1312_v36  ;;  %v5157_v54 = vld [vmem:[#allocation6 + $0x2c] ss:$16 sps:$4 sm:$0xff]   ;;  %v5152_v29 = vld [vmem:[#allocation6 + $0x20] ss:$16 sps:$4 sm:$0xff]   ;;  %v5155_v0 = vld [vmem:[#allocation6 + $0x28] ss:$16 sps:$4 sm:$0xff]  }
 0x1f3   :  { %2976 = vmatprep.subr.bf16.mxu1 %v4679_v8  ;;  %v4733_v8 = vcombine.high %v1307_v2, %v1311_v44  ;;  %v5160_v3 = vld [vmem:[#allocation6 + $0x44] ss:$16 sps:$4 sm:$0xff]  }
 0x1f5   :  { %2891 = vmatpush1.bf16.msra.mxu0 %v4676_v46  ;;  %v1320_v46 = vld [vmem:[#allocation4 + $0x738] sm:$0xff] }
 0x1f6   :  { %2977 = vmatpush1.bf16.msra.mxu1 %v4678_v15  ;;  %2892 = vmatprep.subr.bf16.mxu0 %v4685_v28  ;;  %v4732_v15 = vcombine.low %v1307_v2, %v1311_v44  ;;  %v4734_v28 = vcombine.low %v1308_v13, %v1312_v36  ;;  %v4743_v39 = vcombine.high %v1316_v26, %v1320_v46  ;;  %v5169_v2 = vld [vmem:[#allocation6 + $0x6c] ss:$16 sps:$4 sm:$0xff]   ;;  %v5164_v44 = vld [vmem:[#allocation6 + $0x60] ss:$16 sps:$4 sm:$0xff]   ;;  %v5172_v13 = vld [vmem:[#allocation6 + $0x84] ss:$16 sps:$4 sm:$0xff]  }
 0x1f7   :  { %2978 = vmatprep.subr.bf16.mxu1 %v4687_v32  ;;  %v4741_v32 = vcombine.high %v1315_v10, %v1319_v27  ;;  %v5175_v36 = vld [vmem:[#allocation6 + $0x8c] ss:$16 sps:$4 sm:$0xff]  }
 0x1f9   :  { %2893 = vmatpush1.bf16.msra.mxu0 %v4684_v31  ;;  %v1328_v31 = vld [vmem:[#allocation4 + $0x778] sm:$0xff] }
 0x1fa   :  { %2979 = vmatpush1.bf16.msra.mxu1 %v4686_v56  ;;  %2894 = vmatprep.subr.bf16.mxu0 %v4693_v38  ;;  %v4740_v56 = vcombine.low %v1315_v10, %v1319_v27  ;;  %v4742_v38 = vcombine.low %v1316_v26, %v1320_v46  ;;  %v4751_v42 = vcombine.high %v1324_v59, %v1328_v31  ;;  %v5176_v10 = vld [vmem:[#allocation6 + $0xa0] ss:$16 sps:$4 sm:$0xff]   ;;  %v5179_v27 = vld [vmem:[#allocation6 + $0xa8] ss:$16 sps:$4 sm:$0xff]   ;;  %v5184_v26 = vld [vmem:[#allocation6 + $0xc4] ss:$16 sps:$4 sm:$0xff]  }
 0x1fb   :  { %2980 = vmatprep.subr.bf16.mxu1 %v4695_v63  ;;  %v4749_v63 = vcombine.high %v1323_v48, %v1327_v52  ;;  %v5187_v46 = vld [vmem:[#allocation6 + $0xcc] ss:$16 sps:$4 sm:$0xff]  }
 0x1fd   :  { %2895 = vmatpush1.bf16.msra.mxu0 %v4692_v23  ;;  %v1336_v23 = vld [vmem:[#allocation4 + $0x7b8] sm:$0xff] }
 0x1fe   :  { %2981 = vmatpush1.bf16.msra.mxu1 %v4694_v60  ;;  %2896 = vmatprep.subr.bf16.mxu0 %v4701_v61  ;;  %v4748_v60 = vcombine.low %v1323_v48, %v1327_v52  ;;  %v4750_v61 = vcombine.low %v1324_v59, %v1328_v31  ;;  %v4759_v55 = vcombine.high %v1332_v24, %v1336_v23  ;;  %v5188_v48 = vld [vmem:[#allocation6 + $0xe0] ss:$16 sps:$4 sm:$0xff]   ;;  %v5191_v52 = vld [vmem:[#allocation6 + $0xe8] ss:$16 sps:$4 sm:$0xff]   ;;  %v5196_v59 = vld [vmem:[#allocation6 + $0x104] ss:$16 sps:$4 sm:$0xff]  }
 0x1ff   :  { %2982 = vmatprep.subr.bf16.mxu1 %v4703_v49  ;;  %v4757_v49 = vcombine.high %v1331_v57, %v1335_v50  ;;  %v5199_v31 = vld [vmem:[#allocation6 + $0x10c] ss:$16 sps:$4 sm:$0xff]  }
 0x201   :  { %2897 = vmatpush1.bf16.msra.mxu0 %v4700_v35  ;;  %v1344_v35 = vld [vmem:[#allocation4 + $0x7f8] sm:$0xff] }
 0x202   :  { %2983 = vmatpush1.bf16.msra.mxu1 %v4702_v51  ;;  %2898 = vmatprep.subr.bf16.mxu0 %v4709_v47  ;;  %v4756_v51 = vcombine.low %v1331_v57, %v1335_v50  ;;  %v4758_v47 = vcombine.low %v1332_v24, %v1336_v23  ;;  %v4767_v5 = vcombine.high %v1340_v53, %v1344_v35  ;;  %v5200_v57 = vld [vmem:[#allocation6 + $0x120] ss:$16 sps:$4 sm:$0xff]   ;;  %v5203_v50 = vld [vmem:[#allocation6 + $0x128] ss:$16 sps:$4 sm:$0xff]   ;;  %v5208_v24 = vld [vmem:[#allocation6 + $0x144] ss:$16 sps:$4 sm:$0xff]  }
 0x203   :  { %2984 = vmatprep.subr.bf16.mxu1 %v4711_v12  ;;  %v4765_v12 = vcombine.high %v1339_v58, %v1343_v18  ;;  %v4766_v16 = vcombine.low %v1340_v53, %v1344_v35  ;;  %v5211_v23 = vld [vmem:[#allocation6 + $0x14c] ss:$16 sps:$4 sm:$0xff]   ;;  %v5212_v58 = vld [vmem:[#allocation6 + $0x160] ss:$16 sps:$4 sm:$0xff]   ;;  %v5215_v18 = vld [vmem:[#allocation6 + $0x168] ss:$16 sps:$4 sm:$0xff]  }
 0x204   :  { %v5790_v53 = vld [vmem:[%s5985_s4] ss:$2 sm:$0xff] }
 0x205   :  { %2899 = vmatpush1.bf16.msra.mxu0 %v4708_v11  ;;  %v5151_v11 = vld [vmem:[#allocation6 + $0xc] ss:$16 sps:$4 sm:$0xff]   ;;  %v1350_v35 = vrot.slane %v5790_v53, %v5572_v17 }
 0x206   :  { %2985 = vmatpush1.bf16.msra.mxu1 %v4710_v4  ;;  %2900 = vmatprep.subr.bf16.mxu0 %v4717_v33  ;;  %v5146_v4 = vld [vmem:[#allocation6] ss:$16 sps:$4 sm:$0xff]   ;;  %v5149_v33 = vld [vmem:[#allocation6 + $0x8] ss:$16 sps:$4 sm:$0xff]  }
 0x207   :  { %2986 = vmatprep.subr.bf16.mxu1 %v4719_v45  ;;  %v5154_v45 = vld [vmem:[#allocation6 + $0x24] ss:$16 sps:$4 sm:$0xff]  }
 0x209   :  { %2901 = vmatpush1.bf16.msra.mxu0 %v4716_v40  ;;  %v5163_v40 = vld [vmem:[#allocation6 + $0x4c] ss:$16 sps:$4 sm:$0xff]  }
 0x20a   :  { %2987 = vmatpush1.bf16.msra.mxu1 %v4718_v14  ;;  %2902 = vmatprep.subr.bf16.mxu0 %v4725_v62  ;;  %v5158_v14 = vld [vmem:[#allocation6 + $0x40] ss:$16 sps:$4 sm:$0xff]   ;;  %v5161_v62 = vld [vmem:[#allocation6 + $0x48] ss:$16 sps:$4 sm:$0xff]  }
 0x20b   :  { %2988 = vmatprep.subr.bf16.mxu1 %v4727_v30  ;;  %v5166_v30 = vld [vmem:[#allocation6 + $0x64] ss:$16 sps:$4 sm:$0xff]  }
 0x20d   :  { %2903 = vmatpush1.bf16.msra.mxu0 %v4724_v25  ;;  %v5170_v25 = vld [vmem:[#allocation6 + $0x80] ss:$16 sps:$4 sm:$0xff]  }
 0x20e   :  { %2989 = vmatpush1.bf16.msra.mxu1 %v4726_v7  ;;  %2904 = vmatprep.subr.bf16.mxu0 %v4733_v8  ;;  %v5173_v7 = vld [vmem:[#allocation6 + $0x88] ss:$16 sps:$4 sm:$0xff]   ;;  %v5178_v8 = vld [vmem:[#allocation6 + $0xa4] ss:$16 sps:$4 sm:$0xff]  }
 0x20f   :  { %2990 = vmatprep.subr.bf16.mxu1 %v4735_v9  ;;  %v5181_v9 = vld [vmem:[#allocation6 + $0xac] ss:$16 sps:$4 sm:$0xff]  }
 0x211   :  { %2905 = vmatpush1.bf16.msra.mxu0 %v4732_v15  ;;  %v5182_v15 = vld [vmem:[#allocation6 + $0xc0] ss:$16 sps:$4 sm:$0xff]  }
 0x212   :  { %2991 = vmatpush1.bf16.msra.mxu1 %v4734_v28  ;;  %2906 = vmatprep.subr.bf16.mxu0 %v4741_v32  ;;  %v5185_v28 = vld [vmem:[#allocation6 + $0xc8] ss:$16 sps:$4 sm:$0xff]   ;;  %v5190_v32 = vld [vmem:[#allocation6 + $0xe4] ss:$16 sps:$4 sm:$0xff]  }
 0x213   :  { %2992 = vmatprep.subr.bf16.mxu1 %v4743_v39  ;;  %v5193_v39 = vld [vmem:[#allocation6 + $0xec] ss:$16 sps:$4 sm:$0xff]  }
 0x215   :  { %2907 = vmatpush1.bf16.msra.mxu0 %v4740_v56  ;;  %v5194_v56 = vld [vmem:[#allocation6 + $0x100] ss:$16 sps:$4 sm:$0xff]  }
 0x216   :  { %2993 = vmatpush1.bf16.msra.mxu1 %v4742_v38  ;;  %2908 = vmatprep.subr.bf16.mxu0 %v4749_v63  ;;  %v5197_v38 = vld [vmem:[#allocation6 + $0x108] ss:$16 sps:$4 sm:$0xff]   ;;  %v5202_v63 = vld [vmem:[#allocation6 + $0x124] ss:$16 sps:$4 sm:$0xff]  }
 0x217   :  { %2994 = vmatprep.subr.bf16.mxu1 %v4751_v42  ;;  %v5205_v42 = vld [vmem:[#allocation6 + $0x12c] ss:$16 sps:$4 sm:$0xff]  }
 0x219   :  { %2909 = vmatpush1.bf16.msra.mxu0 %v4748_v60  ;;  %v5206_v60 = vld [vmem:[#allocation6 + $0x140] ss:$16 sps:$4 sm:$0xff]  }
 0x21a   :  { %2995 = vmatpush1.bf16.msra.mxu1 %v4750_v61  ;;  %2910 = vmatprep.subr.bf16.mxu0 %v4757_v49  ;;  %v5209_v61 = vld [vmem:[#allocation6 + $0x148] ss:$16 sps:$4 sm:$0xff]   ;;  %v5214_v49 = vld [vmem:[#allocation6 + $0x164] ss:$16 sps:$4 sm:$0xff]  }
 0x21b   :  { %2996 = vmatprep.subr.bf16.mxu1 %v4759_v55  ;;  %v5217_v55 = vld [vmem:[#allocation6 + $0x16c] ss:$16 sps:$4 sm:$0xff]  }
 0x21d   :  { %2911 = vmatpush1.bf16.msra.mxu0 %v4756_v51  ;;  %v1358_v51 = vrot.slane %v5790_v53, %v5630_v1 }
 0x21e   :  { %2997 = vmatpush1.bf16.msra.mxu1 %v4758_v47  ;;  %2912 = vmatprep.subr.bf16.mxu0 %v4765_v12  ;;  %v5799_v47 = vld [vmem:[%s5985_s4 + $0x1] ss:$2 sm:$0xff]  ;;  %v1354_v12 = vrot.slane %v5790_v53, %v5583_v20 }
 0x21f   :  { %2998 = vmatprep.subr.bf16.mxu1 %v4767_v5  ;;  %v1362_v5 = vrot.slane %v5790_v53, %v5646_v22 }
 0x221   :  { %2913 = vmatpush1.bf16.msra.mxu0 %v4764_v34 }
 0x222   :  { %2999 = vmatpush1.bf16.msra.mxu1 %v4766_v16  ;;  %3506 = vmatprep.subr.bf16.mxu0 %v5148_v6 }
 0x223   :  { %3549 = vmatprep.subr.bf16.mxu1 %v5151_v11  ;;  %v3033_v11 = vrot.slane %v5799_v47, %v5572_v17 }
 0x224   :  { %2915 = vmatmul.mubr.bf16.vlgmr.msra.gmra.mrb[16].mxu0 %v5771_v37 }
 0x225   :  { %3001 = vmatmul.mubr.bf16.vlgmr.msra.gmra.mrb[24].mxu1 %v5771_v37  ;;  %3507 = vmatpush1.bf16.msra.mxu0 %v5146_v4  ;;  %v5167_v37 = vld [vmem:[#allocation6 + $0x68] ss:$16 sps:$4 sm:$0xff]  }
 0x226   :  { %3550 = vmatpush1.bf16.msra.mxu1 %v5149_v33  ;;  %3508 = vmatprep.subr.bf16.mxu0 %v5154_v45  ;;  %v3041_v33 = vrot.slane %v5799_v47, %v5630_v1 }
 0x227   :  { %3551 = vmatprep.subr.bf16.mxu1 %v5157_v54 }
 0x229   :  { %3509 = vmatpush1.bf16.msra.mxu0 %v5152_v29  ;;  %v5220_v29 = vld [vmem:[#allocation6 + $0x184] ss:$16 sps:$4 sm:$0xff]  }
 0x22a   :  { %3552 = vmatpush1.bf16.msra.mxu1 %v5155_v0  ;;  %3510 = vmatprep.subr.bf16.mxu0 %v5160_v3  ;;  %v5223_v0 = vld [vmem:[#allocation6 + $0x18c] ss:$16 sps:$4 sm:$0xff]  }
 0x22b   :  { %3553 = vmatprep.subr.bf16.mxu1 %v5163_v40  ;;  %v3037_v40 = vrot.slane %v5799_v47, %v5583_v20 }
 0x22d   :  { %3511 = vmatpush1.bf16.msra.mxu0 %v5158_v14 }
 0x22e   :  { %3554 = vmatpush1.bf16.msra.mxu1 %v5161_v62  ;;  %3512 = vmatprep.subr.bf16.mxu0 %v5166_v30  ;;  %v3045_v62 = vrot.slane %v5799_v47, %v5646_v22 }
 0x22f   :  { %3555 = vmatprep.subr.bf16.mxu1 %v5169_v2 }
 0x231   :  { %3513 = vmatpush1.bf16.msra.mxu0 %v5164_v44  ;;  %v5218_v44 = vld [vmem:[#allocation6 + $0x180] ss:$16 sps:$4 sm:$0xff]  }
 0x232   :  { %3556 = vmatpush1.bf16.msra.mxu1 %v5167_v37  ;;  %3514 = vmatprep.subr.bf16.mxu0 %v5172_v13  ;;  %v5221_v37 = vld [vmem:[#allocation6 + $0x188] ss:$16 sps:$4 sm:$0xff]  }
 0x233   :  { %3557 = vmatprep.subr.bf16.mxu1 %v5175_v36 }
 0x235   :  { %3515 = vmatpush1.bf16.msra.mxu0 %v5170_v25 }
 0x236   :  { %3558 = vmatpush1.bf16.msra.mxu1 %v5173_v7  ;;  %3516 = vmatprep.subr.bf16.mxu0 %v5178_v8 }
 0x237   :  { %3559 = vmatprep.subr.bf16.mxu1 %v5181_v9 }
 0x239   :  { %3517 = vmatpush1.bf16.msra.mxu0 %v5176_v10 }
 0x23a   :  { %3560 = vmatpush1.bf16.msra.mxu1 %v5179_v27  ;;  %3518 = vmatprep.subr.bf16.mxu0 %v5184_v26 }
 0x23b   :  { %3561 = vmatprep.subr.bf16.mxu1 %v5187_v46 }
 0x23d   :  { %3519 = vmatpush1.bf16.msra.mxu0 %v5182_v15 }
 0x23e   :  { %3562 = vmatpush1.bf16.msra.mxu1 %v5185_v28  ;;  %3520 = vmatprep.subr.bf16.mxu0 %v5190_v32 }
 0x23f   :  { %3563 = vmatprep.subr.bf16.mxu1 %v5193_v39 }
 0x241   :  { %3521 = vmatpush1.bf16.msra.mxu0 %v5188_v48  ;;  %v5226_v48 = vld [vmem:[#allocation6 + $0x1a4] ss:$16 sps:$4 sm:$0xff]  }
 0x242   :  { %3564 = vmatpush1.bf16.msra.mxu1 %v5191_v52  ;;  %3522 = vmatprep.subr.bf16.mxu0 %v5196_v59  ;;  %v5229_v52 = vld [vmem:[#allocation6 + $0x1ac] ss:$16 sps:$4 sm:$0xff]  }
 0x243   :  { %3565 = vmatprep.subr.bf16.mxu1 %v5199_v31 }
 0x245   :  { %3523 = vmatpush1.bf16.msra.mxu0 %v5194_v56 }
 0x246   :  { %3566 = vmatpush1.bf16.msra.mxu1 %v5197_v38  ;;  %3524 = vmatprep.subr.bf16.mxu0 %v5202_v63  ;;  %v5224_v63 = vld [vmem:[#allocation6 + $0x1a0] ss:$16 sps:$4 sm:$0xff]  }
 0x247   :  { %3567 = vmatprep.subr.bf16.mxu1 %v5205_v42  ;;  %v5227_v42 = vld [vmem:[#allocation6 + $0x1a8] ss:$16 sps:$4 sm:$0xff]  }
 0x249   :  { %3525 = vmatpush1.bf16.msra.mxu0 %v5200_v57 }
 0x24a   :  { %3568 = vmatpush1.bf16.msra.mxu1 %v5203_v50  ;;  %3526 = vmatprep.subr.bf16.mxu0 %v5208_v24 }
 0x24b   :  { %3569 = vmatprep.subr.bf16.mxu1 %v5211_v23 }
 0x24d   :  { %3527 = vmatpush1.bf16.msra.mxu0 %v5206_v60 }
 0x24e   :  { %3570 = vmatpush1.bf16.msra.mxu1 %v5209_v61  ;;  %3528 = vmatprep.subr.bf16.mxu0 %v5214_v49 }
 0x24f   :  { %3571 = vmatprep.subr.bf16.mxu1 %v5217_v55  ;;  %v5232_v55 = vld [vmem:[#allocation6 + $0x1c4] ss:$16 sps:$4 sm:$0xff]  }
 0x251   :  { %3529 = vmatpush1.bf16.msra.mxu0 %v5212_v58  ;;  %v5235_v58 = vld [vmem:[#allocation6 + $0x1cc] ss:$16 sps:$4 sm:$0xff]  }
 0x252   :  { %3572 = vmatpush1.bf16.msra.mxu1 %v5215_v18  ;;  %3530 = vmatprep.subr.bf16.mxu0 %v5220_v29 }
 0x253   :  { %3573 = vmatprep.subr.bf16.mxu1 %v5223_v0  ;;  %v3049_v0 = vrot.slane %v5799_v47, %v5580_v19 }
 0x255   :  { %3531 = vmatpush1.bf16.msra.mxu0 %v5218_v44 }
 0x256   :  { %3574 = vmatpush1.bf16.msra.mxu1 %v5221_v37  ;;  %3532 = vmatprep.subr.bf16.mxu0 %v5226_v48 }
 0x257   :  { %3575 = vmatprep.subr.bf16.mxu1 %v5229_v52 }
 0x259   :  { %3533 = vmatpush1.bf16.msra.mxu0 %v5224_v63 }
 0x25a   :  { %3576 = vmatpush1.bf16.msra.mxu1 %v5227_v42  ;;  %3534 = vmatprep.subr.bf16.mxu0 %v5232_v55 }
 0x25b   :  { %3577 = vmatprep.subr.bf16.mxu1 %v5235_v58 }
 0x277   :  { %v2744_v34 = vpop.f32.mrb[12].mxu0  ;;  %v2830_v16 = vpop.f32.mrb[20].mxu1 }
 0x278   :  { %v5100_v6 = vadd.f32 %v2744_v34, %v1350_v35  ;;  %v5104_v4 = vadd.f32 %v2830_v16, %v1358_v51  ;;  %v2746_v45 = vpop.f32.mrb[13].mxu0  ;;  %v2832_v54 = vpop.f32.mrb[21].mxu1  ;;  %v5239_v34 = vld [vmem:[#allocation6 + $0x1e8] ss:$16 sps:$4 sm:$0xff]   ;;  %v5241_v16 = vld [vmem:[#allocation6 + $0x1ec] ss:$16 sps:$4 sm:$0xff]  }
 0x279   :  { %v5101_v3 = vadd.f32 %v2746_v45, %v1354_v12  ;;  %v5105_v14 = vadd.f32 %v2832_v54, %v1362_v5  ;;  %v2748_v30 = vpop.f32.mrb[14].mxu0  ;;  %v2834_v2 = vpop.f32.mrb[22].mxu1  ;;  %v1378_v45 = vrot.slane %v5790_v53, %v5667_v43 }
 0x27a   :  { %v3011_v13 = vmax.f32 %v5100_v6, 0.0  ;;  %v3013_v36 = vmax.f32 %v5104_v4, 0.0  ;;  %v5102_v25 = vadd.f32 %v2748_v30, %v1350_v35  ;;  %v5106_v7 = vadd.f32 %v2834_v2, %v1358_v51  ;;  %v2750_v8 = vpop.f32.mrb[15].mxu0  ;;  %v2836_v9 = vpop.f32.mrb[23].mxu1  ;;  %v5230_v35 = vld [vmem:[#allocation6 + $0x1c0] ss:$16 sps:$4 sm:$0xff]  }
 0x27b   :  { %v3012_v10 = vmax.f32 %v5101_v3, 0.0  ;;  %v3014_v27 = vmax.f32 %v5105_v14, 0.0  ;;  %v5103_v26 = vadd.f32 %v2750_v8, %v1354_v12  ;;  %v5107_v46 = vadd.f32 %v2836_v9, %v1362_v5  ;;  %v5233_v51 = vld [vmem:[#allocation6 + $0x1c8] ss:$16 sps:$4 sm:$0xff]   ;;  %v5238_v12 = vld [vmem:[#allocation6 + $0x1e4] ss:$16 sps:$4 sm:$0xff]   ;;  %3535 = vmatpush1.bf16.msra.mxu0 %v5230_v35 }
 0x27c   :  { %v5813_v15 = vadd.f32 %v3033_v11, %v3011_v13  ;;  %v5815_v28 = vadd.f32 %v3041_v33, %v3013_v36  ;;  %v3019_v32 = vmax.f32 %v5102_v25, 0.0  ;;  %v3021_v39 = vmax.f32 %v5106_v7, 0.0  ;;  %3578 = vmatpush1.bf16.msra.mxu1 %v5233_v51  ;;  %v5236_v5 = vld [vmem:[#allocation6 + $0x1e0] ss:$16 sps:$4 sm:$0xff]   ;;  %3536 = vmatprep.subr.bf16.mxu0 %v5238_v12 }
 0x27d   :  { %v5817_v59 = vadd.f32 %v3037_v40, %v3012_v10  ;;  %v5819_v31 = vadd.f32 %v3045_v62, %v3014_v27  ;;  %v3020_v56 = vmax.f32 %v5103_v26, 0.0  ;;  %v3022_v38 = vmax.f32 %v5107_v46, 0.0  ;;  %3579 = vmatprep.subr.bf16.mxu1 %v5241_v16 }
 0x27e   :  { %v3086_v57 = vmax.f32 %v5813_v15, %v5815_v28  ;;  %v5823_v50 = vadd.f32 %v3033_v11, %v3019_v32  ;;  %v5825_v24 = vadd.f32 %v3041_v33, %v3021_v39  ;;  %v5408_v6 = vmov 0.0   ;;  %v5244_v15 = vld [vmem:[#allocation7 + $0x8] sm:$0xff]  }
 0x27f   :  { %v3087_v23 = vmax.f32 %v5817_v59, %v5819_v31  ;;  %v5829_v60 = vadd.f32 %v3037_v40, %v3020_v56  ;;  %v5831_v61 = vadd.f32 %v3045_v62, %v3022_v38  ;;  %3537 = vmatpush1.bf16.msra.mxu0 %v5236_v5  ;;  %v1366_v11 = vrot.slane %v5790_v53, %v5580_v19  ;;  %v5245_v28 = vld [vmem:[#allocation7 + $0x48] sm:$0xff]   ;;  %v5246_v59 = vld [vmem:[#allocation7 + $0x10] sm:$0xff]  }
 0x280   :  { %v3088_v49 = vmax.f32 %v5823_v50, %v5825_v24  ;;  %3580 = vmatpush1.bf16.msra.mxu1 %v5239_v34  ;;  %4960 = vmatprep.subr.bf16.mxu0 %v5408_v6  ;;  %v1374_v4 = vrot.slane %v5790_v53, %v5664_v41  ;;  %v1370_v33 = vrot.slane %v5790_v53, %v5586_v21  ;;  %v5247_v31 = vld [vmem:[#allocation7 + $0x50] sm:$0xff]   ;;  %v5249_v50 = vld [vmem:[#allocation7 + $0x58] sm:$0xff]   ;;  %v5250_v24 = vld [vmem:[#allocation7 + $0x20] sm:$0xff]  }
 0x281   :  { %v3089_v18 = vmax.f32 %v5829_v60, %v5831_v61  ;;  %4980 = vmatprep.subr.bf16.mxu1 %v5408_v6  ;;  %v3057_v62 = vrot.slane %v5799_v47, %v5664_v41  ;;  %v3053_v2 = vrot.slane %v5799_v47, %v5586_v21  ;;  %v3061_v53 = vrot.slane %v5799_v47, %v5667_v43  ;;  %v5252_v60 = vld [vmem:[#allocation7 + $0x28] sm:$0xff]  }
 0x282   :  { %v5253_v61 = vld [vmem:[#allocation7 + $0x68] sm:$0xff]  }
 0x2f7   :  { %v2916_v54 = vpop.f32.mrb[16].mxu0 }
 0x2f8   :  { %v5108_v29 = vadd.f32 %v2916_v54, %v1366_v11  ;;  %v3002_v3 = vpop.f32.mrb[24].mxu1  ;;  %v2918_v40 = vpop.f32.mrb[17].mxu0  ;;  %v5243_v54 = vld [vmem:[#allocation7 + $0x40] sm:$0xff]  }
 0x2f9   :  { %v5112_v14 = vadd.f32 %v3002_v3, %v1374_v4  ;;  %v5109_v30 = vadd.f32 %v2918_v40, %v1370_v33  ;;  %v3004_v44 = vpop.f32.mrb[25].mxu1  ;;  %v2920_v37 = vpop.f32.mrb[18].mxu0  ;;  %v3164_v3 = vld [vmem:[%s5987_s6] ss:$2 sm:$0xf] }
 0x2fa   :  { %v3015_v13 = vmax.f32 %v5108_v29, 0.0  ;;  %v5113_v36 = vadd.f32 %v3004_v44, %v1378_v45  ;;  %v5110_v25 = vadd.f32 %v2920_v37, %v1366_v11  ;;  %v3006_v7 = vpop.f32.mrb[26].mxu1  ;;  %v2922_v19 = vpop.f32.mrb[19].mxu0  ;;  %v5256_v29 = vld [vmem:[#allocation7 + $0x38] sm:$0xff]   ;;  %v3169_v40 = vrot.slane %v3164_v3, %v5572_v17 }
 0x2fb   :  { %v3017_v8 = vmax.f32 %v5112_v14, 0.0  ;;  %v3016_v9 = vmax.f32 %v5109_v30, 0.0  ;;  %v5114_v10 = vadd.f32 %v3006_v7, %v1374_v4  ;;  %v5111_v27 = vadd.f32 %v2922_v19, %v1370_v33  ;;  %v3008_v26 = vpop.f32.mrb[27].mxu1 }
 0x2fc   :  { %v3074_v41 = vadd.f32 %v3049_v0, %v3015_v13  ;;  %v3018_v46 = vmax.f32 %v5113_v36, 0.0  ;;  %v3023_v32 = vmax.f32 %v5110_v25, 0.0  ;;  %v5115_v39 = vadd.f32 %v3008_v26, %v1378_v45  ;;  %v5242_v45 = vld [vmem:[#allocation7] sm:$0xff]  }
 0x2fd   :  { %v3076_v21 = vadd.f32 %v3057_v62, %v3017_v8  ;;  %v3075_v48 = vadd.f32 %v3053_v2, %v3016_v9  ;;  %v3025_v52 = vmax.f32 %v5114_v10, 0.0  ;;  %v3024_v56 = vmax.f32 %v5111_v27, 0.0 }
 0x2fe   :  { %v3077_v38 = vadd.f32 %v3061_v53, %v3018_v46  ;;  %v3082_v63 = vadd.f32 %v3049_v0, %v3023_v32  ;;  %v3026_v42 = vmax.f32 %v5115_v39, 0.0  ;;  %v5257_v0 = vld [vmem:[#allocation7 + $0x78] sm:$0xff]   ;;  %v3177_v14 = vrot.slane %v3164_v3, %v5630_v1 }
 0x2ff   :  { %v3090_v43 = vmax.f32 %v3074_v41, %v3076_v21  ;;  %v3084_v47 = vadd.f32 %v3057_v62, %v3025_v52  ;;  %v3083_v55 = vadd.f32 %v3053_v2, %v3024_v56  ;;  %v4833_v62 = vld [vmem:[%s5987_s6 + $0x1] ss:$2 sm:$0xf]  ;;  %v3173_v30 = vrot.slane %v3164_v3, %v5583_v20 }
 0x300   :  { %v3091_v58 = vmax.f32 %v3075_v48, %v3077_v38  ;;  %v3085_v35 = vadd.f32 %v3061_v53, %v3026_v42  ;;  %v3181_v2 = vrot.slane %v3164_v3, %v5646_v22  ;;  %v3606_v36 = vrot.slane %v4833_v62, %v5572_v17  ;;  %v5279_v3 = vld [vmem:[#allocation7 + $0xe8] sm:$0xff]  }
 0x301   :  { %v3094_v51 = vmax.f32 %v3086_v57, %v3090_v43  ;;  %v3092_v12 = vmax.f32 %v3082_v63, %v3084_v47  ;;  %v5248_v57 = vld [vmem:[#allocation7 + $0x18] sm:$0xff]   ;;  %v3614_v25 = vrot.slane %v4833_v62, %v5630_v1  ;;  %v3610_v9 = vrot.slane %v4833_v62, %v5583_v20 }
 0x302   :  { %v3093_v5 = vmax.f32 %v3083_v55, %v3085_v35  ;;  %v3095_v34 = vmax.f32 %v3087_v23, %v3091_v58  ;;  %v5251_v23 = vld [vmem:[#allocation7 + $0x60] sm:$0xff]   ;;  %v3618_v27 = vrot.slane %v4833_v62, %v5646_v22 }
 0x303   :  { %v3096_v16 = vmax.f32 %v3088_v49, %v3092_v12  ;;  %v5254_v49 = vld [vmem:[#allocation7 + $0x30] sm:$0xff]   ;;  %v4850_v62 = vld [vmem:[%s5989_s8] ss:$0 sm:$0xff] }
 0x304   :  { %v3097_v11 = vmax.f32 %v3089_v18, %v3093_v5  ;;  %v5255_v18 = vld [vmem:[#allocation7 + $0x70] sm:$0xff]  }
 0x305   :  { %v3098_v4 = vpack.c.bf16 %v3096_v16, %v3094_v51 }
 0x306   :  { %v3099_v33 = vpack.c.bf16 %v3097_v11, %v3095_v34 }
 0x308   :  { %3538 = vmatprep.mubr.bf16.mxu0 %v3099_v33  ;;  %3581 = vmatprep.mubr.bf16.mxu1 %v3099_v33 }
 0x309   :  { %3539 = vmatmul.mubr.bf16.vlgmr.msra.gmra.mrb[20].mxu0 %v3098_v4  ;;  %3582 = vmatmul.mubr.bf16.vlgmr.msra.gmra.mrb[28].mxu1 %v3098_v4 }
 0x30a   :  { %4981 = vmatpush3.bf16.msra.mxu1 %v5242_v45  ;;  %4961 = vmatpush3.bf16.msra.mxu0 %v5243_v54 }
 0x30b   :  { %4982 = vmatprep.subr.bf16.mxu1 %v5408_v6  ;;  %4962 = vmatprep.subr.bf16.mxu0 %v5408_v6 }
 0x30c   :  { %4996 = vmatprep.mubr.msk.bf16.mxu1 %vm5409_vm1, %v5408_v6  ;;  %4976 = vmatprep.mubr.msk.bf16.mxu0 %vm5409_vm1, %v5408_v6 }
 0x30e   :  { %4983 = vmatpush3.bf16.msra.mxu1 %v5244_v15  ;;  %4963 = vmatpush3.bf16.msra.mxu0 %v5245_v28  ;;  %v5258_v15 = vld [vmem:[#allocation7 + $0x80] sm:$0xff]  }
 0x30f   :  { %4984 = vmatprep.subr.bf16.mxu1 %v5408_v6  ;;  %4964 = vmatprep.subr.bf16.mxu0 %v5408_v6 }
 0x312   :  { %4985 = vmatpush3.bf16.msra.mxu1 %v5246_v59  ;;  %4965 = vmatpush3.bf16.msra.mxu0 %v5247_v31  ;;  %v5259_v59 = vld [vmem:[#allocation7 + $0x88] sm:$0xff]   ;;  %v5260_v31 = vld [vmem:[#allocation7 + $0x90] sm:$0xff]  }
 0x313   :  { %4986 = vmatprep.subr.bf16.mxu1 %v5408_v6  ;;  %4966 = vmatprep.subr.bf16.mxu0 %v5408_v6 }
 0x316   :  { %4987 = vmatpush3.bf16.msra.mxu1 %v5248_v57  ;;  %4967 = vmatpush3.bf16.msra.mxu0 %v5249_v50  ;;  %v5261_v57 = vld [vmem:[#allocation7 + $0x98] sm:$0xff]   ;;  %v5262_v50 = vld [vmem:[#allocation7 + $0xa0] sm:$0xff]  }
 0x317   :  { %4988 = vmatprep.subr.bf16.mxu1 %v5408_v6  ;;  %4968 = vmatprep.subr.bf16.mxu0 %v5408_v6 }
 0x31a   :  { %4989 = vmatpush3.bf16.msra.mxu1 %v5250_v24  ;;  %4969 = vmatpush3.bf16.msra.mxu0 %v5251_v23  ;;  %v5263_v24 = vld [vmem:[#allocation7 + $0xa8] sm:$0xff]   ;;  %v5264_v23 = vld [vmem:[#allocation7 + $0xb0] sm:$0xff]  }
 0x31b   :  { %4990 = vmatprep.subr.bf16.mxu1 %v5408_v6  ;;  %4970 = vmatprep.subr.bf16.mxu0 %v5408_v6 }
 0x31e   :  { %4991 = vmatpush3.bf16.msra.mxu1 %v5252_v60  ;;  %4971 = vmatpush3.bf16.msra.mxu0 %v5253_v61  ;;  %v5265_v60 = vld [vmem:[#allocation7 + $0xb8] sm:$0xff]   ;;  %v5274_v61 = vld [vmem:[#allocation7 + $0xc0] sm:$0xff]  }
 0x31f   :  { %4992 = vmatprep.subr.bf16.mxu1 %v5408_v6  ;;  %4972 = vmatprep.subr.bf16.mxu0 %v5408_v6 }
 0x322   :  { %4993 = vmatpush3.bf16.msra.mxu1 %v5254_v49  ;;  %4973 = vmatpush3.bf16.msra.mxu0 %v5255_v18  ;;  %v5275_v49 = vld [vmem:[#allocation7 + $0xc8] sm:$0xff]   ;;  %v5276_v18 = vld [vmem:[#allocation7 + $0xd0] sm:$0xff]  }
 0x323   :  { %4994 = vmatprep.subr.bf16.mxu1 %v5408_v6  ;;  %4974 = vmatprep.subr.bf16.mxu0 %v5408_v6 }
 0x326   :  { %4995 = vmatpush3.bf16.msra.mxu1 %v5256_v29  ;;  %4975 = vmatpush3.bf16.msra.mxu0 %v5257_v0  ;;  %v5277_v29 = vld [vmem:[#allocation7 + $0xd8] sm:$0xff]   ;;  %v5278_v0 = vld [vmem:[#allocation7 + $0xe0] sm:$0xff]  }
 0x327   :  { %5020 = vmatprep.subr.bf16.mxu1 %v5408_v6  ;;  %5000 = vmatprep.subr.bf16.mxu0 %v5408_v6 }
 0x3dc   :  { %v3540_v44 = vpop.f32.mrb[20].mxu0  ;;  %v3583_v37 = vpop.f32.mrb[28].mxu1 }
 0x3dd   :  { %v3541_v13 = vadd.f32 %v3540_v44, %v3169_v40  ;;  %v3584_v53 = vadd.f32 %v3583_v37, %v3177_v14  ;;  %v3542_v7 = vpop.f32.mrb[21].mxu0  ;;  %v3585_v19 = vpop.f32.mrb[29].mxu1 }
 0x3de   :  { %v3543_v8 = vadd.f32 %v3542_v7, %v3173_v30  ;;  %v3586_v10 = vadd.f32 %v3585_v19, %v3181_v2  ;;  %v3544_v26 = vpop.f32.mrb[22].mxu0  ;;  %v3587_v41 = vpop.f32.mrb[30].mxu1  ;;  %v5266_v19 = vld [vmem:[#allocation7 + $0x100] sm:$0xff]  }
 0x3df   :  { %v3592_v46 = vmax.f32 %v3541_v13, 0.0  ;;  %v3594_v32 = vmax.f32 %v3584_v53, 0.0  ;;  %v3545_v39 = vadd.f32 %v3544_v26, %v3169_v40  ;;  %v3588_v21 = vadd.f32 %v3587_v41, %v3177_v14  ;;  %v3546_v48 = vpop.f32.mrb[23].mxu0  ;;  %v3589_v52 = vpop.f32.mrb[31].mxu1  ;;  %v5270_v26 = vld [vmem:[#allocation7 + $0x120] sm:$0xff]   ;;  %v5271_v41 = vld [vmem:[#allocation7 + $0x128] sm:$0xff]  }
 0x3e0   :  { %v3593_v17 = vmax.f32 %v3543_v8, 0.0  ;;  %v3595_v56 = vmax.f32 %v3586_v10, 0.0  ;;  %v3547_v38 = vadd.f32 %v3546_v48, %v3173_v30  ;;  %v3590_v1 = vadd.f32 %v3589_v52, %v3181_v2  ;;  %v5268_v10 = vld [vmem:[#allocation7 + $0x110] sm:$0xff]   ;;  %v4851_v48 = vld [vmem:[%s5989_s8 + $0x1] ss:$0 sm:$0xff] }
 0x3e1   :  { %v3623_v63 = vadd.f32 %v3606_v36, %v3592_v46  ;;  %v3625_v42 = vadd.f32 %v3614_v25, %v3594_v32  ;;  %v3596_v43 = vmax.f32 %v3545_v39, 0.0  ;;  %v3598_v47 = vmax.f32 %v3588_v21, 0.0  ;;  %v5272_v46 = vld [vmem:[#allocation7 + $0x130] sm:$0xff]   ;;  %v5273_v32 = vld [vmem:[#allocation7 + $0x138] sm:$0xff]  }
 0x3e2   :  { %v3624_v20 = vadd.f32 %v3610_v9, %v3593_v17  ;;  %v3626_v55 = vadd.f32 %v3618_v27, %v3595_v56  ;;  %v3597_v58 = vmax.f32 %v3547_v38, 0.0  ;;  %v3599_v22 = vmax.f32 %v3590_v1, 0.0  ;;  %v5280_v39 = vld [vmem:[#allocation7 + $0xf0] sm:$0xff]   ;;  %v5281_v21 = vld [vmem:[#allocation7 + $0xf8] sm:$0xff]  }
 0x3e3   :  { %v3627_v35 = vadd.f32 %v3606_v36, %v3596_v43  ;;  %v3629_v51 = vadd.f32 %v3614_v25, %v3598_v47  ;;  %v5283_v47 = vld [vmem:[#allocation7 + $0x148] sm:$0xff]  }
 0x3e4   :  { %v3631_v12 = vmax.f32 %v3623_v63, %v3624_v20  ;;  %v3633_v5 = vmax.f32 %v3625_v42, %v3626_v55  ;;  %v3628_v34 = vadd.f32 %v3610_v9, %v3597_v58  ;;  %v3630_v16 = vadd.f32 %v3618_v27, %v3599_v22  ;;  %v5267_v9 = vld [vmem:[#allocation7 + $0x108] sm:$0xff]   ;;  %v5269_v27 = vld [vmem:[#allocation7 + $0x118] sm:$0xff]   ;;  %v5282_v42 = vld [vmem:[#allocation7 + $0x140] sm:$0xff]  }
 0x3e5   :  { %v5284_v20 = vld [vmem:[#allocation7 + $0x150] sm:$0xff]   ;;  %v5285_v55 = vld [vmem:[#allocation7 + $0x158] sm:$0xff]   ;;  %v5286_v58 = vld [vmem:[#allocation7 + $0x160] sm:$0xff]  }
 0x3e6   :  { %v3635_v11 = vmax.f32 %v3631_v12, %v3633_v5  ;;  %v3632_v4 = vmax.f32 %v3627_v35, %v3628_v34  ;;  %v3634_v33 = vmax.f32 %v3629_v51, %v3630_v16  ;;  %v5287_v22 = vld [vmem:[#allocation7 + $0x168] sm:$0xff]   ;;  %v5288_v35 = vld [vmem:[#allocation7 + $0x170] sm:$0xff]   ;;  %v4870_v51 = vld [vmem:[%s5989_s8 + $0x3] ss:$0 sm:$0xff] }
 0x3e7   :  { %v5289_v5 = vld [vmem:[#allocation7 + $0x178] sm:$0xff]  }
 0x3e8   :  { %v3636_v45 = vmax.f32 %v3632_v4, %v3634_v33 }
 0x3ea   :  { %v5901_v54 = vpack.c.bf16 %v3636_v45, %v3635_v11 }
 0x3ec   :  { %4997 = vmatmul.mubr.bf16.vlgmr.msra.gmra.mrb[32].mxu1 %v5901_v54  ;;  %v3757_v28 = vrot.slane %v5901_v54, 4 }
 0x3ed   :  { %5036 = vmatprep.mubr.msk.bf16.mxu1 %vm5409_vm1, %v5408_v6  ;;  %5021 = vmatpush3.bf16.msra.mxu1 %v5274_v61  ;;  %v4860_v61 = vld [vmem:[%s5989_s8 + $0x2] ss:$0 sm:$0xff] }
 0x3ee   :  { %4977 = vmatmul.mubr.bf16.vlgmr.msra.gmra.mrb[24].mxu0 %v3757_v28  ;;  %5022 = vmatprep.subr.bf16.mxu1 %v5408_v6  ;;  %v5290_v28 = vld [vmem:[#allocation7 + $0x180] sm:$0xff]  }
 0x3ef   :  { %5001 = vmatpush3.bf16.msra.mxu0 %v5258_v15  ;;  %5016 = vmatprep.mubr.msk.bf16.mxu0 %vm5409_vm1, %v5408_v6 }
 0x3f0   :  { %5002 = vmatprep.subr.bf16.mxu0 %v5408_v6 }
 0x3f1   :  { %5023 = vmatpush3.bf16.msra.mxu1 %v5275_v49 }
 0x3f2   :  { %5024 = vmatprep.subr.bf16.mxu1 %v5408_v6 }
 0x3f3   :  { %5003 = vmatpush3.bf16.msra.mxu0 %v5259_v59  ;;  %v5291_v59 = vld [vmem:[#allocation7 + $0x188] sm:$0xff]  }
 0x3f4   :  { %5004 = vmatprep.subr.bf16.mxu0 %v5408_v6 }
 0x3f5   :  { %5025 = vmatpush3.bf16.msra.mxu1 %v5276_v18 }
 0x3f6   :  { %5026 = vmatprep.subr.bf16.mxu1 %v5408_v6 }
 0x3f7   :  { %5005 = vmatpush3.bf16.msra.mxu0 %v5260_v31  ;;  %v5292_v31 = vld [vmem:[#allocation7 + $0x190] sm:$0xff]  }
 0x3f8   :  { %5006 = vmatprep.subr.bf16.mxu0 %v5408_v6 }
 0x3f9   :  { %5027 = vmatpush3.bf16.msra.mxu1 %v5277_v29 }
 0x3fa   :  { %5028 = vmatprep.subr.bf16.mxu1 %v5408_v6 }
 0x3fb   :  { %5007 = vmatpush3.bf16.msra.mxu0 %v5261_v57  ;;  %v5293_v57 = vld [vmem:[#allocation7 + $0x198] sm:$0xff]  }
 0x3fc   :  { %5008 = vmatprep.subr.bf16.mxu0 %v5408_v6 }
 0x3fd   :  { %5029 = vmatpush3.bf16.msra.mxu1 %v5278_v0 }
 0x3fe   :  { %5030 = vmatprep.subr.bf16.mxu1 %v5408_v6 }
 0x3ff   :  { %5009 = vmatpush3.bf16.msra.mxu0 %v5262_v50  ;;  %v5294_v50 = vld [vmem:[#allocation7 + $0x1a0] sm:$0xff]  }
 0x400   :  { %5010 = vmatprep.subr.bf16.mxu0 %v5408_v6 }
 0x401   :  { %5031 = vmatpush3.bf16.msra.mxu1 %v5279_v3 }
 0x402   :  { %5032 = vmatprep.subr.bf16.mxu1 %v5408_v6 }
 0x403   :  { %5011 = vmatpush3.bf16.msra.mxu0 %v5263_v24  ;;  %v5295_v24 = vld [vmem:[#allocation7 + $0x1a8] sm:$0xff]  }
 0x404   :  { %5012 = vmatprep.subr.bf16.mxu0 %v5408_v6 }
 0x405   :  { %5033 = vmatpush3.bf16.msra.mxu1 %v5280_v39 }
 0x406   :  { %5034 = vmatprep.subr.bf16.mxu1 %v5408_v6 }
 0x407   :  { %5013 = vmatpush3.bf16.msra.mxu0 %v5264_v23  ;;  %v5296_v23 = vld [vmem:[#allocation7 + $0x1b0] sm:$0xff]  }
 0x408   :  { %5014 = vmatprep.subr.bf16.mxu0 %v5408_v6 }
 0x409   :  { %5035 = vmatpush3.bf16.msra.mxu1 %v5281_v21 }
 0x40a   :  { %5060 = vmatprep.subr.bf16.mxu1 %v5408_v6 }
 0x40b   :  { %5015 = vmatpush3.bf16.msra.mxu0 %v5265_v60  ;;  %v5297_v60 = vld [vmem:[#allocation7 + $0x1b8] sm:$0xff]  }
 0x40c   :  { %5040 = vmatprep.subr.bf16.mxu0 %v5408_v6 }
 0x4bf   :  { %v3929_v40 = vpop.f32.mrb[32].mxu1 }
 0x4c0   :  { %v4998_v14 = vpop.f32.mrb[33].mxu1 }
 0x4c1   :  { %v3841_v30 = vpop.f32.mrb[24].mxu0  ;;  %v3932_v2 = vpop.f32.mrb[34].mxu1 }
 0x4c2   :  { %v3930_v44 = vadd.f32 %v3929_v40, %v3841_v30  ;;  %v4978_v37 = vpop.f32.mrb[25].mxu0  ;;  %v4999_v13 = vpop.f32.mrb[35].mxu1 }
 0x4c3   :  { %v3844_v36 = vpop.f32.mrb[26].mxu0 }
 0x4c4   :  { %v3939_v53 = vadd.f32 %v4850_v62, %v3930_v44  ;;  %v4979_v25 = vpop.f32.mrb[27].mxu0 }
 0x4c6   :  { %v3940_v7 = vmax.f32 %v3939_v53, 0.0 }
 0x4c8   :  { %v3941_v8 = vpack.c.bf16 %v3940_v7, %v3940_v7 }
 0x4ca   :  { %5017 = vmatmul.mubr.bf16.vlgmr.msra.gmra.mrb[28].mxu0 %v3941_v8  ;;  %v4888_v8 = vld [vmem:[%s5989_s8 + $0x5] ss:$0 sm:$0xff] }
 0x4cb   :  { %5041 = vmatpush3.bf16.msra.mxu0 %v5266_v19  ;;  %5056 = vmatprep.mubr.msk.bf16.mxu0 %vm5409_vm1, %v5408_v6 }
 0x4cc   :  { %5042 = vmatprep.subr.bf16.mxu0 %v5408_v6 }
 0x4cf   :  { %5043 = vmatpush3.bf16.msra.mxu0 %v5267_v9 }
 0x4d0   :  { %5044 = vmatprep.subr.bf16.mxu0 %v5408_v6 }
 0x4d3   :  { %5045 = vmatpush3.bf16.msra.mxu0 %v5268_v10 }
 0x4d4   :  { %5046 = vmatprep.subr.bf16.mxu0 %v5408_v6 }
 0x4d7   :  { %5047 = vmatpush3.bf16.msra.mxu0 %v5269_v27 }
 0x4d8   :  { %5048 = vmatprep.subr.bf16.mxu0 %v5408_v6 }
 0x4db   :  { %5049 = vmatpush3.bf16.msra.mxu0 %v5270_v26 }
 0x4dc   :  { %5050 = vmatprep.subr.bf16.mxu0 %v5408_v6 }
 0x4df   :  { %5051 = vmatpush3.bf16.msra.mxu0 %v5271_v41 }
 0x4e0   :  { %5052 = vmatprep.subr.bf16.mxu0 %v5408_v6 }
 0x4e3   :  { %5053 = vmatpush3.bf16.msra.mxu0 %v5272_v46 }
 0x4e4   :  { %5054 = vmatprep.subr.bf16.mxu0 %v5408_v6 }
 0x4e7   :  { %5055 = vmatpush3.bf16.msra.mxu0 %v5273_v32 }
 0x4e8   :  { %5080 = vmatprep.subr.bf16.mxu0 %v5408_v6 }
 0x4ea   :  { %5057 = vmatmul.mubr.bf16.vlgmr.msra.gmra.mrb[32].mxu0 %v5901_v54 }
 0x4eb   :  { %5096 = vmatprep.mubr.msk.bf16.mxu0 %vm5409_vm1, %v5408_v6  ;;  %5081 = vmatpush3.bf16.msra.mxu0 %v5290_v28 }
 0x4ec   :  { %5082 = vmatprep.subr.bf16.mxu0 %v5408_v6 }
 0x4ef   :  { %5083 = vmatpush3.bf16.msra.mxu0 %v5291_v59 }
 0x4f0   :  { %5084 = vmatprep.subr.bf16.mxu0 %v5408_v6 }
 0x4f3   :  { %5085 = vmatpush3.bf16.msra.mxu0 %v5292_v31 }
 0x4f4   :  { %5086 = vmatprep.subr.bf16.mxu0 %v5408_v6 }
 0x4f7   :  { %5087 = vmatpush3.bf16.msra.mxu0 %v5293_v57 }
 0x4f8   :  { %5088 = vmatprep.subr.bf16.mxu0 %v5408_v6 }
 0x4fb   :  { %5089 = vmatpush3.bf16.msra.mxu0 %v5294_v50 }
 0x4fc   :  { %5090 = vmatprep.subr.bf16.mxu0 %v5408_v6 }
 0x4ff   :  { %5091 = vmatpush3.bf16.msra.mxu0 %v5295_v24 }
 0x500   :  { %5092 = vmatprep.subr.bf16.mxu0 %v5408_v6 }
 0x503   :  { %5093 = vmatpush3.bf16.msra.mxu0 %v5296_v23 }
 0x504   :  { %5094 = vmatprep.subr.bf16.mxu0 %v5408_v6 }
 0x507   :  { %5095 = vmatpush3.bf16.msra.mxu0 %v5297_v60 }
 0x59d   :  { %v4028_v52 = vpop.f32.mrb[28].mxu0 }
 0x59e   :  { %v4029_v17 = vadd.f32 %v4851_v48, %v4028_v52  ;;  %v5018_v56 = vpop.f32.mrb[29].mxu0 }
 0x59f   :  { %v4031_v38 = vpop.f32.mrb[30].mxu0 }
 0x5a0   :  { %v4034_v1 = vmax.f32 %v4029_v17, 0.0  ;;  %v5019_v63 = vpop.f32.mrb[31].mxu0 }
 0x5a2   :  { %v4035_v43 = vpack.c.bf16 %v4034_v1, %v4034_v1 }
 0x5a4   :  { %5037 = vmatmul.mubr.bf16.vlgmr.msra.gmra.mrb[36].mxu1 %v4035_v43 }
 0x5a5   :  { %5061 = vmatpush3.bf16.msra.mxu1 %v5282_v42  ;;  %5076 = vmatprep.mubr.msk.bf16.mxu1 %vm5409_vm1, %v5408_v6 }
 0x5a6   :  { %5062 = vmatprep.subr.bf16.mxu1 %v5408_v6 }
 0x5a9   :  { %5063 = vmatpush3.bf16.msra.mxu1 %v5283_v47 }
 0x5aa   :  { %5064 = vmatprep.subr.bf16.mxu1 %v5408_v6 }
 0x5ad   :  { %5065 = vmatpush3.bf16.msra.mxu1 %v5284_v20 }
 0x5ae   :  { %5066 = vmatprep.subr.bf16.mxu1 %v5408_v6 }
 0x5b1   :  { %5067 = vmatpush3.bf16.msra.mxu1 %v5285_v55 }
 0x5b2   :  { %5068 = vmatprep.subr.bf16.mxu1 %v5408_v6 }
 0x5b5   :  { %5069 = vmatpush3.bf16.msra.mxu1 %v5286_v58 }
 0x5b6   :  { %5070 = vmatprep.subr.bf16.mxu1 %v5408_v6 }
 0x5b9   :  { %5071 = vmatpush3.bf16.msra.mxu1 %v5287_v22 }
 0x5ba   :  { %5072 = vmatprep.subr.bf16.mxu1 %v5408_v6 }
 0x5bd   :  { %v4221_v12 = vpop.f32.mrb[32].mxu0  ;;  %5073 = vmatpush3.bf16.msra.mxu1 %v5288_v35 }
 0x5be   :  { %v4222_v34 = vadd.f32 %v4870_v51, %v4221_v12  ;;  %v5058_v16 = vpop.f32.mrb[33].mxu0  ;;  %5074 = vmatprep.subr.bf16.mxu1 %v5408_v6  ;;  %v4879_v6 = vld [vmem:[%s5989_s8 + $0x4] ss:$0 sm:$0xff] }
 0x5bf   :  { %v4224_v11 = vpop.f32.mrb[34].mxu0 }
 0x5c0   :  { %v4225_v4 = vadd.f32 %v4870_v51, %v4224_v11  ;;  %v5059_v33 = vpop.f32.mrb[35].mxu0  ;;  %v4228_v45 = vmax.f32 %v4222_v34, 0.0 }
 0x5c1   :  { %5075 = vmatpush3.bf16.msra.mxu1 %v5289_v5 }
 0x5c2   :  { %v4229_v54 = vmax.f32 %v4225_v4, 0.0 }
 0x5c4   :  { %v4230_v15 = vpack.c.bf16 %v4229_v54, %v4228_v45 }
 0x5c6   :  { %5077 = vmatmul.mubr.bf16.vlgmr.msra.gmra.mrb[40].mxu1 %v4230_v15 }
 0x677   :  { %v4122_v49 = vpop.f32.mrb[36].mxu1 }
 0x678   :  { %v4123_v18 = vadd.f32 %v4860_v61, %v4122_v49  ;;  %v5038_v29 = vpop.f32.mrb[37].mxu1 }
 0x679   :  { %v4125_v0 = vpop.f32.mrb[38].mxu1 }
 0x67a   :  { %v4869_v3 = vmul.f32 -1.442695, %v4123_v18  ;;  %v5039_v40 = vpop.f32.mrb[39].mxu1 }
 0x67c   :  { %5298 = vpow2.f32 %v4869_v3 }
 0x686   :  { %v5299_v14 = vpop.eup %5298 }
 0x687   :  { %v4131_v62 = vadd.f32 1.0, %v5299_v14 }
 0x689   :  { %5300 = vrcp.f32 %v4131_v62 }
 0x693   :  { %v5301_v30 = vpop.eup %5300 }
 0x694   :  { %4134 = vst [vmem:[%s5990_s9] sm:$0xff] %v5301_v30 }
 0x699   :  { %v4317_v2 = vpop.f32.mrb[40].mxu1 }
 0x69a   :  { %v4318_v44 = vadd.f32 %v4879_v6, %v4317_v2  ;;  %v5078_v37 = vpop.f32.mrb[41].mxu1 }
 0x69b   :  { %v4320_v13 = vpop.f32.mrb[42].mxu1 }
 0x69c   :  { %v4321_v36 = vadd.f32 %v4879_v6, %v4320_v13  ;;  %v5079_v53 = vpop.f32.mrb[43].mxu1  ;;  %v4324_v25 = vmax.f32 %v4318_v44, 0.0 }
 0x69e   :  { %v4325_v7 = vmax.f32 %v4321_v36, 0.0 }
 0x6a0   :  { %v4326_v19 = vpack.c.bf16 %v4325_v7, %v4324_v25 }
 0x6a2   :  { %5097 = vmatmul.mubr.bf16.vlgmr.msra.gmra.mrb[36].mxu0 %v4326_v19 }
 0x775   :  { %v4413_v9 = vpop.f32.mrb[36].mxu0 }
 0x776   :  { %v4414_v10 = vadd.f32 %v4888_v8, %v4413_v9  ;;  %v5098_v27 = vpop.f32.mrb[37].mxu0 }
 0x777   :  { %v4416_v26 = vpop.f32.mrb[38].mxu0 }
 0x778   :  { %4420 = vst [vmem:[%s5991_s10] sm:$0xff] %v4414_v10  ;;  %v4417_v41 = vadd.f32 %v4888_v8, %v4416_v26  ;;  %v5099_v46 = vpop.f32.mrb[39].mxu0 }
 0x77a   :  { %4421 = vst [vmem:[%s5992_s11] sm:$0xff] %v4417_v41 }
 0x77b   :  { %4434 = vsyncpa [#allocation3], 1 }
 0x77c   :  { %4435 = vsyncpa [#allocation5], 1 }
 0x77d   :  { %4436 = vsyncpa [#allocation8], 1 }

</bundles_post_ra>
